<compile_context>
chip_gen: v6e
topology: v6e:2x2x1
jax: 0.10.0
libtpu: 0.0.40
codegen_flags: <defaults>
</compile_context>

<pallas_src>
import functools
import math

import jax
import jax.numpy as jnp
from jax import lax
from jax.experimental import pallas as pl
from jax.experimental.pallas import tpu as pltpu


# ------------------------------ kernel helpers --------------------------------

def _masked_softmax_attn(q_bh, k_bh, v_bh, invalid, inv_scale):
    """(m,e) x (n,e) -> masked softmax over n -> (m,e); fully-masked rows -> 0."""
    score = lax.dot_general(
        q_bh, k_bh, (((1,), (1,)), ((), ())),
        preferred_element_type=jnp.float32) * inv_scale
    score = jnp.where(invalid, jnp.float32(-1e30), score)
    m = jnp.max(score, axis=-1, keepdims=True)
    p = jnp.where(invalid, 0.0, jnp.exp(score - m))
    denom = jnp.sum(p, axis=-1, keepdims=True)
    # Fully-masked rows have p == 0 everywhere, so the product is exactly 0
    # (replicates PyTorch's weights.masked_fill(weights != weights, 0)).
    w = p * pl.reciprocal(jnp.maximum(denom, 1e-30), approx=True)
    return jnp.dot(w, v_bh, preferred_element_type=jnp.float32)


# ------------------------------ fused kernel ----------------------------------

def _scvd_fused_kernel(
    # data
    x_ref, sa_ref, tz_ref, h0_ref, obsm_ref, amcol_ref, amrow_ref,
    # encoder weights (q|k|v packed)
    w1_ref, b1_ref, wqkv_e_ref, bqkv_e_ref,
    # GRU weights (gates r|z|n packed; input weight over [embed | atten] rows)
    gru_wi_ref, gru_wh_ref, gru_bi_ref, gru_bh_ref,
    # decoder / head weights
    wact_ref,            # (n_actions+1, H), no bias (torch act_encoder bias=False)
    hq_w_ref, hq_b_ref,  # (H, A + 2*n_actions): [dec query | q_alone | q_out(h part)]
    wkv_d_ref, bkv_d_ref,   # (H, 2A) packed k|v
    wz_ref,              # (T, 2*n_actions): task_z part of [q_alone | q_out]
    wqo_a_ref,           # (A, n_actions): q_out attention part
    # output: packed slab [all_q | aux_q | q_alone | q_int | h]
    out_ref,
    # scratch
    cat_scr,             # (rows_a, H + A) GRU input concat
    att_d_scr,           # (rows_a, A) decoder attention out
    *, bs, n_entities, n_agents, n_actions, H, A, num_h, e, inv_scale):
    f32 = jnp.float32

    # ----------------- ObsEncoder: fc1 + packed q/k/v projection -----------------
    x = x_ref[...]                                               # (bs*ne, edim)
    embed = jnp.maximum(
        jnp.dot(x, w1_ref[...], preferred_element_type=f32) + b1_ref[...], 0.0)
    qkv = (jnp.dot(embed, wqkv_e_ref[...], preferred_element_type=f32)
           + bqkv_e_ref[...])                                    # (bs*ne, 3A)
    q_e = qkv[:, 0 * A:1 * A]
    k_e = qkv[:, 1 * A:2 * A]
    v_e = jnp.maximum(qkv[:, 2 * A:3 * A], 0.0)

    amcol_f = amcol_ref[...]                                     # (bs*na, 1) f32
    am_col = amcol_f > 0.5
    am_row = amrow_ref[...]                                      # (bs, na) f32

    # --------- encoder attention: heads stay lane-resident, loop (batch, head) ---
    r_iota = lax.broadcasted_iota(jnp.int32, (n_agents, n_entities), 0)
    c_iota = lax.broadcasted_iota(jnp.int32, (n_agents, n_entities), 1)
    self_mask = r_iota == c_iota                                 # padded eye
    for b in range(bs):
        r0 = b * n_entities
        a0 = b * n_agents
        invalid_b = jnp.logical_or(obsm_ref[b] > 0.5, self_mask)  # (na, ne)
        # agent rows of the embedding go straight into the GRU-input concat scratch
        cat_scr[a0:a0 + n_agents, 0:H] = embed[r0:r0 + n_agents, :]
        for hd in range(num_h):
            c0 = hd * e
            o_bh = _masked_softmax_attn(
                q_e[r0:r0 + n_agents, c0:c0 + e],
                k_e[r0:r0 + n_entities, c0:c0 + e],
                v_e[r0:r0 + n_entities, c0:c0 + e],
                invalid_b, inv_scale)
            cat_scr[a0:a0 + n_agents, H + c0:H + c0 + e] = o_bh

    # --------------------- GRUCell (packed gates) + agent mask -------------------
    gru_in = cat_scr[...]                                        # (rows, H+A)
    h0 = h0_ref[...]                                             # (rows, H)
    gi = (jnp.dot(gru_in, gru_wi_ref[...], preferred_element_type=f32)
          + gru_bi_ref[...])                                     # (rows, 3H)
    gh = jnp.dot(h0, gru_wh_ref[...], preferred_element_type=f32) + gru_bh_ref[...]
    r_g = jax.nn.sigmoid(gi[:, 0 * H:1 * H] + gh[:, 0 * H:1 * H])
    z_g = jax.nn.sigmoid(gi[:, 1 * H:2 * H] + gh[:, 1 * H:2 * H])
    n_g = jnp.tanh(gi[:, 2 * H:3 * H] + r_g * gh[:, 2 * H:3 * H])
    h_new = (1.0 - z_g) * n_g + z_g * h0
    h_new = jnp.where(am_col, 0.0, h_new)                        # (rows, H)

    # ------------------------ QValueDecoder projections --------------------------
    act = jnp.maximum(
        jnp.dot(sa_ref[...], wact_ref[...], preferred_element_type=f32), 0.0)
    # single packed projection of h: [dec query | q_alone head | q_out head (h part)]
    hq = jnp.dot(h_new, hq_w_ref[...], preferred_element_type=f32) + hq_b_ref[...]
    q_d = hq[:, :A]
    kv = jnp.dot(act, wkv_d_ref[...], preferred_element_type=f32) + bkv_d_ref[...]
    k_d = kv[:, :A]
    v_d = jnp.maximum(kv[:, A:], 0.0)

    # ----- decoder attention: causal + pairwise scenario mask, loop (batch, head) -
    rr = lax.broadcasted_iota(jnp.int32, (n_agents, n_agents), 0)
    cc = lax.broadcasted_iota(jnp.int32, (n_agents, n_agents), 1)
    causal_invalid = cc > rr
    for b in range(bs):
        a0 = b * n_agents
        am_b_col = amcol_f[a0:a0 + n_agents, :] > 0.5            # (na, 1)
        am_b_row = am_row[b:b + 1, :] > 0.5                      # (1, na)
        invalid_b = jnp.logical_or(
            jnp.logical_or(causal_invalid, am_b_col), am_b_row)  # (na, na)
        for hd in range(num_h):
            c0 = hd * e
            o_bh = _masked_softmax_attn(
                q_d[a0:a0 + n_agents, c0:c0 + e],
                k_d[a0:a0 + n_agents, c0:c0 + e],
                v_d[a0:a0 + n_agents, c0:c0 + e],
                invalid_b, inv_scale)
            att_d_scr[a0:a0 + n_agents, c0:c0 + e] = o_bh

    # -------------------------- q heads (packed output) --------------------------
    extra = att_d_scr[...]                                       # (rows, A)
    tz = tz_ref[...]                                             # (rows, T)
    heads = hq[:, A:] + jnp.dot(tz, wz_ref[...],
                                preferred_element_type=f32)      # (rows, 2*n_actions)
    q_alone = jnp.where(am_col, 0.0, heads[:, :n_actions])
    base_out = heads[:, n_actions:]
    extra_term = jnp.dot(extra, wqo_a_ref[...], preferred_element_type=f32)

    # first-agent row mask built in-kernel (static bs -> tiny unrolled or chain)
    ridx = lax.broadcasted_iota(jnp.int32, (bs * n_agents, 1), 0)
    first = ridx == 0
    for b in range(1, bs):
        first = jnp.logical_or(first, ridx == b * n_agents)

    # interactive q: zeroed for the first agent and masked agents (as in torch);
    # total all_q = q_alone + q_int, so all_q for agent 0 equals q_alone.
    q_int = base_out + extra_term
    q_int = jnp.where(jnp.logical_or(first, am_col), 0.0, q_int)
    all_q = q_alone + q_int

    # lane-dense packed slab: [all_q | auxiliary_q | q_alone | q_int | h]
    out_ref[:, 0 * n_actions:1 * n_actions] = all_q
    out_ref[:, 2 * n_actions:3 * n_actions] = q_alone
    out_ref[:, 3 * n_actions:4 * n_actions] = q_int
    out_ref[:, 4 * n_actions:4 * n_actions + H] = h_new
    for b in range(bs):
        a0 = b * n_agents
        # auxiliary_q: agent 0's decoder attention output broadcast over agents
        out_ref[a0:a0 + n_agents, 1 * n_actions:2 * n_actions] = (
            base_out[a0:a0 + n_agents, :] + extra_term[a0:a0 + 1, :])


# ------------------------------ forward wrapper -------------------------------

def scvd_forward(params, inputs, onehot_actions, task_z, obs_mask,
                 scenario_mask, hidden_states, cfg):
    f32 = jnp.float32
    bs, n_entities, edim = inputs.shape
    n_agents = cfg['n_agents']
    n_actions = cfg['n_actions']
    H = cfg['rnn_hidden_dim']
    A = cfg['atten_dim']
    num_h = cfg['n_heads']
    e = A // num_h
    inv_scale = 1.0 / math.sqrt(e)
    rows_e = bs * n_entities
    rows_a = bs * n_agents

    # flat 2-D views (rows x features) + shifted-action construction (glue)
    x2 = inputs.reshape(rows_e, edim).astype(f32)
    sa = jnp.zeros((bs, n_agents, n_actions + 1), f32)
    sa = sa.at[:, 0, 0].set(1.0)
    sa = sa.at[:, 1:, 1:].set(onehot_actions[:, :-1, :].astype(f32))
    sa2 = sa.reshape(rows_a, n_actions + 1)
    tz2 = task_z.reshape(rows_a, -1).astype(f32)
    T = tz2.shape[-1]
    h0 = hidden_states.reshape(rows_a, H).astype(f32)
    obs_m = obs_mask[:, :n_agents, :].astype(f32)           # (bs, na, ne)  no head repeat
    am_row = scenario_mask[:, :n_agents].astype(f32)         # (bs, na)
    am_col = am_row.reshape(rows_a, 1)                       # (bs*na, 1)

    kernel = functools.partial(
        _scvd_fused_kernel, bs=bs, n_entities=n_entities, n_agents=n_agents,
        n_actions=n_actions, H=H, A=A, num_h=num_h, e=e, inv_scale=inv_scale)

    args = (x2, sa2, tz2, h0, obs_m, am_col, am_row,
            params['enc_w1'], params['enc_b1'],
            params['enc_wqkv'], params['enc_bqkv'],
            params['gru_wi'], params['gru_wh'], params['gru_bi'], params['gru_bh'],
            params['dec_wact'], params['hq_w'], params['hq_b'],
            params['dec_wkv'], params['dec_bkv'],
            params['head_wz'], params['qo_wa'])

    slab_w = 4 * n_actions + H

    # advisory cost estimate for XLA scheduling
    flops = 2 * (rows_e * edim * H + rows_e * H * 3 * A
                 + rows_a * ((H + A) * 3 * H + H * 3 * H)
                 + rows_a * ((n_actions + 1) * H + H * (A + 2 * n_actions)
                             + H * 2 * A + T * 2 * n_actions + A * n_actions)
                 + bs * num_h * 2 * e * (n_agents * n_entities + n_agents * n_agents))
    transcend = (rows_a * 3 * H
                 + bs * num_h * (n_agents * n_entities + n_agents * n_agents
                                 + 2 * n_agents))
    bytes_acc = 4 * (sum(int(math.prod(a.shape)) for a in args) + rows_a * slab_w)

    vmem = pl.BlockSpec(memory_space=pltpu.MemorySpace.VMEM)
    slab = pl.pallas_call(
        kernel,
        out_shape=jax.ShapeDtypeStruct((rows_a, slab_w), f32),
        in_specs=[vmem] * len(args),
        out_specs=vmem,
        scratch_shapes=[pltpu.VMEM((rows_a, H + A), f32),  # GRU-input concat
                        pltpu.VMEM((rows_a, A), f32)],     # decoder attention out
        cost_estimate=pl.CostEstimate(flops=int(flops),
                                      transcendentals=int(transcend),
                                      bytes_accessed=int(bytes_acc)),
    )(*args)

    all_q = slab[:, 0 * n_actions:1 * n_actions].reshape(bs, n_agents, n_actions)
    auxiliary_q = slab[:, 1 * n_actions:2 * n_actions].reshape(bs, n_agents, n_actions)
    all_q_alone = slab[:, 2 * n_actions:3 * n_actions].reshape(bs, n_agents, n_actions)
    all_q_interact = slab[:, 3 * n_actions:4 * n_actions].reshape(bs, n_agents, n_actions)
    h = slab[:, 4 * n_actions:].reshape(bs, n_agents, H)
    return all_q, auxiliary_q, all_q_alone, all_q_interact, h


# ----------------------------- parameter init ---------------------------------

def init_params(key, cfg, input_dim):
    H = cfg['rnn_hidden_dim']
    A = cfg['atten_dim']
    n_actions = cfg['n_actions']
    T = cfg['task_rep_dim']
    shapes = {
        # ObsEncoder (q|k|v packed along the output axis)
        'enc_w1': (input_dim, H), 'enc_b1': (1, H),
        'enc_wqkv': (H, 3 * A), 'enc_bqkv': (1, 3 * A),
        # GRUCell: gates r|z|n packed; input rows are [embed (H) | atten (A)]
        'gru_wi': (H + A, 3 * H), 'gru_wh': (H, 3 * H),
        'gru_bi': (1, 3 * H), 'gru_bh': (1, 3 * H),
        # QValueDecoder
        'dec_wact': (n_actions + 1, H),
        # packed h-side projection: [dec query (A) | q_alone (n_actions) | q_out h-part]
        'hq_w': (H, A + 2 * n_actions), 'hq_b': (1, A + 2 * n_actions),
        'dec_wkv': (H, 2 * A), 'dec_bkv': (1, 2 * A),
        # task_z part of [q_alone | q_out] heads, and q_out attention part
        'head_wz': (T, 2 * n_actions),
        'qo_wa': (A, n_actions),
    }
    names = sorted(shapes.keys())
    keys = jax.random.split(key, len(names))
    params = {}
    for k_, name in zip(keys, names):
        params[name] = 0.1 * jax.random.normal(k_, shapes[name], jnp.float32)
    return params


# ---------------------------------- main ---------------------------------------

if __name__ == "__main__":
    cfg = dict(n_agents=3, n_actions=6, rnn_hidden_dim=32, n_heads=4,
               atten_dim=32, task_rep_dim=8)
    bs, n_entities, input_dim = 2, 5, 16

    key = jax.random.PRNGKey(0)
    kp, k1, k2, k3, k4, k5, k6 = jax.random.split(key, 7)
    params = init_params(kp, cfg, input_dim)

    inputs = jax.random.normal(k1, (bs, n_entities, input_dim), jnp.float32)
    act_idx = jax.random.randint(k2, (bs, cfg['n_agents']), 0, cfg['n_actions'])
    onehot_actions = jax.nn.one_hot(act_idx, cfg['n_actions'], dtype=jnp.float32)
    task_z = jax.random.normal(k3, (bs, cfg['n_agents'], cfg['task_rep_dim']),
                               jnp.float32)
    obs_mask = (jax.random.uniform(k4, (bs, n_entities, n_entities)) < 0.3
                ).astype(jnp.float32)
    scenario_mask = (jax.random.uniform(k5, (bs, n_entities)) < 0.2
                     ).astype(jnp.float32)
    hidden_states = 0.1 * jax.random.normal(
        k6, (bs, cfg['n_agents'], cfg['rnn_hidden_dim']), jnp.float32)

    fwd = jax.jit(lambda p, *a: scvd_forward(p, *a, cfg=cfg))
    outs = fwd(params, inputs, onehot_actions, task_z, obs_mask,
               scenario_mask, hidden_states)
    jax.block_until_ready(outs)

    all_q, auxiliary_q, all_q_alone, all_q_interact, h = outs
    assert all_q.shape == (bs, cfg['n_agents'], cfg['n_actions'])
    assert auxiliary_q.shape == (bs, cfg['n_agents'], cfg['n_actions'])
    assert all_q_alone.shape == (bs, cfg['n_agents'], cfg['n_actions'])
    assert all_q_interact.shape == (bs, cfg['n_agents'], cfg['n_actions'])
    assert h.shape == (bs, cfg['n_agents'], cfg['rnn_hidden_dim'])
    assert all(bool(jnp.all(jnp.isfinite(o))) for o in outs)
    print("KERNEL_OK")
</pallas_src>

<mosaic_0001>
module attributes {stable_mosaic.version = 11 : i64} {
  func.func @_scvd_fused_kernel(%arg0: memref<10x16xf32, #tpu.memory_space<vmem>>, %arg1: memref<6x7xf32, #tpu.memory_space<vmem>>, %arg2: memref<6x8xf32, #tpu.memory_space<vmem>>, %arg3: memref<6x32xf32, #tpu.memory_space<vmem>>, %arg4: memref<2x3x5xf32, #tpu.memory_space<vmem>>, %arg5: memref<6x1xf32, #tpu.memory_space<vmem>>, %arg6: memref<2x3xf32, #tpu.memory_space<vmem>>, %arg7: memref<16x32xf32, #tpu.memory_space<vmem>>, %arg8: memref<1x32xf32, #tpu.memory_space<vmem>>, %arg9: memref<32x96xf32, #tpu.memory_space<vmem>>, %arg10: memref<1x96xf32, #tpu.memory_space<vmem>>, %arg11: memref<64x96xf32, #tpu.memory_space<vmem>>, %arg12: memref<32x96xf32, #tpu.memory_space<vmem>>, %arg13: memref<1x96xf32, #tpu.memory_space<vmem>>, %arg14: memref<1x96xf32, #tpu.memory_space<vmem>>, %arg15: memref<7x32xf32, #tpu.memory_space<vmem>>, %arg16: memref<32x44xf32, #tpu.memory_space<vmem>>, %arg17: memref<1x44xf32, #tpu.memory_space<vmem>>, %arg18: memref<32x64xf32, #tpu.memory_space<vmem>>, %arg19: memref<1x64xf32, #tpu.memory_space<vmem>>, %arg20: memref<8x12xf32, #tpu.memory_space<vmem>>, %arg21: memref<32x6xf32, #tpu.memory_space<vmem>>, %arg22: memref<6x56xf32, #tpu.memory_space<vmem>>, %arg23: memref<6x64xf32, #tpu.memory_space<vmem>>, %arg24: memref<6x32xf32, #tpu.memory_space<vmem>>) attributes {dimension_semantics = [], scalar_prefetch = 0 : i64, scratch_operands = 2 : i64, tpu.core_type = #tpu.core_type<tc>} {
    %c0 = arith.constant 0 : index
    %c0_0 = arith.constant 0 : index
    %0 = vector.load %arg0[%c0, %c0_0] : memref<10x16xf32, #tpu.memory_space<vmem>>, vector<10x16xf32>
    %c0_1 = arith.constant 0 : index
    %c0_2 = arith.constant 0 : index
    %1 = vector.load %arg7[%c0_1, %c0_2] : memref<16x32xf32, #tpu.memory_space<vmem>>, vector<16x32xf32>
    %cst = arith.constant dense<0.000000e+00> : vector<10x32xf32>
    %2 = tpu.matmul %0, %1, %cst {dimension_numbers = #tpu.dot_dimension_numbers<[1], [0], [0], [1], [0, 0, 1, 1], [], []>} : vector<10x16xf32>, vector<16x32xf32>, vector<10x32xf32> -> vector<10x32xf32>
    %c0_3 = arith.constant 0 : index
    %c0_4 = arith.constant 0 : index
    %3 = vector.load %arg8[%c0_3, %c0_4] : memref<1x32xf32, #tpu.memory_space<vmem>>, vector<1x32xf32>
    %4 = vector.broadcast %3 : vector<1x32xf32> to vector<10x32xf32>
    %5 = arith.addf %2, %4 : vector<10x32xf32>
    %cst_5 = arith.constant 0.000000e+00 : f32
    %6 = vector.broadcast %cst_5 : f32 to vector<10x32xf32>
    %7 = arith.maximumf %5, %6 : vector<10x32xf32>
    %c0_6 = arith.constant 0 : index
    %c0_7 = arith.constant 0 : index
    %8 = vector.load %arg9[%c0_6, %c0_7] : memref<32x96xf32, #tpu.memory_space<vmem>>, vector<32x96xf32>
    %cst_8 = arith.constant dense<0.000000e+00> : vector<10x96xf32>
    %9 = tpu.matmul %7, %8, %cst_8 {dimension_numbers = #tpu.dot_dimension_numbers<[1], [0], [0], [1], [0, 0, 1, 1], [], []>} : vector<10x32xf32>, vector<32x96xf32>, vector<10x96xf32> -> vector<10x96xf32>
    %c0_9 = arith.constant 0 : index
    %c0_10 = arith.constant 0 : index
    %10 = vector.load %arg10[%c0_9, %c0_10] : memref<1x96xf32, #tpu.memory_space<vmem>>, vector<1x96xf32>
    %11 = vector.broadcast %10 : vector<1x96xf32> to vector<10x96xf32>
    %12 = arith.addf %9, %11 : vector<10x96xf32>
    %13 = vector.extract_strided_slice %12 {offsets = [0, 0], sizes = [10, 32], strides = [1, 1]} : vector<10x96xf32> to vector<10x32xf32>
    %14 = vector.extract_strided_slice %12 {offsets = [0, 32], sizes = [10, 32], strides = [1, 1]} : vector<10x96xf32> to vector<10x32xf32>
    %15 = vector.extract_strided_slice %12 {offsets = [0, 64], sizes = [10, 32], strides = [1, 1]} : vector<10x96xf32> to vector<10x32xf32>
    %cst_11 = arith.constant 0.000000e+00 : f32
    %16 = vector.broadcast %cst_11 : f32 to vector<10x32xf32>
    %17 = arith.maximumf %15, %16 : vector<10x32xf32>
    %c0_12 = arith.constant 0 : index
    %c0_13 = arith.constant 0 : index
    %18 = vector.load %arg5[%c0_12, %c0_13] : memref<6x1xf32, #tpu.memory_space<vmem>>, vector<6x1xf32>
    %cst_14 = arith.constant 5.000000e-01 : f32
    %19 = vector.broadcast %cst_14 : f32 to vector<6x1xf32>
    %20 = arith.cmpf ogt, %18, %19 : vector<6x1xf32>
    %c0_15 = arith.constant 0 : index
    %c0_16 = arith.constant 0 : index
    %21 = vector.load %arg6[%c0_15, %c0_16] : memref<2x3xf32, #tpu.memory_space<vmem>>, vector<2x3xf32>
    %22 = tpu.iota {dimensions = array<i32: 0>} : vector<3x5xi32>
    %23 = tpu.iota {dimensions = array<i32: 1>} : vector<3x5xi32>
    %24 = arith.cmpi eq, %22, %23 : vector<3x5xi32>
    %c0_17 = arith.constant 0 : index
    %c0_18 = arith.constant 0 : index
    %c0_19 = arith.constant 0 : index
    %25 = vector.load %arg4[%c0_17, %c0_18, %c0_19] : memref<2x3x5xf32, #tpu.memory_space<vmem>>, vector<1x3x5xf32>
    %26 = vector.shape_cast %25 : vector<1x3x5xf32> to vector<3x5xf32>
    %cst_20 = arith.constant 5.000000e-01 : f32
    %27 = vector.broadcast %cst_20 : f32 to vector<3x5xf32>
    %28 = arith.cmpf ogt, %26, %27 : vector<3x5xf32>
    %29 = arith.ori %28, %24 : vector<3x5xi1>
    %30 = vector.extract_strided_slice %7 {offsets = [0, 0], sizes = [3, 32], strides = [1, 1]} : vector<10x32xf32> to vector<3x32xf32>
    %c0_21 = arith.constant 0 : index
    %c0_22 = arith.constant 0 : index
    %31 = vector.load %arg23[%c0_21, %c0_22] : memref<6x64xf32, #tpu.memory_space<vmem>>, vector<3x32xf32>
    tpu.vector_store %arg23[%c0_21, %c0_22], %30 {strides = array<i32>} : memref<6x64xf32, #tpu.memory_space<vmem>>, vector<3x32xf32>,
    %32 = vector.extract_strided_slice %13 {offsets = [0, 0], sizes = [3, 8], strides = [1, 1]} : vector<10x32xf32> to vector<3x8xf32>
    %33 = vector.extract_strided_slice %14 {offsets = [0, 0], sizes = [5, 8], strides = [1, 1]} : vector<10x32xf32> to vector<5x8xf32>
    %34 = vector.extract_strided_slice %17 {offsets = [0, 0], sizes = [5, 8], strides = [1, 1]} : vector<10x32xf32> to vector<5x8xf32>
    %cst_23 = arith.constant dense<0.000000e+00> : vector<3x5xf32>
    %35 = tpu.matmul %32, %33, %cst_23 {dimension_numbers = #tpu.dot_dimension_numbers<[1], [1], [0], [0], [0, 0, 1, 0], [], []>} : vector<3x8xf32>, vector<5x8xf32>, vector<3x5xf32> -> vector<3x5xf32>
    %cst_24 = arith.constant 0.353553385 : f32
    %36 = vector.broadcast %cst_24 : f32 to vector<3x5xf32>
    %37 = arith.mulf %35, %36 : vector<3x5xf32>
    %cst_25 = arith.constant -1.000000e+30 : f32
    %38 = vector.broadcast %cst_25 : f32 to vector<3x5xf32>
    %39 = arith.select %29, %38, %37 : vector<3x5xi1>, vector<3x5xf32>
    %cst_26 = arith.constant dense<0xFF800000> : vector<3xf32>
    %40 = vector.multi_reduction <maximumf>, %39, %cst_26 [1] : vector<3x5xf32> to vector<3xf32>
    %41 = vector.shape_cast %40 : vector<3xf32> to vector<3x1xf32>
    %42 = vector.broadcast %41 : vector<3x1xf32> to vector<3x5xf32>
    %43 = arith.subf %39, %42 : vector<3x5xf32>
    %44 = math.exp %43 : vector<3x5xf32>
    %cst_27 = arith.constant 0.000000e+00 : f32
    %45 = vector.broadcast %cst_27 : f32 to vector<3x5xf32>
    %46 = arith.select %29, %45, %44 : vector<3x5xi1>, vector<3x5xf32>
    %cst_28 = arith.constant dense<0.000000e+00> : vector<3xf32>
    %47 = vector.multi_reduction <add>, %46, %cst_28 [1] : vector<3x5xf32> to vector<3xf32>
    %48 = vector.shape_cast %47 : vector<3xf32> to vector<3x1xf32>
    %cst_29 = arith.constant 1.000000e-30 : f32
    %49 = vector.broadcast %cst_29 : f32 to vector<3x1xf32>
    %50 = arith.maximumf %48, %49 : vector<3x1xf32>
    %51 = tpu.reciprocal %50 {approx = true} : vector<3x1xf32> -> vector<3x1xf32>
    %52 = vector.broadcast %51 : vector<3x1xf32> to vector<3x5xf32>
    %53 = arith.mulf %46, %52 : vector<3x5xf32>
    %cst_30 = arith.constant dense<0.000000e+00> : vector<3x8xf32>
    %54 = tpu.matmul %53, %34, %cst_30 {dimension_numbers = #tpu.dot_dimension_numbers<[1], [0], [0], [1], [0, 0, 1, 1], [], []>} : vector<3x5xf32>, vector<5x8xf32>, vector<3x8xf32> -> vector<3x8xf32>
    %c0_31 = arith.constant 0 : index
    %c32 = arith.constant 32 : index
    %55 = vector.load %arg23[%c0_31, %c32] : memref<6x64xf32, #tpu.memory_space<vmem>>, vector<3x8xf32>
    tpu.vector_store %arg23[%c0_31, %c32], %54 {strides = array<i32>} : memref<6x64xf32, #tpu.memory_space<vmem>>, vector<3x8xf32>,
    %56 = vector.extract_strided_slice %13 {offsets = [0, 8], sizes = [3, 8], strides = [1, 1]} : vector<10x32xf32> to vector<3x8xf32>
    %57 = vector.extract_strided_slice %14 {offsets = [0, 8], sizes = [5, 8], strides = [1, 1]} : vector<10x32xf32> to vector<5x8xf32>
    %58 = vector.extract_strided_slice %17 {offsets = [0, 8], sizes = [5, 8], strides = [1, 1]} : vector<10x32xf32> to vector<5x8xf32>
    %cst_32 = arith.constant dense<0.000000e+00> : vector<3x5xf32>
    %59 = tpu.matmul %56, %57, %cst_32 {dimension_numbers = #tpu.dot_dimension_numbers<[1], [1], [0], [0], [0, 0, 1, 0], [], []>} : vector<3x8xf32>, vector<5x8xf32>, vector<3x5xf32> -> vector<3x5xf32>
    %cst_33 = arith.constant 0.353553385 : f32
    %60 = vector.broadcast %cst_33 : f32 to vector<3x5xf32>
    %61 = arith.mulf %59, %60 : vector<3x5xf32>
    %cst_34 = arith.constant -1.000000e+30 : f32
    %62 = vector.broadcast %cst_34 : f32 to vector<3x5xf32>
    %63 = arith.select %29, %62, %61 : vector<3x5xi1>, vector<3x5xf32>
    %cst_35 = arith.constant dense<0xFF800000> : vector<3xf32>
    %64 = vector.multi_reduction <maximumf>, %63, %cst_35 [1] : vector<3x5xf32> to vector<3xf32>
    %65 = vector.shape_cast %64 : vector<3xf32> to vector<3x1xf32>
    %66 = vector.broadcast %65 : vector<3x1xf32> to vector<3x5xf32>
    %67 = arith.subf %63, %66 : vector<3x5xf32>
    %68 = math.exp %67 : vector<3x5xf32>
    %cst_36 = arith.constant 0.000000e+00 : f32
    %69 = vector.broadcast %cst_36 : f32 to vector<3x5xf32>
    %70 = arith.select %29, %69, %68 : vector<3x5xi1>, vector<3x5xf32>
    %cst_37 = arith.constant dense<0.000000e+00> : vector<3xf32>
    %71 = vector.multi_reduction <add>, %70, %cst_37 [1] : vector<3x5xf32> to vector<3xf32>
    %72 = vector.shape_cast %71 : vector<3xf32> to vector<3x1xf32>
    %cst_38 = arith.constant 1.000000e-30 : f32
    %73 = vector.broadcast %cst_38 : f32 to vector<3x1xf32>
    %74 = arith.maximumf %72, %73 : vector<3x1xf32>
    %75 = tpu.reciprocal %74 {approx = true} : vector<3x1xf32> -> vector<3x1xf32>
    %76 = vector.broadcast %75 : vector<3x1xf32> to vector<3x5xf32>
    %77 = arith.mulf %70, %76 : vector<3x5xf32>
    %cst_39 = arith.constant dense<0.000000e+00> : vector<3x8xf32>
    %78 = tpu.matmul %77, %58, %cst_39 {dimension_numbers = #tpu.dot_dimension_numbers<[1], [0], [0], [1], [0, 0, 1, 1], [], []>} : vector<3x5xf32>, vector<5x8xf32>, vector<3x8xf32> -> vector<3x8xf32>
    %c0_40 = arith.constant 0 : index
    %c40 = arith.constant 40 : index
    %79 = vector.load %arg23[%c0_40, %c40] : memref<6x64xf32, #tpu.memory_space<vmem>>, vector<3x8xf32>
    tpu.vector_store %arg23[%c0_40, %c40], %78 {strides = array<i32>} : memref<6x64xf32, #tpu.memory_space<vmem>>, vector<3x8xf32>,
    %80 = vector.extract_strided_slice %13 {offsets = [0, 16], sizes = [3, 8], strides = [1, 1]} : vector<10x32xf32> to vector<3x8xf32>
    %81 = vector.extract_strided_slice %14 {offsets = [0, 16], sizes = [5, 8], strides = [1, 1]} : vector<10x32xf32> to vector<5x8xf32>
    %82 = vector.extract_strided_slice %17 {offsets = [0, 16], sizes = [5, 8], strides = [1, 1]} : vector<10x32xf32> to vector<5x8xf32>
    %cst_41 = arith.constant dense<0.000000e+00> : vector<3x5xf32>
    %83 = tpu.matmul %80, %81, %cst_41 {dimension_numbers = #tpu.dot_dimension_numbers<[1], [1], [0], [0], [0, 0, 1, 0], [], []>} : vector<3x8xf32>, vector<5x8xf32>, vector<3x5xf32> -> vector<3x5xf32>
    %cst_42 = arith.constant 0.353553385 : f32
    %84 = vector.broadcast %cst_42 : f32 to vector<3x5xf32>
    %85 = arith.mulf %83, %84 : vector<3x5xf32>
    %cst_43 = arith.constant -1.000000e+30 : f32
    %86 = vector.broadcast %cst_43 : f32 to vector<3x5xf32>
    %87 = arith.select %29, %86, %85 : vector<3x5xi1>, vector<3x5xf32>
    %cst_44 = arith.constant dense<0xFF800000> : vector<3xf32>
    %88 = vector.multi_reduction <maximumf>, %87, %cst_44 [1] : vector<3x5xf32> to vector<3xf32>
    %89 = vector.shape_cast %88 : vector<3xf32> to vector<3x1xf32>
    %90 = vector.broadcast %89 : vector<3x1xf32> to vector<3x5xf32>
    %91 = arith.subf %87, %90 : vector<3x5xf32>
    %92 = math.exp %91 : vector<3x5xf32>
    %cst_45 = arith.constant 0.000000e+00 : f32
    %93 = vector.broadcast %cst_45 : f32 to vector<3x5xf32>
    %94 = arith.select %29, %93, %92 : vector<3x5xi1>, vector<3x5xf32>
    %cst_46 = arith.constant dense<0.000000e+00> : vector<3xf32>
    %95 = vector.multi_reduction <add>, %94, %cst_46 [1] : vector<3x5xf32> to vector<3xf32>
    %96 = vector.shape_cast %95 : vector<3xf32> to vector<3x1xf32>
    %cst_47 = arith.constant 1.000000e-30 : f32
    %97 = vector.broadcast %cst_47 : f32 to vector<3x1xf32>
    %98 = arith.maximumf %96, %97 : vector<3x1xf32>
    %99 = tpu.reciprocal %98 {approx = true} : vector<3x1xf32> -> vector<3x1xf32>
    %100 = vector.broadcast %99 : vector<3x1xf32> to vector<3x5xf32>
    %101 = arith.mulf %94, %100 : vector<3x5xf32>
    %cst_48 = arith.constant dense<0.000000e+00> : vector<3x8xf32>
    %102 = tpu.matmul %101, %82, %cst_48 {dimension_numbers = #tpu.dot_dimension_numbers<[1], [0], [0], [1], [0, 0, 1, 1], [], []>} : vector<3x5xf32>, vector<5x8xf32>, vector<3x8xf32> -> vector<3x8xf32>
    %c0_49 = arith.constant 0 : index
    %c48 = arith.constant 48 : index
    %103 = vector.load %arg23[%c0_49, %c48] : memref<6x64xf32, #tpu.memory_space<vmem>>, vector<3x8xf32>
    tpu.vector_store %arg23[%c0_49, %c48], %102 {strides = array<i32>} : memref<6x64xf32, #tpu.memory_space<vmem>>, vector<3x8xf32>,
    %104 = vector.extract_strided_slice %13 {offsets = [0, 24], sizes = [3, 8], strides = [1, 1]} : vector<10x32xf32> to vector<3x8xf32>
    %105 = vector.extract_strided_slice %14 {offsets = [0, 24], sizes = [5, 8], strides = [1, 1]} : vector<10x32xf32> to vector<5x8xf32>
    %106 = vector.extract_strided_slice %17 {offsets = [0, 24], sizes = [5, 8], strides = [1, 1]} : vector<10x32xf32> to vector<5x8xf32>
    %cst_50 = arith.constant dense<0.000000e+00> : vector<3x5xf32>
    %107 = tpu.matmul %104, %105, %cst_50 {dimension_numbers = #tpu.dot_dimension_numbers<[1], [1], [0], [0], [0, 0, 1, 0], [], []>} : vector<3x8xf32>, vector<5x8xf32>, vector<3x5xf32> -> vector<3x5xf32>
    %cst_51 = arith.constant 0.353553385 : f32
    %108 = vector.broadcast %cst_51 : f32 to vector<3x5xf32>
    %109 = arith.mulf %107, %108 : vector<3x5xf32>
    %cst_52 = arith.constant -1.000000e+30 : f32
    %110 = vector.broadcast %cst_52 : f32 to vector<3x5xf32>
    %111 = arith.select %29, %110, %109 : vector<3x5xi1>, vector<3x5xf32>
    %cst_53 = arith.constant dense<0xFF800000> : vector<3xf32>
    %112 = vector.multi_reduction <maximumf>, %111, %cst_53 [1] : vector<3x5xf32> to vector<3xf32>
    %113 = vector.shape_cast %112 : vector<3xf32> to vector<3x1xf32>
    %114 = vector.broadcast %113 : vector<3x1xf32> to vector<3x5xf32>
    %115 = arith.subf %111, %114 : vector<3x5xf32>
    %116 = math.exp %115 : vector<3x5xf32>
    %cst_54 = arith.constant 0.000000e+00 : f32
    %117 = vector.broadcast %cst_54 : f32 to vector<3x5xf32>
    %118 = arith.select %29, %117, %116 : vector<3x5xi1>, vector<3x5xf32>
    %cst_55 = arith.constant dense<0.000000e+00> : vector<3xf32>
    %119 = vector.multi_reduction <add>, %118, %cst_55 [1] : vector<3x5xf32> to vector<3xf32>
    %120 = vector.shape_cast %119 : vector<3xf32> to vector<3x1xf32>
    %cst_56 = arith.constant 1.000000e-30 : f32
    %121 = vector.broadcast %cst_56 : f32 to vector<3x1xf32>
    %122 = arith.maximumf %120, %121 : vector<3x1xf32>
    %123 = tpu.reciprocal %122 {approx = true} : vector<3x1xf32> -> vector<3x1xf32>
    %124 = vector.broadcast %123 : vector<3x1xf32> to vector<3x5xf32>
    %125 = arith.mulf %118, %124 : vector<3x5xf32>
    %cst_57 = arith.constant dense<0.000000e+00> : vector<3x8xf32>
    %126 = tpu.matmul %125, %106, %cst_57 {dimension_numbers = #tpu.dot_dimension_numbers<[1], [0], [0], [1], [0, 0, 1, 1], [], []>} : vector<3x5xf32>, vector<5x8xf32>, vector<3x8xf32> -> vector<3x8xf32>
    %c0_58 = arith.constant 0 : index
    %c56 = arith.constant 56 : index
    %127 = vector.load %arg23[%c0_58, %c56] : memref<6x64xf32, #tpu.memory_space<vmem>>, vector<3x8xf32>
    tpu.vector_store %arg23[%c0_58, %c56], %126 {strides = array<i32>} : memref<6x64xf32, #tpu.memory_space<vmem>>, vector<3x8xf32>,
    %c1 = arith.constant 1 : index
    %c0_59 = arith.constant 0 : index
    %c0_60 = arith.constant 0 : index
    %128 = vector.load %arg4[%c1, %c0_59, %c0_60] : memref<2x3x5xf32, #tpu.memory_space<vmem>>, vector<1x3x5xf32>
    %129 = vector.shape_cast %128 : vector<1x3x5xf32> to vector<3x5xf32>
    %cst_61 = arith.constant 5.000000e-01 : f32
    %130 = vector.broadcast %cst_61 : f32 to vector<3x5xf32>
    %131 = arith.cmpf ogt, %129, %130 : vector<3x5xf32>
    %132 = arith.ori %131, %24 : vector<3x5xi1>
    %133 = vector.extract_strided_slice %7 {offsets = [5, 0], sizes = [3, 32], strides = [1, 1]} : vector<10x32xf32> to vector<3x32xf32>
    %c3 = arith.constant 3 : index
    %c0_62 = arith.constant 0 : index
    %134 = vector.load %arg23[%c3, %c0_62] : memref<6x64xf32, #tpu.memory_space<vmem>>, vector<3x32xf32>
    tpu.vector_store %arg23[%c3, %c0_62], %133 {strides = array<i32>} : memref<6x64xf32, #tpu.memory_space<vmem>>, vector<3x32xf32>,
    %135 = vector.extract_strided_slice %13 {offsets = [5, 0], sizes = [3, 8], strides = [1, 1]} : vector<10x32xf32> to vector<3x8xf32>
    %136 = vector.extract_strided_slice %14 {offsets = [5, 0], sizes = [5, 8], strides = [1, 1]} : vector<10x32xf32> to vector<5x8xf32>
    %137 = vector.extract_strided_slice %17 {offsets = [5, 0], sizes = [5, 8], strides = [1, 1]} : vector<10x32xf32> to vector<5x8xf32>
    %cst_63 = arith.constant dense<0.000000e+00> : vector<3x5xf32>
    %138 = tpu.matmul %135, %136, %cst_63 {dimension_numbers = #tpu.dot_dimension_numbers<[1], [1], [0], [0], [0, 0, 1, 0], [], []>} : vector<3x8xf32>, vector<5x8xf32>, vector<3x5xf32> -> vector<3x5xf32>
    %cst_64 = arith.constant 0.353553385 : f32
    %139 = vector.broadcast %cst_64 : f32 to vector<3x5xf32>
    %140 = arith.mulf %138, %139 : vector<3x5xf32>
    %cst_65 = arith.constant -1.000000e+30 : f32
    %141 = vector.broadcast %cst_65 : f32 to vector<3x5xf32>
    %142 = arith.select %132, %141, %140 : vector<3x5xi1>, vector<3x5xf32>
    %cst_66 = arith.constant dense<0xFF800000> : vector<3xf32>
    %143 = vector.multi_reduction <maximumf>, %142, %cst_66 [1] : vector<3x5xf32> to vector<3xf32>
    %144 = vector.shape_cast %143 : vector<3xf32> to vector<3x1xf32>
    %145 = vector.broadcast %144 : vector<3x1xf32> to vector<3x5xf32>
    %146 = arith.subf %142, %145 : vector<3x5xf32>
    %147 = math.exp %146 : vector<3x5xf32>
    %cst_67 = arith.constant 0.000000e+00 : f32
    %148 = vector.broadcast %cst_67 : f32 to vector<3x5xf32>
    %149 = arith.select %132, %148, %147 : vector<3x5xi1>, vector<3x5xf32>
    %cst_68 = arith.constant dense<0.000000e+00> : vector<3xf32>
    %150 = vector.multi_reduction <add>, %149, %cst_68 [1] : vector<3x5xf32> to vector<3xf32>
    %151 = vector.shape_cast %150 : vector<3xf32> to vector<3x1xf32>
    %cst_69 = arith.constant 1.000000e-30 : f32
    %152 = vector.broadcast %cst_69 : f32 to vector<3x1xf32>
    %153 = arith.maximumf %151, %152 : vector<3x1xf32>
    %154 = tpu.reciprocal %153 {approx = true} : vector<3x1xf32> -> vector<3x1xf32>
    %155 = vector.broadcast %154 : vector<3x1xf32> to vector<3x5xf32>
    %156 = arith.mulf %149, %155 : vector<3x5xf32>
    %cst_70 = arith.constant dense<0.000000e+00> : vector<3x8xf32>
    %157 = tpu.matmul %156, %137, %cst_70 {dimension_numbers = #tpu.dot_dimension_numbers<[1], [0], [0], [1], [0, 0, 1, 1], [], []>} : vector<3x5xf32>, vector<5x8xf32>, vector<3x8xf32> -> vector<3x8xf32>
    %c3_71 = arith.constant 3 : index
    %c32_72 = arith.constant 32 : index
    %158 = vector.load %arg23[%c3_71, %c32_72] : memref<6x64xf32, #tpu.memory_space<vmem>>, vector<3x8xf32>
    tpu.vector_store %arg23[%c3_71, %c32_72], %157 {strides = array<i32>} : memref<6x64xf32, #tpu.memory_space<vmem>>, vector<3x8xf32>,
    %159 = vector.extract_strided_slice %13 {offsets = [5, 8], sizes = [3, 8], strides = [1, 1]} : vector<10x32xf32> to vector<3x8xf32>
    %160 = vector.extract_strided_slice %14 {offsets = [5, 8], sizes = [5, 8], strides = [1, 1]} : vector<10x32xf32> to vector<5x8xf32>
    %161 = vector.extract_strided_slice %17 {offsets = [5, 8], sizes = [5, 8], strides = [1, 1]} : vector<10x32xf32> to vector<5x8xf32>
    %cst_73 = arith.constant dense<0.000000e+00> : vector<3x5xf32>
    %162 = tpu.matmul %159, %160, %cst_73 {dimension_numbers = #tpu.dot_dimension_numbers<[1], [1], [0], [0], [0, 0, 1, 0], [], []>} : vector<3x8xf32>, vector<5x8xf32>, vector<3x5xf32> -> vector<3x5xf32>
    %cst_74 = arith.constant 0.353553385 : f32
    %163 = vector.broadcast %cst_74 : f32 to vector<3x5xf32>
    %164 = arith.mulf %162, %163 : vector<3x5xf32>
    %cst_75 = arith.constant -1.000000e+30 : f32
    %165 = vector.broadcast %cst_75 : f32 to vector<3x5xf32>
    %166 = arith.select %132, %165, %164 : vector<3x5xi1>, vector<3x5xf32>
    %cst_76 = arith.constant dense<0xFF800000> : vector<3xf32>
    %167 = vector.multi_reduction <maximumf>, %166, %cst_76 [1] : vector<3x5xf32> to vector<3xf32>
    %168 = vector.shape_cast %167 : vector<3xf32> to vector<3x1xf32>
    %169 = vector.broadcast %168 : vector<3x1xf32> to vector<3x5xf32>
    %170 = arith.subf %166, %169 : vector<3x5xf32>
    %171 = math.exp %170 : vector<3x5xf32>
    %cst_77 = arith.constant 0.000000e+00 : f32
    %172 = vector.broadcast %cst_77 : f32 to vector<3x5xf32>
    %173 = arith.select %132, %172, %171 : vector<3x5xi1>, vector<3x5xf32>
    %cst_78 = arith.constant dense<0.000000e+00> : vector<3xf32>
    %174 = vector.multi_reduction <add>, %173, %cst_78 [1] : vector<3x5xf32> to vector<3xf32>
    %175 = vector.shape_cast %174 : vector<3xf32> to vector<3x1xf32>
    %cst_79 = arith.constant 1.000000e-30 : f32
    %176 = vector.broadcast %cst_79 : f32 to vector<3x1xf32>
    %177 = arith.maximumf %175, %176 : vector<3x1xf32>
    %178 = tpu.reciprocal %177 {approx = true} : vector<3x1xf32> -> vector<3x1xf32>
    %179 = vector.broadcast %178 : vector<3x1xf32> to vector<3x5xf32>
    %180 = arith.mulf %173, %179 : vector<3x5xf32>
    %cst_80 = arith.constant dense<0.000000e+00> : vector<3x8xf32>
    %181 = tpu.matmul %180, %161, %cst_80 {dimension_numbers = #tpu.dot_dimension_numbers<[1], [0], [0], [1], [0, 0, 1, 1], [], []>} : vector<3x5xf32>, vector<5x8xf32>, vector<3x8xf32> -> vector<3x8xf32>
    %c3_81 = arith.constant 3 : index
    %c40_82 = arith.constant 40 : index
    %182 = vector.load %arg23[%c3_81, %c40_82] : memref<6x64xf32, #tpu.memory_space<vmem>>, vector<3x8xf32>
    tpu.vector_store %arg23[%c3_81, %c40_82], %181 {strides = array<i32>} : memref<6x64xf32, #tpu.memory_space<vmem>>, vector<3x8xf32>,
    %183 = vector.extract_strided_slice %13 {offsets = [5, 16], sizes = [3, 8], strides = [1, 1]} : vector<10x32xf32> to vector<3x8xf32>
    %184 = vector.extract_strided_slice %14 {offsets = [5, 16], sizes = [5, 8], strides = [1, 1]} : vector<10x32xf32> to vector<5x8xf32>
    %185 = vector.extract_strided_slice %17 {offsets = [5, 16], sizes = [5, 8], strides = [1, 1]} : vector<10x32xf32> to vector<5x8xf32>
    %cst_83 = arith.constant dense<0.000000e+00> : vector<3x5xf32>
    %186 = tpu.matmul %183, %184, %cst_83 {dimension_numbers = #tpu.dot_dimension_numbers<[1], [1], [0], [0], [0, 0, 1, 0], [], []>} : vector<3x8xf32>, vector<5x8xf32>, vector<3x5xf32> -> vector<3x5xf32>
    %cst_84 = arith.constant 0.353553385 : f32
    %187 = vector.broadcast %cst_84 : f32 to vector<3x5xf32>
    %188 = arith.mulf %186, %187 : vector<3x5xf32>
    %cst_85 = arith.constant -1.000000e+30 : f32
    %189 = vector.broadcast %cst_85 : f32 to vector<3x5xf32>
    %190 = arith.select %132, %189, %188 : vector<3x5xi1>, vector<3x5xf32>
    %cst_86 = arith.constant dense<0xFF800000> : vector<3xf32>
    %191 = vector.multi_reduction <maximumf>, %190, %cst_86 [1] : vector<3x5xf32> to vector<3xf32>
    %192 = vector.shape_cast %191 : vector<3xf32> to vector<3x1xf32>
    %193 = vector.broadcast %192 : vector<3x1xf32> to vector<3x5xf32>
    %194 = arith.subf %190, %193 : vector<3x5xf32>
    %195 = math.exp %194 : vector<3x5xf32>
    %cst_87 = arith.constant 0.000000e+00 : f32
    %196 = vector.broadcast %cst_87 : f32 to vector<3x5xf32>
    %197 = arith.select %132, %196, %195 : vector<3x5xi1>, vector<3x5xf32>
    %cst_88 = arith.constant dense<0.000000e+00> : vector<3xf32>
    %198 = vector.multi_reduction <add>, %197, %cst_88 [1] : vector<3x5xf32> to vector<3xf32>
    %199 = vector.shape_cast %198 : vector<3xf32> to vector<3x1xf32>
    %cst_89 = arith.constant 1.000000e-30 : f32
    %200 = vector.broadcast %cst_89 : f32 to vector<3x1xf32>
    %201 = arith.maximumf %199, %200 : vector<3x1xf32>
    %202 = tpu.reciprocal %201 {approx = true} : vector<3x1xf32> -> vector<3x1xf32>
    %203 = vector.broadcast %202 : vector<3x1xf32> to vector<3x5xf32>
    %204 = arith.mulf %197, %203 : vector<3x5xf32>
    %cst_90 = arith.constant dense<0.000000e+00> : vector<3x8xf32>
    %205 = tpu.matmul %204, %185, %cst_90 {dimension_numbers = #tpu.dot_dimension_numbers<[1], [0], [0], [1], [0, 0, 1, 1], [], []>} : vector<3x5xf32>, vector<5x8xf32>, vector<3x8xf32> -> vector<3x8xf32>
    %c3_91 = arith.constant 3 : index
    %c48_92 = arith.constant 48 : index
    %206 = vector.load %arg23[%c3_91, %c48_92] : memref<6x64xf32, #tpu.memory_space<vmem>>, vector<3x8xf32>
    tpu.vector_store %arg23[%c3_91, %c48_92], %205 {strides = array<i32>} : memref<6x64xf32, #tpu.memory_space<vmem>>, vector<3x8xf32>,
    %207 = vector.extract_strided_slice %13 {offsets = [5, 24], sizes = [3, 8], strides = [1, 1]} : vector<10x32xf32> to vector<3x8xf32>
    %208 = vector.extract_strided_slice %14 {offsets = [5, 24], sizes = [5, 8], strides = [1, 1]} : vector<10x32xf32> to vector<5x8xf32>
    %209 = vector.extract_strided_slice %17 {offsets = [5, 24], sizes = [5, 8], strides = [1, 1]} : vector<10x32xf32> to vector<5x8xf32>
    %cst_93 = arith.constant dense<0.000000e+00> : vector<3x5xf32>
    %210 = tpu.matmul %207, %208, %cst_93 {dimension_numbers = #tpu.dot_dimension_numbers<[1], [1], [0], [0], [0, 0, 1, 0], [], []>} : vector<3x8xf32>, vector<5x8xf32>, vector<3x5xf32> -> vector<3x5xf32>
    %cst_94 = arith.constant 0.353553385 : f32
    %211 = vector.broadcast %cst_94 : f32 to vector<3x5xf32>
    %212 = arith.mulf %210, %211 : vector<3x5xf32>
    %cst_95 = arith.constant -1.000000e+30 : f32
    %213 = vector.broadcast %cst_95 : f32 to vector<3x5xf32>
    %214 = arith.select %132, %213, %212 : vector<3x5xi1>, vector<3x5xf32>
    %cst_96 = arith.constant dense<0xFF800000> : vector<3xf32>
    %215 = vector.multi_reduction <maximumf>, %214, %cst_96 [1] : vector<3x5xf32> to vector<3xf32>
    %216 = vector.shape_cast %215 : vector<3xf32> to vector<3x1xf32>
    %217 = vector.broadcast %216 : vector<3x1xf32> to vector<3x5xf32>
    %218 = arith.subf %214, %217 : vector<3x5xf32>
    %219 = math.exp %218 : vector<3x5xf32>
    %cst_97 = arith.constant 0.000000e+00 : f32
    %220 = vector.broadcast %cst_97 : f32 to vector<3x5xf32>
    %221 = arith.select %132, %220, %219 : vector<3x5xi1>, vector<3x5xf32>
    %cst_98 = arith.constant dense<0.000000e+00> : vector<3xf32>
    %222 = vector.multi_reduction <add>, %221, %cst_98 [1] : vector<3x5xf32> to vector<3xf32>
    %223 = vector.shape_cast %222 : vector<3xf32> to vector<3x1xf32>
    %cst_99 = arith.constant 1.000000e-30 : f32
    %224 = vector.broadcast %cst_99 : f32 to vector<3x1xf32>
    %225 = arith.maximumf %223, %224 : vector<3x1xf32>
    %226 = tpu.reciprocal %225 {approx = true} : vector<3x1xf32> -> vector<3x1xf32>
    %227 = vector.broadcast %226 : vector<3x1xf32> to vector<3x5xf32>
    %228 = arith.mulf %221, %227 : vector<3x5xf32>
    %cst_100 = arith.constant dense<0.000000e+00> : vector<3x8xf32>
    %229 = tpu.matmul %228, %209, %cst_100 {dimension_numbers = #tpu.dot_dimension_numbers<[1], [0], [0], [1], [0, 0, 1, 1], [], []>} : vector<3x5xf32>, vector<5x8xf32>, vector<3x8xf32> -> vector<3x8xf32>
    %c3_101 = arith.constant 3 : index
    %c56_102 = arith.constant 56 : index
    %230 = vector.load %arg23[%c3_101, %c56_102] : memref<6x64xf32, #tpu.memory_space<vmem>>, vector<3x8xf32>
    tpu.vector_store %arg23[%c3_101, %c56_102], %229 {strides = array<i32>} : memref<6x64xf32, #tpu.memory_space<vmem>>, vector<3x8xf32>,
    %c0_103 = arith.constant 0 : index
    %c0_104 = arith.constant 0 : index
    %231 = vector.load %arg23[%c0_103, %c0_104] : memref<6x64xf32, #tpu.memory_space<vmem>>, vector<6x64xf32>
    %c0_105 = arith.constant 0 : index
    %c0_106 = arith.constant 0 : index
    %232 = vector.load %arg3[%c0_105, %c0_106] : memref<6x32xf32, #tpu.memory_space<vmem>>, vector<6x32xf32>
    %c0_107 = arith.constant 0 : index
    %c0_108 = arith.constant 0 : index
    %233 = vector.load %arg11[%c0_107, %c0_108] : memref<64x96xf32, #tpu.memory_space<vmem>>, vector<64x96xf32>
    %cst_109 = arith.constant dense<0.000000e+00> : vector<6x96xf32>
    %234 = tpu.matmul %231, %233, %cst_109 {dimension_numbers = #tpu.dot_dimension_numbers<[1], [0], [0], [1], [0, 0, 1, 1], [], []>} : vector<6x64xf32>, vector<64x96xf32>, vector<6x96xf32> -> vector<6x96xf32>
    %c0_110 = arith.constant 0 : index
    %c0_111 = arith.constant 0 : index
    %235 = vector.load %arg13[%c0_110, %c0_111] : memref<1x96xf32, #tpu.memory_space<vmem>>, vector<1x96xf32>
    %236 = vector.broadcast %235 : vector<1x96xf32> to vector<6x96xf32>
    %237 = arith.addf %234, %236 : vector<6x96xf32>
    %c0_112 = arith.constant 0 : index
    %c0_113 = arith.constant 0 : index
    %238 = vector.load %arg12[%c0_112, %c0_113] : memref<32x96xf32, #tpu.memory_space<vmem>>, vector<32x96xf32>
    %cst_114 = arith.constant dense<0.000000e+00> : vector<6x96xf32>
    %239 = tpu.matmul %232, %238, %cst_114 {dimension_numbers = #tpu.dot_dimension_numbers<[1], [0], [0], [1], [0, 0, 1, 1], [], []>} : vector<6x32xf32>, vector<32x96xf32>, vector<6x96xf32> -> vector<6x96xf32>
    %c0_115 = arith.constant 0 : index
    %c0_116 = arith.constant 0 : index
    %240 = vector.load %arg14[%c0_115, %c0_116] : memref<1x96xf32, #tpu.memory_space<vmem>>, vector<1x96xf32>
    %241 = vector.broadcast %240 : vector<1x96xf32> to vector<6x96xf32>
    %242 = arith.addf %239, %241 : vector<6x96xf32>
    %243 = vector.extract_strided_slice %237 {offsets = [0, 0], sizes = [6, 32], strides = [1, 1]} : vector<6x96xf32> to vector<6x32xf32>
    %244 = vector.extract_strided_slice %242 {offsets = [0, 0], sizes = [6, 32], strides = [1, 1]} : vector<6x96xf32> to vector<6x32xf32>
    %245 = arith.addf %243, %244 : vector<6x32xf32>
    %246 = arith.negf %245 : vector<6x32xf32>
    %247 = math.exp %246 : vector<6x32xf32>
    %cst_117 = arith.constant 1.000000e+00 : f32
    %248 = vector.broadcast %cst_117 : f32 to vector<6x32xf32>
    %249 = arith.addf %248, %247 : vector<6x32xf32>
    %250 = arith.divf %248, %249 : vector<6x32xf32>
    %251 = vector.extract_strided_slice %237 {offsets = [0, 32], sizes = [6, 32], strides = [1, 1]} : vector<6x96xf32> to vector<6x32xf32>
    %252 = vector.extract_strided_slice %242 {offsets = [0, 32], sizes = [6, 32], strides = [1, 1]} : vector<6x96xf32> to vector<6x32xf32>
    %253 = arith.addf %251, %252 : vector<6x32xf32>
    %254 = arith.negf %253 : vector<6x32xf32>
    %255 = math.exp %254 : vector<6x32xf32>
    %cst_118 = arith.constant 1.000000e+00 : f32
    %256 = vector.broadcast %cst_118 : f32 to vector<6x32xf32>
    %257 = arith.addf %256, %255 : vector<6x32xf32>
    %258 = arith.divf %256, %257 : vector<6x32xf32>
    %259 = vector.extract_strided_slice %237 {offsets = [0, 64], sizes = [6, 32], strides = [1, 1]} : vector<6x96xf32> to vector<6x32xf32>
    %260 = vector.extract_strided_slice %242 {offsets = [0, 64], sizes = [6, 32], strides = [1, 1]} : vector<6x96xf32> to vector<6x32xf32>
    %261 = arith.mulf %250, %260 : vector<6x32xf32>
    %262 = arith.addf %259, %261 : vector<6x32xf32>
    %263 = math.tanh %262 : vector<6x32xf32>
    %cst_119 = arith.constant 1.000000e+00 : f32
    %264 = vector.broadcast %cst_119 : f32 to vector<6x32xf32>
    %265 = arith.subf %264, %258 : vector<6x32xf32>
    %266 = arith.mulf %265, %263 : vector<6x32xf32>
    %267 = arith.mulf %258, %232 : vector<6x32xf32>
    %268 = arith.addf %266, %267 : vector<6x32xf32>
    %cst_120 = arith.constant 0.000000e+00 : f32
    %269 = vector.shape_cast %20 : vector<6x1xi1> to vector<6x1xi1>
    %270 = vector.broadcast %269 : vector<6x1xi1> to vector<6x32xi1>
    %271 = vector.broadcast %cst_120 : f32 to vector<6x32xf32>
    %272 = arith.select %270, %271, %268 : vector<6x32xi1>, vector<6x32xf32>
    %c0_121 = arith.constant 0 : index
    %c0_122 = arith.constant 0 : index
    %273 = vector.load %arg1[%c0_121, %c0_122] : memref<6x7xf32, #tpu.memory_space<vmem>>, vector<6x7xf32>
    %c0_123 = arith.constant 0 : index
    %c0_124 = arith.constant 0 : index
    %274 = vector.load %arg15[%c0_123, %c0_124] : memref<7x32xf32, #tpu.memory_space<vmem>>, vector<7x32xf32>
    %cst_125 = arith.constant dense<0.000000e+00> : vector<6x32xf32>
    %275 = tpu.matmul %273, %274, %cst_125 {dimension_numbers = #tpu.dot_dimension_numbers<[1], [0], [0], [1], [0, 0, 1, 1], [], []>} : vector<6x7xf32>, vector<7x32xf32>, vector<6x32xf32> -> vector<6x32xf32>
    %cst_126 = arith.constant 0.000000e+00 : f32
    %276 = vector.broadcast %cst_126 : f32 to vector<6x32xf32>
    %277 = arith.maximumf %275, %276 : vector<6x32xf32>
    %c0_127 = arith.constant 0 : index
    %c0_128 = arith.constant 0 : index
    %278 = vector.load %arg16[%c0_127, %c0_128] : memref<32x44xf32, #tpu.memory_space<vmem>>, vector<32x44xf32>
    %cst_129 = arith.constant dense<0.000000e+00> : vector<6x44xf32>
    %279 = tpu.matmul %272, %278, %cst_129 {dimension_numbers = #tpu.dot_dimension_numbers<[1], [0], [0], [1], [0, 0, 1, 1], [], []>} : vector<6x32xf32>, vector<32x44xf32>, vector<6x44xf32> -> vector<6x44xf32>
    %c0_130 = arith.constant 0 : index
    %c0_131 = arith.constant 0 : index
    %280 = vector.load %arg17[%c0_130, %c0_131] : memref<1x44xf32, #tpu.memory_space<vmem>>, vector<1x44xf32>
    %281 = vector.broadcast %280 : vector<1x44xf32> to vector<6x44xf32>
    %282 = arith.addf %279, %281 : vector<6x44xf32>
    %283 = vector.extract_strided_slice %282 {offsets = [0, 0], sizes = [6, 32], strides = [1, 1]} : vector<6x44xf32> to vector<6x32xf32>
    %c0_132 = arith.constant 0 : index
    %c0_133 = arith.constant 0 : index
    %284 = vector.load %arg18[%c0_132, %c0_133] : memref<32x64xf32, #tpu.memory_space<vmem>>, vector<32x64xf32>
    %cst_134 = arith.constant dense<0.000000e+00> : vector<6x64xf32>
    %285 = tpu.matmul %277, %284, %cst_134 {dimension_numbers = #tpu.dot_dimension_numbers<[1], [0], [0], [1], [0, 0, 1, 1], [], []>} : vector<6x32xf32>, vector<32x64xf32>, vector<6x64xf32> -> vector<6x64xf32>
    %c0_135 = arith.constant 0 : index
    %c0_136 = arith.constant 0 : index
    %286 = vector.load %arg19[%c0_135, %c0_136] : memref<1x64xf32, #tpu.memory_space<vmem>>, vector<1x64xf32>
    %287 = vector.broadcast %286 : vector<1x64xf32> to vector<6x64xf32>
    %288 = arith.addf %285, %287 : vector<6x64xf32>
    %289 = vector.extract_strided_slice %288 {offsets = [0, 0], sizes = [6, 32], strides = [1, 1]} : vector<6x64xf32> to vector<6x32xf32>
    %290 = vector.extract_strided_slice %288 {offsets = [0, 32], sizes = [6, 32], strides = [1, 1]} : vector<6x64xf32> to vector<6x32xf32>
    %cst_137 = arith.constant 0.000000e+00 : f32
    %291 = vector.broadcast %cst_137 : f32 to vector<6x32xf32>
    %292 = arith.maximumf %290, %291 : vector<6x32xf32>
    %293 = tpu.iota {dimensions = array<i32: 0>} : vector<3x3xi32>
    %294 = tpu.iota {dimensions = array<i32: 1>} : vector<3x3xi32>
    %295 = arith.cmpi sgt, %294, %293 : vector<3x3xi32>
    %296 = vector.extract_strided_slice %18 {offsets = [0, 0], sizes = [3, 1], strides = [1, 1]} : vector<6x1xf32> to vector<3x1xf32>
    %cst_138 = arith.constant 5.000000e-01 : f32
    %297 = vector.broadcast %cst_138 : f32 to vector<3x1xf32>
    %298 = arith.cmpf ogt, %296, %297 : vector<3x1xf32>
    %299 = vector.extract_strided_slice %21 {offsets = [0, 0], sizes = [1, 3], strides = [1, 1]} : vector<2x3xf32> to vector<1x3xf32>
    %cst_139 = arith.constant 5.000000e-01 : f32
    %300 = vector.broadcast %cst_139 : f32 to vector<1x3xf32>
    %301 = arith.cmpf ogt, %299, %300 : vector<1x3xf32>
    %302 = vector.broadcast %298 : vector<3x1xi1> to vector<3x3xi1>
    %303 = arith.ori %295, %302 : vector<3x3xi1>
    %304 = vector.broadcast %301 : vector<1x3xi1> to vector<3x3xi1>
    %305 = arith.ori %303, %304 : vector<3x3xi1>
    %306 = vector.extract_strided_slice %283 {offsets = [0, 0], sizes = [3, 8], strides = [1, 1]} : vector<6x32xf32> to vector<3x8xf32>
    %307 = vector.extract_strided_slice %289 {offsets = [0, 0], sizes = [3, 8], strides = [1, 1]} : vector<6x32xf32> to vector<3x8xf32>
    %308 = vector.extract_strided_slice %292 {offsets = [0, 0], sizes = [3, 8], strides = [1, 1]} : vector<6x32xf32> to vector<3x8xf32>
    %cst_140 = arith.constant dense<0.000000e+00> : vector<3x3xf32>
    %309 = tpu.matmul %306, %307, %cst_140 {dimension_numbers = #tpu.dot_dimension_numbers<[1], [1], [0], [0], [0, 0, 1, 0], [], []>} : vector<3x8xf32>, vector<3x8xf32>, vector<3x3xf32> -> vector<3x3xf32>
    %cst_141 = arith.constant 0.353553385 : f32
    %310 = vector.broadcast %cst_141 : f32 to vector<3x3xf32>
    %311 = arith.mulf %309, %310 : vector<3x3xf32>
    %cst_142 = arith.constant -1.000000e+30 : f32
    %312 = vector.broadcast %cst_142 : f32 to vector<3x3xf32>
    %313 = arith.select %305, %312, %311 : vector<3x3xi1>, vector<3x3xf32>
    %cst_143 = arith.constant dense<0xFF800000> : vector<3xf32>
    %314 = vector.multi_reduction <maximumf>, %313, %cst_143 [1] : vector<3x3xf32> to vector<3xf32>
    %315 = vector.shape_cast %314 : vector<3xf32> to vector<3x1xf32>
    %316 = vector.broadcast %315 : vector<3x1xf32> to vector<3x3xf32>
    %317 = arith.subf %313, %316 : vector<3x3xf32>
    %318 = math.exp %317 : vector<3x3xf32>
    %cst_144 = arith.constant 0.000000e+00 : f32
    %319 = vector.broadcast %cst_144 : f32 to vector<3x3xf32>
    %320 = arith.select %305, %319, %318 : vector<3x3xi1>, vector<3x3xf32>
    %cst_145 = arith.constant dense<0.000000e+00> : vector<3xf32>
    %321 = vector.multi_reduction <add>, %320, %cst_145 [1] : vector<3x3xf32> to vector<3xf32>
    %322 = vector.shape_cast %321 : vector<3xf32> to vector<3x1xf32>
    %cst_146 = arith.constant 1.000000e-30 : f32
    %323 = vector.broadcast %cst_146 : f32 to vector<3x1xf32>
    %324 = arith.maximumf %322, %323 : vector<3x1xf32>
    %325 = tpu.reciprocal %324 {approx = true} : vector<3x1xf32> -> vector<3x1xf32>
    %326 = vector.broadcast %325 : vector<3x1xf32> to vector<3x3xf32>
    %327 = arith.mulf %320, %326 : vector<3x3xf32>
    %cst_147 = arith.constant dense<0.000000e+00> : vector<3x8xf32>
    %328 = tpu.matmul %327, %308, %cst_147 {dimension_numbers = #tpu.dot_dimension_numbers<[1], [0], [0], [1], [0, 0, 1, 1], [], []>} : vector<3x3xf32>, vector<3x8xf32>, vector<3x8xf32> -> vector<3x8xf32>
    %c0_148 = arith.constant 0 : index
    %c0_149 = arith.constant 0 : index
    %329 = vector.load %arg24[%c0_148, %c0_149] : memref<6x32xf32, #tpu.memory_space<vmem>>, vector<3x8xf32>
    tpu.vector_store %arg24[%c0_148, %c0_149], %328 {strides = array<i32>} : memref<6x32xf32, #tpu.memory_space<vmem>>, vector<3x8xf32>,
    %330 = vector.extract_strided_slice %283 {offsets = [0, 8], sizes = [3, 8], strides = [1, 1]} : vector<6x32xf32> to vector<3x8xf32>
    %331 = vector.extract_strided_slice %289 {offsets = [0, 8], sizes = [3, 8], strides = [1, 1]} : vector<6x32xf32> to vector<3x8xf32>
    %332 = vector.extract_strided_slice %292 {offsets = [0, 8], sizes = [3, 8], strides = [1, 1]} : vector<6x32xf32> to vector<3x8xf32>
    %cst_150 = arith.constant dense<0.000000e+00> : vector<3x3xf32>
    %333 = tpu.matmul %330, %331, %cst_150 {dimension_numbers = #tpu.dot_dimension_numbers<[1], [1], [0], [0], [0, 0, 1, 0], [], []>} : vector<3x8xf32>, vector<3x8xf32>, vector<3x3xf32> -> vector<3x3xf32>
    %cst_151 = arith.constant 0.353553385 : f32
    %334 = vector.broadcast %cst_151 : f32 to vector<3x3xf32>
    %335 = arith.mulf %333, %334 : vector<3x3xf32>
    %cst_152 = arith.constant -1.000000e+30 : f32
    %336 = vector.broadcast %cst_152 : f32 to vector<3x3xf32>
    %337 = arith.select %305, %336, %335 : vector<3x3xi1>, vector<3x3xf32>
    %cst_153 = arith.constant dense<0xFF800000> : vector<3xf32>
    %338 = vector.multi_reduction <maximumf>, %337, %cst_153 [1] : vector<3x3xf32> to vector<3xf32>
    %339 = vector.shape_cast %338 : vector<3xf32> to vector<3x1xf32>
    %340 = vector.broadcast %339 : vector<3x1xf32> to vector<3x3xf32>
    %341 = arith.subf %337, %340 : vector<3x3xf32>
    %342 = math.exp %341 : vector<3x3xf32>
    %cst_154 = arith.constant 0.000000e+00 : f32
    %343 = vector.broadcast %cst_154 : f32 to vector<3x3xf32>
    %344 = arith.select %305, %343, %342 : vector<3x3xi1>, vector<3x3xf32>
    %cst_155 = arith.constant dense<0.000000e+00> : vector<3xf32>
    %345 = vector.multi_reduction <add>, %344, %cst_155 [1] : vector<3x3xf32> to vector<3xf32>
    %346 = vector.shape_cast %345 : vector<3xf32> to vector<3x1xf32>
    %cst_156 = arith.constant 1.000000e-30 : f32
    %347 = vector.broadcast %cst_156 : f32 to vector<3x1xf32>
    %348 = arith.maximumf %346, %347 : vector<3x1xf32>
    %349 = tpu.reciprocal %348 {approx = true} : vector<3x1xf32> -> vector<3x1xf32>
    %350 = vector.broadcast %349 : vector<3x1xf32> to vector<3x3xf32>
    %351 = arith.mulf %344, %350 : vector<3x3xf32>
    %cst_157 = arith.constant dense<0.000000e+00> : vector<3x8xf32>
    %352 = tpu.matmul %351, %332, %cst_157 {dimension_numbers = #tpu.dot_dimension_numbers<[1], [0], [0], [1], [0, 0, 1, 1], [], []>} : vector<3x3xf32>, vector<3x8xf32>, vector<3x8xf32> -> vector<3x8xf32>
    %c0_158 = arith.constant 0 : index
    %c8 = arith.constant 8 : index
    %353 = vector.load %arg24[%c0_158, %c8] : memref<6x32xf32, #tpu.memory_space<vmem>>, vector<3x8xf32>
    tpu.vector_store %arg24[%c0_158, %c8], %352 {strides = array<i32>} : memref<6x32xf32, #tpu.memory_space<vmem>>, vector<3x8xf32>,
    %354 = vector.extract_strided_slice %283 {offsets = [0, 16], sizes = [3, 8], strides = [1, 1]} : vector<6x32xf32> to vector<3x8xf32>
    %355 = vector.extract_strided_slice %289 {offsets = [0, 16], sizes = [3, 8], strides = [1, 1]} : vector<6x32xf32> to vector<3x8xf32>
    %356 = vector.extract_strided_slice %292 {offsets = [0, 16], sizes = [3, 8], strides = [1, 1]} : vector<6x32xf32> to vector<3x8xf32>
    %cst_159 = arith.constant dense<0.000000e+00> : vector<3x3xf32>
    %357 = tpu.matmul %354, %355, %cst_159 {dimension_numbers = #tpu.dot_dimension_numbers<[1], [1], [0], [0], [0, 0, 1, 0], [], []>} : vector<3x8xf32>, vector<3x8xf32>, vector<3x3xf32> -> vector<3x3xf32>
    %cst_160 = arith.constant 0.353553385 : f32
    %358 = vector.broadcast %cst_160 : f32 to vector<3x3xf32>
    %359 = arith.mulf %357, %358 : vector<3x3xf32>
    %cst_161 = arith.constant -1.000000e+30 : f32
    %360 = vector.broadcast %cst_161 : f32 to vector<3x3xf32>
    %361 = arith.select %305, %360, %359 : vector<3x3xi1>, vector<3x3xf32>
    %cst_162 = arith.constant dense<0xFF800000> : vector<3xf32>
    %362 = vector.multi_reduction <maximumf>, %361, %cst_162 [1] : vector<3x3xf32> to vector<3xf32>
    %363 = vector.shape_cast %362 : vector<3xf32> to vector<3x1xf32>
    %364 = vector.broadcast %363 : vector<3x1xf32> to vector<3x3xf32>
    %365 = arith.subf %361, %364 : vector<3x3xf32>
    %366 = math.exp %365 : vector<3x3xf32>
    %cst_163 = arith.constant 0.000000e+00 : f32
    %367 = vector.broadcast %cst_163 : f32 to vector<3x3xf32>
    %368 = arith.select %305, %367, %366 : vector<3x3xi1>, vector<3x3xf32>
    %cst_164 = arith.constant dense<0.000000e+00> : vector<3xf32>
    %369 = vector.multi_reduction <add>, %368, %cst_164 [1] : vector<3x3xf32> to vector<3xf32>
    %370 = vector.shape_cast %369 : vector<3xf32> to vector<3x1xf32>
    %cst_165 = arith.constant 1.000000e-30 : f32
    %371 = vector.broadcast %cst_165 : f32 to vector<3x1xf32>
    %372 = arith.maximumf %370, %371 : vector<3x1xf32>
    %373 = tpu.reciprocal %372 {approx = true} : vector<3x1xf32> -> vector<3x1xf32>
    %374 = vector.broadcast %373 : vector<3x1xf32> to vector<3x3xf32>
    %375 = arith.mulf %368, %374 : vector<3x3xf32>
    %cst_166 = arith.constant dense<0.000000e+00> : vector<3x8xf32>
    %376 = tpu.matmul %375, %356, %cst_166 {dimension_numbers = #tpu.dot_dimension_numbers<[1], [0], [0], [1], [0, 0, 1, 1], [], []>} : vector<3x3xf32>, vector<3x8xf32>, vector<3x8xf32> -> vector<3x8xf32>
    %c0_167 = arith.constant 0 : index
    %c16 = arith.constant 16 : index
    %377 = vector.load %arg24[%c0_167, %c16] : memref<6x32xf32, #tpu.memory_space<vmem>>, vector<3x8xf32>
    tpu.vector_store %arg24[%c0_167, %c16], %376 {strides = array<i32>} : memref<6x32xf32, #tpu.memory_space<vmem>>, vector<3x8xf32>,
    %378 = vector.extract_strided_slice %283 {offsets = [0, 24], sizes = [3, 8], strides = [1, 1]} : vector<6x32xf32> to vector<3x8xf32>
    %379 = vector.extract_strided_slice %289 {offsets = [0, 24], sizes = [3, 8], strides = [1, 1]} : vector<6x32xf32> to vector<3x8xf32>
    %380 = vector.extract_strided_slice %292 {offsets = [0, 24], sizes = [3, 8], strides = [1, 1]} : vector<6x32xf32> to vector<3x8xf32>
    %cst_168 = arith.constant dense<0.000000e+00> : vector<3x3xf32>
    %381 = tpu.matmul %378, %379, %cst_168 {dimension_numbers = #tpu.dot_dimension_numbers<[1], [1], [0], [0], [0, 0, 1, 0], [], []>} : vector<3x8xf32>, vector<3x8xf32>, vector<3x3xf32> -> vector<3x3xf32>
    %cst_169 = arith.constant 0.353553385 : f32
    %382 = vector.broadcast %cst_169 : f32 to vector<3x3xf32>
    %383 = arith.mulf %381, %382 : vector<3x3xf32>
    %cst_170 = arith.constant -1.000000e+30 : f32
    %384 = vector.broadcast %cst_170 : f32 to vector<3x3xf32>
    %385 = arith.select %305, %384, %383 : vector<3x3xi1>, vector<3x3xf32>
    %cst_171 = arith.constant dense<0xFF800000> : vector<3xf32>
    %386 = vector.multi_reduction <maximumf>, %385, %cst_171 [1] : vector<3x3xf32> to vector<3xf32>
    %387 = vector.shape_cast %386 : vector<3xf32> to vector<3x1xf32>
    %388 = vector.broadcast %387 : vector<3x1xf32> to vector<3x3xf32>
    %389 = arith.subf %385, %388 : vector<3x3xf32>
    %390 = math.exp %389 : vector<3x3xf32>
    %cst_172 = arith.constant 0.000000e+00 : f32
    %391 = vector.broadcast %cst_172 : f32 to vector<3x3xf32>
    %392 = arith.select %305, %391, %390 : vector<3x3xi1>, vector<3x3xf32>
    %cst_173 = arith.constant dense<0.000000e+00> : vector<3xf32>
    %393 = vector.multi_reduction <add>, %392, %cst_173 [1] : vector<3x3xf32> to vector<3xf32>
    %394 = vector.shape_cast %393 : vector<3xf32> to vector<3x1xf32>
    %cst_174 = arith.constant 1.000000e-30 : f32
    %395 = vector.broadcast %cst_174 : f32 to vector<3x1xf32>
    %396 = arith.maximumf %394, %395 : vector<3x1xf32>
    %397 = tpu.reciprocal %396 {approx = true} : vector<3x1xf32> -> vector<3x1xf32>
    %398 = vector.broadcast %397 : vector<3x1xf32> to vector<3x3xf32>
    %399 = arith.mulf %392, %398 : vector<3x3xf32>
    %cst_175 = arith.constant dense<0.000000e+00> : vector<3x8xf32>
    %400 = tpu.matmul %399, %380, %cst_175 {dimension_numbers = #tpu.dot_dimension_numbers<[1], [0], [0], [1], [0, 0, 1, 1], [], []>} : vector<3x3xf32>, vector<3x8xf32>, vector<3x8xf32> -> vector<3x8xf32>
    %c0_176 = arith.constant 0 : index
    %c24 = arith.constant 24 : index
    %401 = vector.load %arg24[%c0_176, %c24] : memref<6x32xf32, #tpu.memory_space<vmem>>, vector<3x8xf32>
    tpu.vector_store %arg24[%c0_176, %c24], %400 {strides = array<i32>} : memref<6x32xf32, #tpu.memory_space<vmem>>, vector<3x8xf32>,
    %402 = vector.extract_strided_slice %18 {offsets = [3, 0], sizes = [3, 1], strides = [1, 1]} : vector<6x1xf32> to vector<3x1xf32>
    %cst_177 = arith.constant 5.000000e-01 : f32
    %403 = vector.broadcast %cst_177 : f32 to vector<3x1xf32>
    %404 = arith.cmpf ogt, %402, %403 : vector<3x1xf32>
    %405 = vector.extract_strided_slice %21 {offsets = [1, 0], sizes = [1, 3], strides = [1, 1]} : vector<2x3xf32> to vector<1x3xf32>
    %cst_178 = arith.constant 5.000000e-01 : f32
    %406 = vector.broadcast %cst_178 : f32 to vector<1x3xf32>
    %407 = arith.cmpf ogt, %405, %406 : vector<1x3xf32>
    %408 = vector.broadcast %404 : vector<3x1xi1> to vector<3x3xi1>
    %409 = arith.ori %295, %408 : vector<3x3xi1>
    %410 = vector.broadcast %407 : vector<1x3xi1> to vector<3x3xi1>
    %411 = arith.ori %409, %410 : vector<3x3xi1>
    %412 = vector.extract_strided_slice %283 {offsets = [3, 0], sizes = [3, 8], strides = [1, 1]} : vector<6x32xf32> to vector<3x8xf32>
    %413 = vector.extract_strided_slice %289 {offsets = [3, 0], sizes = [3, 8], strides = [1, 1]} : vector<6x32xf32> to vector<3x8xf32>
    %414 = vector.extract_strided_slice %292 {offsets = [3, 0], sizes = [3, 8], strides = [1, 1]} : vector<6x32xf32> to vector<3x8xf32>
    %cst_179 = arith.constant dense<0.000000e+00> : vector<3x3xf32>
    %415 = tpu.matmul %412, %413, %cst_179 {dimension_numbers = #tpu.dot_dimension_numbers<[1], [1], [0], [0], [0, 0, 1, 0], [], []>} : vector<3x8xf32>, vector<3x8xf32>, vector<3x3xf32> -> vector<3x3xf32>
    %cst_180 = arith.constant 0.353553385 : f32
    %416 = vector.broadcast %cst_180 : f32 to vector<3x3xf32>
    %417 = arith.mulf %415, %416 : vector<3x3xf32>
    %cst_181 = arith.constant -1.000000e+30 : f32
    %418 = vector.broadcast %cst_181 : f32 to vector<3x3xf32>
    %419 = arith.select %411, %418, %417 : vector<3x3xi1>, vector<3x3xf32>
    %cst_182 = arith.constant dense<0xFF800000> : vector<3xf32>
    %420 = vector.multi_reduction <maximumf>, %419, %cst_182 [1] : vector<3x3xf32> to vector<3xf32>
    %421 = vector.shape_cast %420 : vector<3xf32> to vector<3x1xf32>
    %422 = vector.broadcast %421 : vector<3x1xf32> to vector<3x3xf32>
    %423 = arith.subf %419, %422 : vector<3x3xf32>
    %424 = math.exp %423 : vector<3x3xf32>
    %cst_183 = arith.constant 0.000000e+00 : f32
    %425 = vector.broadcast %cst_183 : f32 to vector<3x3xf32>
    %426 = arith.select %411, %425, %424 : vector<3x3xi1>, vector<3x3xf32>
    %cst_184 = arith.constant dense<0.000000e+00> : vector<3xf32>
    %427 = vector.multi_reduction <add>, %426, %cst_184 [1] : vector<3x3xf32> to vector<3xf32>
    %428 = vector.shape_cast %427 : vector<3xf32> to vector<3x1xf32>
    %cst_185 = arith.constant 1.000000e-30 : f32
    %429 = vector.broadcast %cst_185 : f32 to vector<3x1xf32>
    %430 = arith.maximumf %428, %429 : vector<3x1xf32>
    %431 = tpu.reciprocal %430 {approx = true} : vector<3x1xf32> -> vector<3x1xf32>
    %432 = vector.broadcast %431 : vector<3x1xf32> to vector<3x3xf32>
    %433 = arith.mulf %426, %432 : vector<3x3xf32>
    %cst_186 = arith.constant dense<0.000000e+00> : vector<3x8xf32>
    %434 = tpu.matmul %433, %414, %cst_186 {dimension_numbers = #tpu.dot_dimension_numbers<[1], [0], [0], [1], [0, 0, 1, 1], [], []>} : vector<3x3xf32>, vector<3x8xf32>, vector<3x8xf32> -> vector<3x8xf32>
    %c3_187 = arith.constant 3 : index
    %c0_188 = arith.constant 0 : index
    %435 = vector.load %arg24[%c3_187, %c0_188] : memref<6x32xf32, #tpu.memory_space<vmem>>, vector<3x8xf32>
    tpu.vector_store %arg24[%c3_187, %c0_188], %434 {strides = array<i32>} : memref<6x32xf32, #tpu.memory_space<vmem>>, vector<3x8xf32>,
    %436 = vector.extract_strided_slice %283 {offsets = [3, 8], sizes = [3, 8], strides = [1, 1]} : vector<6x32xf32> to vector<3x8xf32>
    %437 = vector.extract_strided_slice %289 {offsets = [3, 8], sizes = [3, 8], strides = [1, 1]} : vector<6x32xf32> to vector<3x8xf32>
    %438 = vector.extract_strided_slice %292 {offsets = [3, 8], sizes = [3, 8], strides = [1, 1]} : vector<6x32xf32> to vector<3x8xf32>
    %cst_189 = arith.constant dense<0.000000e+00> : vector<3x3xf32>
    %439 = tpu.matmul %436, %437, %cst_189 {dimension_numbers = #tpu.dot_dimension_numbers<[1], [1], [0], [0], [0, 0, 1, 0], [], []>} : vector<3x8xf32>, vector<3x8xf32>, vector<3x3xf32> -> vector<3x3xf32>
    %cst_190 = arith.constant 0.353553385 : f32
    %440 = vector.broadcast %cst_190 : f32 to vector<3x3xf32>
    %441 = arith.mulf %439, %440 : vector<3x3xf32>
    %cst_191 = arith.constant -1.000000e+30 : f32
    %442 = vector.broadcast %cst_191 : f32 to vector<3x3xf32>
    %443 = arith.select %411, %442, %441 : vector<3x3xi1>, vector<3x3xf32>
    %cst_192 = arith.constant dense<0xFF800000> : vector<3xf32>
    %444 = vector.multi_reduction <maximumf>, %443, %cst_192 [1] : vector<3x3xf32> to vector<3xf32>
    %445 = vector.shape_cast %444 : vector<3xf32> to vector<3x1xf32>
    %446 = vector.broadcast %445 : vector<3x1xf32> to vector<3x3xf32>
    %447 = arith.subf %443, %446 : vector<3x3xf32>
    %448 = math.exp %447 : vector<3x3xf32>
    %cst_193 = arith.constant 0.000000e+00 : f32
    %449 = vector.broadcast %cst_193 : f32 to vector<3x3xf32>
    %450 = arith.select %411, %449, %448 : vector<3x3xi1>, vector<3x3xf32>
    %cst_194 = arith.constant dense<0.000000e+00> : vector<3xf32>
    %451 = vector.multi_reduction <add>, %450, %cst_194 [1] : vector<3x3xf32> to vector<3xf32>
    %452 = vector.shape_cast %451 : vector<3xf32> to vector<3x1xf32>
    %cst_195 = arith.constant 1.000000e-30 : f32
    %453 = vector.broadcast %cst_195 : f32 to vector<3x1xf32>
    %454 = arith.maximumf %452, %453 : vector<3x1xf32>
    %455 = tpu.reciprocal %454 {approx = true} : vector<3x1xf32> -> vector<3x1xf32>
    %456 = vector.broadcast %455 : vector<3x1xf32> to vector<3x3xf32>
    %457 = arith.mulf %450, %456 : vector<3x3xf32>
    %cst_196 = arith.constant dense<0.000000e+00> : vector<3x8xf32>
    %458 = tpu.matmul %457, %438, %cst_196 {dimension_numbers = #tpu.dot_dimension_numbers<[1], [0], [0], [1], [0, 0, 1, 1], [], []>} : vector<3x3xf32>, vector<3x8xf32>, vector<3x8xf32> -> vector<3x8xf32>
    %c3_197 = arith.constant 3 : index
    %c8_198 = arith.constant 8 : index
    %459 = vector.load %arg24[%c3_197, %c8_198] : memref<6x32xf32, #tpu.memory_space<vmem>>, vector<3x8xf32>
    tpu.vector_store %arg24[%c3_197, %c8_198], %458 {strides = array<i32>} : memref<6x32xf32, #tpu.memory_space<vmem>>, vector<3x8xf32>,
    %460 = vector.extract_strided_slice %283 {offsets = [3, 16], sizes = [3, 8], strides = [1, 1]} : vector<6x32xf32> to vector<3x8xf32>
    %461 = vector.extract_strided_slice %289 {offsets = [3, 16], sizes = [3, 8], strides = [1, 1]} : vector<6x32xf32> to vector<3x8xf32>
    %462 = vector.extract_strided_slice %292 {offsets = [3, 16], sizes = [3, 8], strides = [1, 1]} : vector<6x32xf32> to vector<3x8xf32>
    %cst_199 = arith.constant dense<0.000000e+00> : vector<3x3xf32>
    %463 = tpu.matmul %460, %461, %cst_199 {dimension_numbers = #tpu.dot_dimension_numbers<[1], [1], [0], [0], [0, 0, 1, 0], [], []>} : vector<3x8xf32>, vector<3x8xf32>, vector<3x3xf32> -> vector<3x3xf32>
    %cst_200 = arith.constant 0.353553385 : f32
    %464 = vector.broadcast %cst_200 : f32 to vector<3x3xf32>
    %465 = arith.mulf %463, %464 : vector<3x3xf32>
    %cst_201 = arith.constant -1.000000e+30 : f32
    %466 = vector.broadcast %cst_201 : f32 to vector<3x3xf32>
    %467 = arith.select %411, %466, %465 : vector<3x3xi1>, vector<3x3xf32>
    %cst_202 = arith.constant dense<0xFF800000> : vector<3xf32>
    %468 = vector.multi_reduction <maximumf>, %467, %cst_202 [1] : vector<3x3xf32> to vector<3xf32>
    %469 = vector.shape_cast %468 : vector<3xf32> to vector<3x1xf32>
    %470 = vector.broadcast %469 : vector<3x1xf32> to vector<3x3xf32>
    %471 = arith.subf %467, %470 : vector<3x3xf32>
    %472 = math.exp %471 : vector<3x3xf32>
    %cst_203 = arith.constant 0.000000e+00 : f32
    %473 = vector.broadcast %cst_203 : f32 to vector<3x3xf32>
    %474 = arith.select %411, %473, %472 : vector<3x3xi1>, vector<3x3xf32>
    %cst_204 = arith.constant dense<0.000000e+00> : vector<3xf32>
    %475 = vector.multi_reduction <add>, %474, %cst_204 [1] : vector<3x3xf32> to vector<3xf32>
    %476 = vector.shape_cast %475 : vector<3xf32> to vector<3x1xf32>
    %cst_205 = arith.constant 1.000000e-30 : f32
    %477 = vector.broadcast %cst_205 : f32 to vector<3x1xf32>
    %478 = arith.maximumf %476, %477 : vector<3x1xf32>
    %479 = tpu.reciprocal %478 {approx = true} : vector<3x1xf32> -> vector<3x1xf32>
    %480 = vector.broadcast %479 : vector<3x1xf32> to vector<3x3xf32>
    %481 = arith.mulf %474, %480 : vector<3x3xf32>
    %cst_206 = arith.constant dense<0.000000e+00> : vector<3x8xf32>
    %482 = tpu.matmul %481, %462, %cst_206 {dimension_numbers = #tpu.dot_dimension_numbers<[1], [0], [0], [1], [0, 0, 1, 1], [], []>} : vector<3x3xf32>, vector<3x8xf32>, vector<3x8xf32> -> vector<3x8xf32>
    %c3_207 = arith.constant 3 : index
    %c16_208 = arith.constant 16 : index
    %483 = vector.load %arg24[%c3_207, %c16_208] : memref<6x32xf32, #tpu.memory_space<vmem>>, vector<3x8xf32>
    tpu.vector_store %arg24[%c3_207, %c16_208], %482 {strides = array<i32>} : memref<6x32xf32, #tpu.memory_space<vmem>>, vector<3x8xf32>,
    %484 = vector.extract_strided_slice %283 {offsets = [3, 24], sizes = [3, 8], strides = [1, 1]} : vector<6x32xf32> to vector<3x8xf32>
    %485 = vector.extract_strided_slice %289 {offsets = [3, 24], sizes = [3, 8], strides = [1, 1]} : vector<6x32xf32> to vector<3x8xf32>
    %486 = vector.extract_strided_slice %292 {offsets = [3, 24], sizes = [3, 8], strides = [1, 1]} : vector<6x32xf32> to vector<3x8xf32>
    %cst_209 = arith.constant dense<0.000000e+00> : vector<3x3xf32>
    %487 = tpu.matmul %484, %485, %cst_209 {dimension_numbers = #tpu.dot_dimension_numbers<[1], [1], [0], [0], [0, 0, 1, 0], [], []>} : vector<3x8xf32>, vector<3x8xf32>, vector<3x3xf32> -> vector<3x3xf32>
    %cst_210 = arith.constant 0.353553385 : f32
    %488 = vector.broadcast %cst_210 : f32 to vector<3x3xf32>
    %489 = arith.mulf %487, %488 : vector<3x3xf32>
    %cst_211 = arith.constant -1.000000e+30 : f32
    %490 = vector.broadcast %cst_211 : f32 to vector<3x3xf32>
    %491 = arith.select %411, %490, %489 : vector<3x3xi1>, vector<3x3xf32>
    %cst_212 = arith.constant dense<0xFF800000> : vector<3xf32>
    %492 = vector.multi_reduction <maximumf>, %491, %cst_212 [1] : vector<3x3xf32> to vector<3xf32>
    %493 = vector.shape_cast %492 : vector<3xf32> to vector<3x1xf32>
    %494 = vector.broadcast %493 : vector<3x1xf32> to vector<3x3xf32>
    %495 = arith.subf %491, %494 : vector<3x3xf32>
    %496 = math.exp %495 : vector<3x3xf32>
    %cst_213 = arith.constant 0.000000e+00 : f32
    %497 = vector.broadcast %cst_213 : f32 to vector<3x3xf32>
    %498 = arith.select %411, %497, %496 : vector<3x3xi1>, vector<3x3xf32>
    %cst_214 = arith.constant dense<0.000000e+00> : vector<3xf32>
    %499 = vector.multi_reduction <add>, %498, %cst_214 [1] : vector<3x3xf32> to vector<3xf32>
    %500 = vector.shape_cast %499 : vector<3xf32> to vector<3x1xf32>
    %cst_215 = arith.constant 1.000000e-30 : f32
    %501 = vector.broadcast %cst_215 : f32 to vector<3x1xf32>
    %502 = arith.maximumf %500, %501 : vector<3x1xf32>
    %503 = tpu.reciprocal %502 {approx = true} : vector<3x1xf32> -> vector<3x1xf32>
    %504 = vector.broadcast %503 : vector<3x1xf32> to vector<3x3xf32>
    %505 = arith.mulf %498, %504 : vector<3x3xf32>
    %cst_216 = arith.constant dense<0.000000e+00> : vector<3x8xf32>
    %506 = tpu.matmul %505, %486, %cst_216 {dimension_numbers = #tpu.dot_dimension_numbers<[1], [0], [0], [1], [0, 0, 1, 1], [], []>} : vector<3x3xf32>, vector<3x8xf32>, vector<3x8xf32> -> vector<3x8xf32>
    %c3_217 = arith.constant 3 : index
    %c24_218 = arith.constant 24 : index
    %507 = vector.load %arg24[%c3_217, %c24_218] : memref<6x32xf32, #tpu.memory_space<vmem>>, vector<3x8xf32>
    tpu.vector_store %arg24[%c3_217, %c24_218], %506 {strides = array<i32>} : memref<6x32xf32, #tpu.memory_space<vmem>>, vector<3x8xf32>,
    %c0_219 = arith.constant 0 : index
    %c0_220 = arith.constant 0 : index
    %508 = vector.load %arg24[%c0_219, %c0_220] : memref<6x32xf32, #tpu.memory_space<vmem>>, vector<6x32xf32>
    %c0_221 = arith.constant 0 : index
    %c0_222 = arith.constant 0 : index
    %509 = vector.load %arg2[%c0_221, %c0_222] : memref<6x8xf32, #tpu.memory_space<vmem>>, vector<6x8xf32>
    %510 = vector.extract_strided_slice %282 {offsets = [0, 32], sizes = [6, 12], strides = [1, 1]} : vector<6x44xf32> to vector<6x12xf32>
    %c0_223 = arith.constant 0 : index
    %c0_224 = arith.constant 0 : index
    %511 = vector.load %arg20[%c0_223, %c0_224] : memref<8x12xf32, #tpu.memory_space<vmem>>, vector<8x12xf32>
    %cst_225 = arith.constant dense<0.000000e+00> : vector<6x12xf32>
    %512 = tpu.matmul %509, %511, %cst_225 {dimension_numbers = #tpu.dot_dimension_numbers<[1], [0], [0], [1], [0, 0, 1, 1], [], []>} : vector<6x8xf32>, vector<8x12xf32>, vector<6x12xf32> -> vector<6x12xf32>
    %513 = arith.addf %510, %512 : vector<6x12xf32>
    %514 = vector.extract_strided_slice %513 {offsets = [0, 0], sizes = [6, 6], strides = [1, 1]} : vector<6x12xf32> to vector<6x6xf32>
    %cst_226 = arith.constant 0.000000e+00 : f32
    %515 = vector.shape_cast %20 : vector<6x1xi1> to vector<6x1xi1>
    %516 = vector.broadcast %515 : vector<6x1xi1> to vector<6x6xi1>
    %517 = vector.broadcast %cst_226 : f32 to vector<6x6xf32>
    %518 = arith.select %516, %517, %514 : vector<6x6xi1>, vector<6x6xf32>
    %519 = vector.extract_strided_slice %513 {offsets = [0, 6], sizes = [6, 6], strides = [1, 1]} : vector<6x12xf32> to vector<6x6xf32>
    %c0_227 = arith.constant 0 : index
    %c0_228 = arith.constant 0 : index
    %520 = vector.load %arg21[%c0_227, %c0_228] : memref<32x6xf32, #tpu.memory_space<vmem>>, vector<32x6xf32>
    %cst_229 = arith.constant dense<0.000000e+00> : vector<6x6xf32>
    %521 = tpu.matmul %508, %520, %cst_229 {dimension_numbers = #tpu.dot_dimension_numbers<[1], [0], [0], [1], [0, 0, 1, 1], [], []>} : vector<6x32xf32>, vector<32x6xf32>, vector<6x6xf32> -> vector<6x6xf32>
    %522 = tpu.iota {dimensions = array<i32: 0>} : vector<6x1xi32>
    %c0_i32 = arith.constant 0 : i32
    %523 = vector.broadcast %c0_i32 : i32 to vector<6x1xi32>
    %524 = arith.cmpi eq, %522, %523 : vector<6x1xi32>
    %c3_i32 = arith.constant 3 : i32
    %525 = vector.broadcast %c3_i32 : i32 to vector<6x1xi32>
    %526 = arith.cmpi eq, %522, %525 : vector<6x1xi32>
    %527 = arith.ori %524, %526 : vector<6x1xi1>
    %528 = arith.addf %519, %521 : vector<6x6xf32>
    %529 = arith.ori %527, %20 : vector<6x1xi1>
    %cst_230 = arith.constant 0.000000e+00 : f32
    %530 = vector.shape_cast %529 : vector<6x1xi1> to vector<6x1xi1>
    %531 = vector.broadcast %530 : vector<6x1xi1> to vector<6x6xi1>
    %532 = vector.broadcast %cst_230 : f32 to vector<6x6xf32>
    %533 = arith.select %531, %532, %528 : vector<6x6xi1>, vector<6x6xf32>
    %534 = arith.addf %518, %533 : vector<6x6xf32>
    %c0_231 = arith.constant 0 : index
    %c0_232 = arith.constant 0 : index
    %535 = vector.load %arg22[%c0_231, %c0_232] : memref<6x56xf32, #tpu.memory_space<vmem>>, vector<6x6xf32>
    tpu.vector_store %arg22[%c0_231, %c0_232], %534 {strides = array<i32>} : memref<6x56xf32, #tpu.memory_space<vmem>>, vector<6x6xf32>,
    %c0_233 = arith.constant 0 : index
    %c12 = arith.constant 12 : index
    %536 = vector.load %arg22[%c0_233, %c12] : memref<6x56xf32, #tpu.memory_space<vmem>>, vector<6x6xf32>
    tpu.vector_store %arg22[%c0_233, %c12], %518 {strides = array<i32>} : memref<6x56xf32, #tpu.memory_space<vmem>>, vector<6x6xf32>,
    %c0_234 = arith.constant 0 : index
    %c18 = arith.constant 18 : index
    %537 = vector.load %arg22[%c0_234, %c18] : memref<6x56xf32, #tpu.memory_space<vmem>>, vector<6x6xf32>
    tpu.vector_store %arg22[%c0_234, %c18], %533 {strides = array<i32>} : memref<6x56xf32, #tpu.memory_space<vmem>>, vector<6x6xf32>,
    %c0_235 = arith.constant 0 : index
    %c24_236 = arith.constant 24 : index
    %538 = vector.load %arg22[%c0_235, %c24_236] : memref<6x56xf32, #tpu.memory_space<vmem>>, vector<6x32xf32>
    tpu.vector_store %arg22[%c0_235, %c24_236], %272 {strides = array<i32>} : memref<6x56xf32, #tpu.memory_space<vmem>>, vector<6x32xf32>,
    %539 = vector.extract_strided_slice %519 {offsets = [0, 0], sizes = [3, 6], strides = [1, 1]} : vector<6x6xf32> to vector<3x6xf32>
    %540 = vector.extract_strided_slice %521 {offsets = [0, 0], sizes = [1, 6], strides = [1, 1]} : vector<6x6xf32> to vector<1x6xf32>
    %541 = vector.broadcast %540 : vector<1x6xf32> to vector<3x6xf32>
    %542 = arith.addf %539, %541 : vector<3x6xf32>
    %c0_237 = arith.constant 0 : index
    %c6 = arith.constant 6 : index
    %543 = vector.load %arg22[%c0_237, %c6] : memref<6x56xf32, #tpu.memory_space<vmem>>, vector<3x6xf32>
    tpu.vector_store %arg22[%c0_237, %c6], %542 {strides = array<i32>} : memref<6x56xf32, #tpu.memory_space<vmem>>, vector<3x6xf32>,
    %544 = vector.extract_strided_slice %519 {offsets = [3, 0], sizes = [3, 6], strides = [1, 1]} : vector<6x6xf32> to vector<3x6xf32>
    %545 = vector.extract_strided_slice %521 {offsets = [3, 0], sizes = [1, 6], strides = [1, 1]} : vector<6x6xf32> to vector<1x6xf32>
    %546 = vector.broadcast %545 : vector<1x6xf32> to vector<3x6xf32>
    %547 = arith.addf %544, %546 : vector<3x6xf32>
    %c3_238 = arith.constant 3 : index
    %c6_239 = arith.constant 6 : index
    %548 = vector.load %arg22[%c3_238, %c6_239] : memref<6x56xf32, #tpu.memory_space<vmem>>, vector<3x6xf32>
    tpu.vector_store %arg22[%c3_238, %c6_239], %547 {strides = array<i32>} : memref<6x56xf32, #tpu.memory_space<vmem>>, vector<3x6xf32>,
    return
  }
}

</mosaic_0001>

<bundles_post_ra>
// kernel: _lambda_.1
= control target key start
LH: loop header
LB: loop body
LE: loop exit
PB: predicated region body
PF: predicated region fallthrough
CT: control target
= control target key end

     0   :  { %s5422_s0 = inlined_call_operand.vmem [shape: f32[10,16], index: 0, kind: input, shape index: {}]   ;;  %s5423_s1 = inlined_call_operand.vmem [shape: f32[6,7], index: 1, kind: input, shape index: {}]   ;;  %s5424_s2 = inlined_call_operand.vmem [shape: f32[6,8], index: 2, kind: input, shape index: {}]   ;;  %s5425_s3 = inlined_call_operand.vmem [shape: f32[6,32], index: 3, kind: input, shape index: {}]   ;;  %s5426_s4 = inlined_call_operand.vmem [shape: f32[2,3,5], index: 4, kind: input, shape index: {}]   ;;  %s5427_s5 = inlined_call_operand.vmem [shape: f32[6,1], index: 5, kind: input, shape index: {}]   ;;  %s5428_s6 = inlined_call_operand.vmem [shape: f32[2,3], index: 6, kind: input, shape index: {}]   ;;  %s5429_s7 = inlined_call_operand.vmem [shape: f32[16,32], index: 7, kind: input, shape index: {}]   ;;  %s5430_s8 = inlined_call_operand.hbm [shape: f32[1,32], index: 8, kind: input, shape index: {}]   ;;  %s5431_s9 = inlined_call_operand.vmem [shape: f32[32,96], index: 9, kind: input, shape index: {}]   ;;  %s5432_s10 = inlined_call_operand.hbm [shape: f32[1,96], index: 10, kind: input, shape index: {}]   ;;  %s5433_s11 = inlined_call_operand.vmem [shape: f32[64,96], index: 11, kind: input, shape index: {}]   ;;  %s5434_s12 = inlined_call_operand.vmem [shape: f32[32,96], index: 12, kind: input, shape index: {}]   ;;  %s5435_s13 = inlined_call_operand.hbm [shape: f32[1,96], index: 13, kind: input, shape index: {}]   ;;  %s5436_s14 = inlined_call_operand.hbm [shape: f32[1,96], index: 14, kind: input, shape index: {}]   ;;  %s5437_s15 = inlined_call_operand.vmem [shape: f32[7,32], index: 15, kind: input, shape index: {}]   ;;  %s5438_s16 = inlined_call_operand.vmem [shape: f32[32,44], index: 16, kind: input, shape index: {}]   ;;  %s5439_s17 = inlined_call_operand.hbm [shape: f32[1,44], index: 17, kind: input, shape index: {}]   ;;  %s5440_s18 = inlined_call_operand.vmem [shape: f32[32,64], index: 18, kind: input, shape index: {}]   ;;  %s5441_s19 = inlined_call_operand.hbm [shape: f32[1,64], index: 19, kind: input, shape index: {}]   ;;  %s5442_s20 = inlined_call_operand.vmem [shape: f32[8,12], index: 20, kind: input, shape index: {}]   ;;  %s5443_s21 = inlined_call_operand.vmem [shape: f32[32,6], index: 21, kind: input, shape index: {}]   ;;  %s5444_s22 = inlined_call_operand.vmem [shape: f32[6,56], index: 22, kind: output, shape index: {}]  }
   0x1   :  { %5447 = sst [smem:[#allocation18_spill]] %s5422_s0 }
   0x2   :  { %5448 = sst [smem:[#allocation19_spill]] %s5423_s1 }
   0x3   :  { %5449 = sst [smem:[#allocation20_spill]] %s5424_s2 }
   0x4   :  { %5450 = sst [smem:[#allocation21_spill]] %s5425_s3 }
   0x5   :  { %5451 = sst [smem:[#allocation22_spill]] %s5426_s4 }
   0x6   :  { %5452 = sst [smem:[#allocation23_spill]] %s5427_s5 }
   0x7   :  { %5453 = sst [smem:[#allocation24_spill]] %s5428_s6 }
   0x8   :  { %27 = vsyncpa [#allocation5], 0 }
   0x9   :  { %28 = vsyncpa [#allocation7], 0 }
   0xa   :  { %29 = vsyncpa [#allocation10], 0 }
   0xb   :  { %30 = vsyncpa [#allocation13], 0  ;;  %s4551_s3 = smov [#allocation6]   ;;  %s4552_s29 = smov [#allocation9]  }
   0xc   :  { %s65_s28 = sshll.u32 %s4551_s3, 4  ;;  %s89_s30 = sshll.u32 %s4552_s29, 4  ;;  %s66_s28 = int_to_ptr.vmem [resolvable:$true] %s65_s28  ;;  %s90_s30 = int_to_ptr.vmem [resolvable:$true] %s89_s30 }
   0xd   :  { %s4431_s4 = scalar_lea.vmem %s66_s28, 16  ;;  %s4435_s0 = scalar_lea.vmem %s66_s28, 32 }
   0xe   :  { %p4432_p0 = scmp.ne.s32.totalorder %s66_s28, %s4431_s4  ;;  %p4436_p1 = scmp.lt.s32.totalorder %s66_s28, %s66_s28 }
   0xf   :  { %p4437_p2 = scmp.lt.s32.totalorder %s4435_s0, %s4431_s4 }
  0x11   :  { %p4438_p3 = por %p4437_p2, %p4436_p1 }
  0x13   :  { %p4439_p4 = pnand %p4438_p3, %p4432_p0 }
  0x15   :  { %4442 = shalt.err (!%p4439_p4)
}
  0x16   :  { %68 = dma.hbm_to_vmem [thread:$0]  %s5432_s10, 16, %s66_s28, [#allocation7]  }
  0x17   :  { %s4451_s5 = scalar_lea.vmem %s90_s30, 16  ;;  %s4455_s24 = scalar_lea.vmem %s90_s30, 32 }
  0x18   :  { %p4452_p5 = scmp.ne.s32.totalorder %s90_s30, %s4451_s5  ;;  %p4456_p6 = scmp.lt.s32.totalorder %s90_s30, %s90_s30 }
  0x19   :  { %p4457_p7 = scmp.lt.s32.totalorder %s4455_s24, %s4451_s5 }
  0x1b   :  { %p4458_p8 = por %p4457_p7, %p4456_p6 }
  0x1d   :  { %p4459_p9 = pnand %p4458_p8, %p4452_p5 }
  0x1f   :  { %4462 = shalt.err (!%p4459_p9)
}
  0x20   :  { %92 = dma.hbm_to_vmem [thread:$0]  %s5436_s14, 16, %s90_s30, [#allocation10]  }
  0x21   :  { %s4553_s26 = smov [#allocation4]   ;;  %s4554_s27 = smov [#allocation8]  }
  0x22   :  { %s53_s2 = sshll.u32 %s4553_s26, 4  ;;  %s79_s3 = sshll.u32 %s4554_s27, 4  ;;  %s54_s2 = int_to_ptr.vmem [resolvable:$true] %s53_s2  ;;  %s80_s3 = int_to_ptr.vmem [resolvable:$true] %s79_s3 }
  0x23   :  { %s4471_s29 = scalar_lea.vmem %s54_s2, 16  ;;  %s4475_s10 = scalar_lea.vmem %s54_s2, 32 }
  0x24   :  { %p4472_p10 = scmp.ne.s32.totalorder %s54_s2, %s4471_s29  ;;  %p4476_p11 = scmp.lt.s32.totalorder %s54_s2, %s54_s2 }
  0x25   :  { %p4477_p12 = scmp.lt.s32.totalorder %s4475_s10, %s4471_s29 }
  0x27   :  { %p4478_p13 = por %p4477_p12, %p4476_p11 }
  0x29   :  { %p4479_p0 = pnand %p4478_p13, %p4472_p10 }
  0x2b   :  { %4482 = shalt.err (!%p4479_p0)
}
  0x2c   :  { %56 = dma.hbm_to_vmem [thread:$0]  %s5430_s8, 16, %s54_s2, [#allocation5]  }
  0x2d   :  { %s4491_s0 = scalar_lea.vmem %s80_s3, 16  ;;  %s4495_s14 = scalar_lea.vmem %s80_s3, 32 }
  0x2e   :  { %p4492_p1 = scmp.ne.s32.totalorder %s80_s3, %s4491_s0  ;;  %p4496_p2 = scmp.lt.s32.totalorder %s80_s3, %s80_s3 }
  0x2f   :  { %p4497_p3 = scmp.lt.s32.totalorder %s4495_s14, %s4491_s0 }
  0x31   :  { %p4498_p4 = por %p4497_p3, %p4496_p2 }
  0x33   :  { %p4499_p5 = pnand %p4498_p4, %p4492_p1 }
  0x35   :  { %4502 = shalt.err (!%p4499_p5)
}
  0x36   :  { %82 = dma.hbm_to_vmem [thread:$0]  %s5435_s13, 16, %s80_s3, [#allocation7]  }
  0x37   :  { %s4555_s1 = smov [#allocation11]   ;;  %s4556_s24 = smov [#allocation12]  }
  0x38   :  { %s103_s5 = sshll.u32 %s4555_s1, 4  ;;  %s115_s6 = sshll.u32 %s4556_s24, 4  ;;  %s104_s5 = int_to_ptr.vmem [resolvable:$true] %s103_s5  ;;  %s116_s6 = int_to_ptr.vmem [resolvable:$true] %s115_s6 }
  0x39   :  { %s4511_s25 = scalar_lea.vmem %s104_s5, 16  ;;  %s4515_s8 = scalar_lea.vmem %s104_s5, 32 }
  0x3a   :  { %p4512_p6 = scmp.ne.s32.totalorder %s104_s5, %s4511_s25  ;;  %p4516_p7 = scmp.lt.s32.totalorder %s104_s5, %s104_s5 }
  0x3b   :  { %p4517_p8 = scmp.lt.s32.totalorder %s4515_s8, %s4511_s25 }
  0x3d   :  { %p4518_p9 = por %p4517_p8, %p4516_p7 }
  0x3f   :  { %p4519_p10 = pnand %p4518_p9, %p4512_p6 }
  0x41   :  { %4522 = shalt.err (!%p4519_p10)
}
  0x42   :  { %106 = dma.hbm_to_vmem [thread:$0]  %s5439_s17, 16, %s104_s5, [#allocation10]  }
  0x43   :  { %s4531_s27 = scalar_lea.vmem %s116_s6, 16  ;;  %s4535_s13 = scalar_lea.vmem %s116_s6, 32 }
  0x44   :  { %p4532_p11 = scmp.ne.s32.totalorder %s116_s6, %s4531_s27  ;;  %p4536_p12 = scmp.lt.s32.totalorder %s116_s6, %s116_s6 }
  0x45   :  { %p4537_p13 = scmp.lt.s32.totalorder %s4535_s13, %s4531_s27 }
  0x47   :  { %p4538_p0 = por %p4537_p13, %p4536_p12 }
  0x49   :  { %p4539_p1 = pnand %p4538_p0, %p4532_p11 }
  0x4b   :  { %4542 = shalt.err (!%p4539_p1)
}
  0x4c   :  { %118 = dma.hbm_to_vmem [thread:$0]  %s5441_s19, 16, %s116_s6, [#allocation13]  }
  0x4d   :  { %4543 = dma.done.wait [#allocation5], 16  }
  0x4e   :  { %4544 = vsyncadd [#allocation5], 4294967280 }
  0x4f   :  { %4545 = dma.done.wait [#allocation7], 32  }
  0x50   :  { %4546 = vsyncadd [#allocation7], 4294967264 }
  0x51   :  { %4547 = dma.done.wait [#allocation10], 32  }
  0x52   :  { %4548 = vsyncadd [#allocation10], 4294967264 }
  0x53   :  { %4549 = dma.done.wait [#allocation13], 16  }
  0x54   :  { %4550 = vsyncadd [#allocation13], 4294967280  ;;  %vm152_vm0 = vcmask 130048   ;;  %v144_v0 = vld [vmem:[%s5429_s7 + $0x8] sm:$0xff]  ;;  %v143_v1 = vld [vmem:[%s5429_s7] sm:$0xff]  ;;  %s5454_s19 = sld [smem:[#allocation18_spill]]  ;;  %v334_v40 = vlaneseq }
  0x55   :  { %4073 = vmatprep.subr.mxu0 %v144_v0  ;;  %v239_v4 = vld [vmem:[%s5431_s9 + $0x18] sm:$0xff]  ;;  %v238_v5 = vld [vmem:[%s5431_s9 + $0x10] sm:$0xff]  ;;  %v237_v6 = vld [vmem:[%s5431_s9 + $0x8] sm:$0xff]  ;;  %vm342_vm1 = vcmask 256000   ;;  %vm1056_vm2 = vcmask 261125   ;;  %vm247_vm3 = vcmask 261120  }
  0x56   :  { %4074 = vmatpush3.msra.mxu0 %v144_v0  ;;  %4080 = vmatprep.subr.mxu1 %v239_v4  ;;  %v236_v7 = vld [vmem:[%s5431_s9] sm:$0xff]  ;;  %v3882_v8 = vld [vmem:[#allocation4] ss:$0 sm:$0xff]  ;;  %v4557_v15 = vmov 0.0   ;;  %vm4558_vm4 = vmmov 0   ;;  %s4559_s9 = smov 120  }
  0x57   :  { %4075 = vmatprep.subr.mxu0 %v143_v1  ;;  %4081 = vmatpush3.msra.mxu1 %v239_v4  ;;  %v3885_v17 = vld [vmem:[#allocation6] ss:$0 sm:$0xff]  ;;  %s4560_s2 = smov 96   ;;  %s4561_s27 = smov 80   ;;  %vm1060_vm5 = vcmask 1042432   ;;  %vm347_vm6 = vcmask 64512  }
  0x58   :  { %4076 = vmatpush3.msra.mxu0 %v143_v1  ;;  %4082 = vmatprep.subr.mxu1 %v238_v5  ;;  %s4562_s13 = smov 88   ;;  %s4563_s3 = smov 72   ;;  %vm445_vm7 = vcmask 1044480   ;;  %v4807_v41 = vshrl.u32 %v334_v40, 7  ;;  %v4809_v42 = vand.u32 127, %v334_v40  ;;  %vm424_vm11 = vcmask 34816  }
  0x59   :  { %4083 = vmatpush3.msra.mxu1 %v238_v5  ;;  %4091 = vmatprep.subr.mxu0 %v4557_v15  ;;  %s4564_s29 = smov 112   ;;  %s4565_s17 = smov 104   ;;  %vm441_vm14 = vcmask 39936   ;;  %vm522_vm15 = vcmask 321792  }
  0x5a   :  { %v141_v2 = vld [vmem:[%s5454_s19] sm:$0xff]  ;;  %v142_v3 = vld [vmem:[%s5454_s19 + $0x8] sm:$0x3]  ;;  %4084 = vmatprep.subr.mxu1 %v237_v6  ;;  %s4566_s10 = smov 64   ;;  %s5455_s0 = sld [smem:[#allocation22_spill]]  ;;  %vm338_vm8 = vcmp.eq.s32.totalorder %v4807_v41, %v4809_v42 }
  0x5b   :  { %4077 = vmatprep.mubr.msk.f32.mxu0 %vm152_vm0, %v141_v2  ;;  %4085 = vmatpush3.msra.mxu1 %v237_v6  ;;  %s4567_s30 = smov 48   ;;  %s4568_s23 = smov 40  }
  0x5c   :  { %4078 = vmatmul.mubr.msk.f32.vlgmr.msra.gmra.mxu0 %vm152_vm0, %v142_v3  ;;  %4086 = vmatprep.subr.mxu1 %v236_v7  ;;  %s4569_s1 = smov 56   ;;  %s5460_s14 = sld [smem:[#allocation21_spill]]  ;;  %vm698_vm0 = vcmask 387392  }
  0x5d   :  { %4087 = vmatpush3.msra.mxu1 %v236_v7  ;;  %4093 = vmatprep.mubr.msk.f32.mxu0 %vm4558_vm4, %v4557_v15  ;;  %s4570_s19 = smov 32   ;;  %s5462_s26 = sld [smem:[#allocation19_spill]] }
  0x5e   :  { %4101 = vmatprep.subr.mxu1 %v4557_v15  ;;  %s5463_s4 = sld [smem:[#allocation24_spill]]  ;;  %s4577_s24 = smov 122  }
  0x5f   :  { %s5468_s28 = sld [smem:[#allocation20_spill]] }
  0x60   :  { %v339_v43 = vld [vmem:[%s5455_s0] sm:$0x7]  ;;  %v3904_v58 = vld [vmem:[%s5455_s0 + $0x4] sm:$0x7] }
  0x61   :  { %vm340_vm9 = vcmp.gt.f32.partialorder %v339_v43, 0.5  ;;  %vm1054_vm12 = vcmp.gt.f32.partialorder %v3904_v58, 0.5 }
  0x62   :  { %vm4819_vm10 = vmor %vm340_vm9, %vm338_vm8  ;;  %vm1981_vm9 = vcmask 1046528  }
  0x63   :  { %vm4841_vm13 = vmor %vm1054_vm12, %vm338_vm8 }
 0x11c   :  { %v4079_v9 = vpop.f32.mrf.mxu0 }
 0x11d   :  { %v231_v10 = vadd.f32 %v4079_v9, %v3882_v8 }
 0x11e   :  { %v225_v11 = vpop.f32.mrf.mxu0 }
 0x11f   :  { %v226_v12 = vadd.f32 %v3882_v8, %v225_v11  ;;  %v235_v14 = vmax.f32 %v231_v10, 0.0 }
 0x121   :  { %v234_v13 = vmax.f32 %v226_v12, 0.0 }
 0x123   :  { %343 = vst.msk [vmem:[#allocation2] sm:$0x7] %vm342_vm1, %v234_v13  ;;  %4088 = vmatprep.mubr.msk.f32.mxu1 %vm247_vm3, %v234_v13  ;;  %vm874_vm1 = vcmask 452992  }
 0x124   :  { %1057 = vst.msk [vmem:[#allocation2 - $0x2] sm:$0xe0] %vm1056_vm2, %v234_v13  ;;  %4089 = vmatmul.mubr.msk.f32.vlgmr.msra.gmra.mxu1 %vm247_vm3, %v235_v14  ;;  %vm1050_vm2 = vcmask 518592  }
 0x125   :  { %4103 = vmatprep.mubr.msk.f32.mxu1 %vm4558_vm4, %v4557_v15 }
 0x1e4   :  { %v4090_v16 = vpop.f32.mrf.mxu1 }
 0x1e5   :  { %v4747_v20 = vadd.f32 %v4090_v16, %v3885_v17 }
 0x1e6   :  { %v320_v18 = vpop.f32.mrf.mxu1 }
 0x1e7   :  { %v321_v19 = vadd.f32 %v3885_v17, %v320_v18  ;;  %v1061_v22 = vrot.slane %v4747_v20, 5 }
 0x1e9   :  { %524 = vrot.lane.b32.xlu1 %v321_v19, %s4559_s9  ;;  %345 = vrot.lane.b32.xlu0 %v321_v19, %s4560_s2  ;;  %v1058_v21 = vrot.slane %v321_v19, 5  ;;  %v4761_v24 = vmax.f32 %v321_v19, 0.0 }
 0x1eb   :  { %v1062_v23 = vsel %vm1060_vm5, %v1058_v21, %v1061_v22 }
 0x1ed   :  { %702 = vrot.lane.b32.xlu1 %v321_v19, %s4561_s27  ;;  %526 = vrot.lane.b32.xlu0 %v321_v19, %s4562_s13 }
 0x1f1   :  { %878 = vrot.lane.b32.xlu1 %v321_v19, %s4563_s3  ;;  %700 = vrot.lane.b32.xlu0 %v321_v19, %s4564_s29 }
 0x1f5   :  { %876 = vrot.lane.b32.xlu0 %v321_v19, %s4565_s17  ;;  %1063 = vrot.lane.b32.xlu1 %v1062_v23, %s4560_s2 }
 0x1f9   :  { %1242 = vrot.lane.b32.xlu0 %v1062_v23, %s4562_s13  ;;  %1240 = vrot.lane.b32.xlu1 %v1058_v21, %s4559_s9 }
 0x1fd   :  { %1417 = vrot.lane.b32.xlu0 %v1062_v23, %s4561_s27  ;;  %1415 = vrot.lane.b32.xlu1 %v1058_v21, %s4564_s29 }
 0x201   :  { %1592 = vrot.lane.b32.xlu0 %v1062_v23, %s4563_s3  ;;  %1590 = vrot.lane.b32.xlu1 %v1058_v21, %s4565_s17 }
 0x205   :  { %439 = vrot.lane.b32.xlu1 %v4761_v24, %s4566_s10 }
 0x25b   :  { %v525_v25 = vpop.permute.xlu1 %524  ;;  %v346_v26 = vpop.permute.xlu0 %345 }
 0x25c   :  { %4092 = vmatpush3.xpose.msk.msra.mxu0 %vm347_vm6, %v346_v26 }
 0x25d   :  { %4096 = vmatprep.subr.mxu0 %v4557_v15 }
 0x25f   :  { %v703_v27 = vpop.permute.xlu1 %702  ;;  %4094 = vmatmul.mubr.msk.f32.vlgmr.msra.gmra.mxu0 %vm347_vm6, %v321_v19  ;;  %v527_v28 = vpop.permute.xlu0 %526 }
 0x260   :  { %4102 = vmatpush3.xpose.msk.msra.mxu1 %vm347_vm6, %v527_v28  ;;  %4098 = vmatprep.mubr.msk.f32.mxu0 %vm4558_vm4, %v4557_v15 }
 0x261   :  { %4111 = vmatprep.subr.mxu1 %v4557_v15 }
 0x263   :  { %v879_v29 = vpop.permute.xlu1 %878  ;;  %4104 = vmatmul.mubr.msk.f32.vlgmr.msra.gmra.mxu1 %vm347_vm6, %v525_v25  ;;  %v701_v30 = vpop.permute.xlu0 %700 }
 0x264   :  { %4112 = vmatpush3.xpose.msk.msra.mxu1 %vm347_vm6, %v703_v27  ;;  %4113 = vmatprep.mubr.msk.f32.mxu1 %vm4558_vm4, %v4557_v15 }
 0x265   :  { %4121 = vmatprep.subr.mxu1 %v4557_v15 }
 0x267   :  { %4114 = vmatmul.mubr.msk.f32.vlgmr.msra.gmra.mxu1 %vm347_vm6, %v701_v30  ;;  %v877_v31 = vpop.permute.xlu0 %876  ;;  %v1064_v32 = vpop.permute.xlu1 %1063 }
 0x268   :  { %4122 = vmatpush3.xpose.msk.msra.mxu1 %vm347_vm6, %v879_v29  ;;  %4123 = vmatprep.mubr.msk.f32.mxu1 %vm4558_vm4, %v4557_v15 }
 0x269   :  { %4131 = vmatprep.subr.mxu1 %v4557_v15 }
 0x26b   :  { %4124 = vmatmul.mubr.msk.f32.vlgmr.msra.gmra.mxu1 %vm347_vm6, %v877_v31  ;;  %v1243_v33 = vpop.permute.xlu0 %1242  ;;  %v1241_v34 = vpop.permute.xlu1 %1240 }
 0x26c   :  { %4132 = vmatpush3.xpose.msk.msra.mxu1 %vm347_vm6, %v1064_v32  ;;  %4133 = vmatprep.mubr.msk.f32.mxu1 %vm4558_vm4, %v4557_v15 }
 0x26d   :  { %4141 = vmatprep.subr.mxu1 %v4557_v15 }
 0x26f   :  { %4134 = vmatmul.mubr.msk.f32.vlgmr.msra.gmra.mxu1 %vm347_vm6, %v1058_v21  ;;  %v1416_v35 = vpop.permute.xlu1 %1415  ;;  %v1418_v36 = vpop.permute.xlu0 %1417 }
 0x270   :  { %4142 = vmatpush3.xpose.msk.msra.mxu1 %vm347_vm6, %v1243_v33  ;;  %4143 = vmatprep.mubr.msk.f32.mxu1 %vm4558_vm4, %v4557_v15 }
 0x271   :  { %4151 = vmatprep.subr.mxu1 %v4557_v15 }
 0x273   :  { %4144 = vmatmul.mubr.msk.f32.vlgmr.msra.gmra.mxu1 %vm347_vm6, %v1241_v34  ;;  %v1591_v37 = vpop.permute.xlu1 %1590  ;;  %v1593_v38 = vpop.permute.xlu0 %1592 }
 0x274   :  { %4152 = vmatpush3.xpose.msk.msra.mxu1 %vm347_vm6, %v1418_v36  ;;  %4153 = vmatprep.mubr.msk.f32.mxu1 %vm4558_vm4, %v4557_v15 }
 0x275   :  { %4161 = vmatprep.subr.mxu1 %v4557_v15 }
 0x277   :  { %4154 = vmatmul.mubr.msk.f32.vlgmr.msra.gmra.mxu1 %vm347_vm6, %v1416_v35  ;;  %v440_v39 = vpop.permute.xlu1 %439 }
 0x278   :  { %4097 = vmatpush3.msk.msra.mxu0 %vm445_vm7, %v440_v39  ;;  %4162 = vmatpush3.xpose.msk.msra.mxu1 %vm347_vm6, %v1593_v38 }
 0x279   :  { %4163 = vmatprep.mubr.msk.f32.mxu1 %vm4558_vm4, %v4557_v15  ;;  %4106 = vmatprep.subr.mxu0 %v4557_v15 }
 0x27a   :  { %4171 = vmatprep.subr.mxu1 %v4557_v15 }
 0x27b   :  { %4164 = vmatmul.mubr.msk.f32.vlgmr.msra.gmra.mxu1 %vm347_vm6, %v1591_v37 }
 0x27c   :  { %4187 = vmatprep.mubr.msk.f32.mxu1 %vm4558_vm4, %v4557_v15 }
 0x31f   :  { %v418_v44 = vpop.f32.mrf.mxu0 }
 0x320   :  { %v422_v46 = vmul.f32 0.35355338, %v418_v44 }
 0x321   :  { %v4095_v47 = vpop.f32.mrf.mxu0 }
 0x322   :  { %v423_v48 = vsel %vm4819_vm10, -1e+30, %v422_v46 }
 0x323   :  { %v598_v49 = vpop.f32.mrf.mxu1  ;;  %v425_v50 = vsel %vm424_vm11, %v423_v48, -inf }
 0x324   :  { %v602_v51 = vmul.f32 0.35355338, %v598_v49  ;;  %426 = vmax.xlane.f32.xlu0 %v425_v50 }
 0x325   :  { %v4105_v52 = vpop.f32.mrf.mxu1 }
 0x326   :  { %v603_v53 = vsel %vm4819_vm10, -1e+30, %v602_v51 }
 0x327   :  { %v774_v54 = vpop.f32.mrf.mxu1  ;;  %v604_v55 = vsel %vm424_vm11, %v603_v53, -inf }
 0x328   :  { %v778_v56 = vmul.f32 0.35355338, %v774_v54  ;;  %605 = vmax.xlane.f32.xlu1 %v604_v55 }
 0x329   :  { %v4115_v57 = vpop.f32.mrf.mxu1 }
 0x32a   :  { %v779_v59 = vsel %vm4819_vm10, -1e+30, %v778_v56 }
 0x32b   :  { %v950_v60 = vpop.f32.mrf.mxu1  ;;  %v780_v61 = vsel %vm424_vm11, %v779_v59, -inf }
 0x32c   :  { %v954_v62 = vmul.f32 0.35355338, %v950_v60  ;;  %781 = vmax.xlane.f32.xlu0 %v780_v61  ;;  %v1155_v60 = vrot.slane %v4761_v24, 5 }
 0x32d   :  { %v4125_v63 = vpop.f32.mrf.mxu1 }
 0x32e   :  { %v955_v0 = vsel %vm4819_vm10, -1e+30, %v954_v62 }
 0x32f   :  { %v1135_v1 = vpop.f32.mrf.mxu1  ;;  %v956_v2 = vsel %vm424_vm11, %v955_v0, -inf }
 0x330   :  { %v1139_v4 = vmul.f32 0.35355338, %v1135_v1  ;;  %957 = vmax.xlane.f32.xlu0 %v956_v2 }
 0x331   :  { %v4135_v5 = vpop.f32.mrf.mxu1 }
 0x332   :  { %v1140_v6 = vsel %vm4841_vm13, -1e+30, %v1139_v4 }
 0x333   :  { %v1314_v7 = vpop.f32.mrf.mxu1  ;;  %v1141_v8 = vsel %vm424_vm11, %v1140_v6, -inf }
 0x334   :  { %v1318_v9 = vmul.f32 0.35355338, %v1314_v7  ;;  %1142 = vmax.xlane.f32.xlu1 %v1141_v8 }
 0x335   :  { %v4145_v10 = vpop.f32.mrf.mxu1 }
 0x336   :  { %v4850_v11 = vsel %vm4841_vm13, -1e+30, %v1318_v9 }
 0x337   :  { %v1489_v12 = vpop.f32.mrf.mxu1  ;;  %v1320_v13 = vsel %vm424_vm11, %v4850_v11, -inf }
 0x338   :  { %v1493_v14 = vmul.f32 0.35355338, %v1489_v12  ;;  %1321 = vmax.xlane.f32.xlu0 %v1320_v13 }
 0x339   :  { %v4155_v16 = vpop.f32.mrf.mxu1 }
 0x33a   :  { %v4856_v17 = vsel %vm4841_vm13, -1e+30, %v1493_v14 }
 0x33b   :  { %v1664_v18 = vpop.f32.mrf.mxu1  ;;  %v1495_v19 = vsel %vm424_vm11, %v4856_v17, -inf }
 0x33c   :  { %v1668_v21 = vmul.f32 0.35355338, %v1664_v18  ;;  %1496 = vmax.xlane.f32.xlu1 %v1495_v19 }
 0x33d   :  { %v4165_v22 = vpop.f32.mrf.mxu1 }
 0x33e   :  { %v4862_v23 = vsel %vm4841_vm13, -1e+30, %v1668_v21 }
 0x33f   :  { %v1670_v25 = vsel %vm424_vm11, %v4862_v23, -inf }
 0x340   :  { %1671 = vmax.xlane.f32.xlu0 %v1670_v25 }
 0x34d   :  { %793 = vrot.lane.b32.xlu1 %v4761_v24, %s4567_s30 }
 0x351   :  { %969 = vrot.lane.b32.xlu1 %v4761_v24, %s4568_s23 }
 0x356   :  { %617 = vrot.lane.b32.xlu0 %v4761_v24, %s4569_s1 }
 0x3ad   :  { %v427_v26 = vpop.xlane.xlu0 %426 }
 0x3ae   :  { %v428_v27 = vsub.f32 %v423_v48, %v427_v26 }
 0x3b0   :  { %v429_v28 = vmul.f32 1.442695, %v428_v27 }
 0x3b1   :  { %v606_v29 = vpop.xlane.xlu1 %605 }
 0x3b2   :  { %4353 = vpow2.f32 %v429_v28  ;;  %v607_v30 = vsub.f32 %v603_v53, %v606_v29 }
 0x3b4   :  { %v608_v31 = vmul.f32 1.442695, %v607_v30 }
 0x3b5   :  { %v782_v32 = vpop.xlane.xlu0 %781 }
 0x3b6   :  { %4355 = vpow2.f32 %v608_v31  ;;  %v783_v33 = vsub.f32 %v779_v59, %v782_v32  ;;  %v330_v59 = vmax.f32 %v4747_v20, 0.0 }
 0x3b8   :  { %v784_v34 = vmul.f32 1.442695, %v783_v33  ;;  %v1156_v45 = vrot.slane %v330_v59, 5  ;;  %v1859_v59 = vld [vmem:[%s5434_s12 + $0x18] sm:$0xff] }
 0x3b9   :  { %v958_v35 = vpop.xlane.xlu0 %957 }
 0x3ba   :  { %4357 = vpow2.f32 %v784_v34  ;;  %v959_v36 = vsub.f32 %v955_v0, %v958_v35  ;;  %v1157_v61 = vsel %vm1060_vm5, %v1155_v60, %v1156_v45  ;;  %v1858_v60 = vld [vmem:[%s5434_s12 + $0x10] sm:$0xff]  ;;  %v1857_v45 = vld [vmem:[%s5434_s12 + $0x8] sm:$0xff] }
 0x3bc   :  { %v960_v37 = vmul.f32 1.442695, %v959_v36 }
 0x3bd   :  { %v1143_v38 = vpop.xlane.xlu1 %1142 }
 0x3be   :  { %4359 = vpow2.f32 %v960_v37  ;;  %v1144_v39 = vsub.f32 %v1140_v6, %v1143_v38 }
 0x3bf   :  { %v4354_v40 = vpop.eup %4353 }
 0x3c0   :  { %v1145_v43 = vmul.f32 1.442695, %v1144_v39  ;;  %v4874_v44 = vsel %vm4819_vm10, 0.0, %v4354_v40 }
 0x3c1   :  { %v432_v46 = vsel %vm424_vm11, %v4874_v44, 0.0  ;;  %v1322_v62 = vpop.xlane.xlu0 %1321 }
 0x3c2   :  { %4361 = vpow2.f32 %v1145_v43  ;;  %433 = vadd.xlane.f32.xlu1 %v432_v46  ;;  %v1323_v63 = vsub.f32 %v4850_v11, %v1322_v62  ;;  %v4993_v62 = vld [vmem:[%s5460_s14] sm:$0x3f] }
 0x3c3   :  { %v4356_v47 = vpop.eup %4355 }
 0x3c4   :  { %v4880_v48 = vsel %vm4819_vm10, 0.0, %v4356_v47  ;;  %v1324_v4 = vmul.f32 1.442695, %v1323_v63 }
 0x3c5   :  { %v611_v49 = vsel %vm424_vm11, %v4880_v48, 0.0  ;;  %v1497_v0 = vpop.xlane.xlu1 %1496 }
 0x3c6   :  { %612 = vadd.xlane.f32.xlu0 %v611_v49  ;;  %v1498_v2 = vsub.f32 %v4856_v17, %v1497_v0  ;;  %4363 = vpow2.f32 %v1324_v4 }
 0x3c7   :  { %v4358_v50 = vpop.eup %4357 }
 0x3c8   :  { %v4886_v51 = vsel %vm4819_vm10, 0.0, %v4358_v50  ;;  %v1499_v20 = vmul.f32 1.442695, %v1498_v2 }
 0x3c9   :  { %v787_v52 = vsel %vm424_vm11, %v4886_v51, 0.0  ;;  %v1672_v1 = vpop.xlane.xlu0 %1671  ;;  %v794_v16 = vpop.permute.xlu1 %793 }
 0x3ca   :  { %788 = vadd.xlane.f32.xlu1 %v787_v52  ;;  %v1673_v5 = vsub.f32 %v4862_v23, %v1672_v1  ;;  %4365 = vpow2.f32 %v1499_v20 }
 0x3cb   :  { %v4360_v53 = vpop.eup %4359 }
 0x3cc   :  { %v4892_v54 = vsel %vm4819_vm10, 0.0, %v4360_v53  ;;  %v1674_v24 = vmul.f32 1.442695, %v1673_v5  ;;  %vm1977_vm10 = vcmask 56320  }
 0x3cd   :  { %v963_v55 = vsel %vm424_vm11, %v4892_v54, 0.0  ;;  %v970_v17 = vpop.permute.xlu1 %969  ;;  %v618_v18 = vpop.permute.xlu0 %617 }
 0x3ce   :  { %964 = vadd.xlane.f32.xlu0 %v963_v55  ;;  %4367 = vpow2.f32 %v1674_v24 }
 0x3cf   :  { %v4362_v56 = vpop.eup %4361 }
 0x3d0   :  { %v4898_v57 = vsel %vm4841_vm13, 0.0, %v4362_v56 }
 0x3d1   :  { %v1148_v58 = vsel %vm424_vm11, %v4898_v57, 0.0 }
 0x3d2   :  { %1149 = vadd.xlane.f32.xlu1 %v1148_v58 }
 0x3d3   :  { %v4364_v6 = vpop.eup %4363 }
 0x3d4   :  { %v4912_v8 = vsel %vm4841_vm13, 0.0, %v4364_v6 }
 0x3d5   :  { %v1327_v10 = vsel %vm424_vm11, %v4912_v8, 0.0 }
 0x3d7   :  { %v4366_v7 = vpop.eup %4365 }
 0x3d8   :  { %v4918_v11 = vsel %vm4841_vm13, 0.0, %v4366_v7 }
 0x3d9   :  { %v1502_v13 = vsel %vm424_vm11, %v4918_v11, 0.0 }
 0x3db   :  { %v4368_v9 = vpop.eup %4367 }
 0x3dc   :  { %v4922_v12 = vsel %vm4841_vm13, 0.0, %v4368_v9  ;;  %v1773_v9 = vld [vmem:[%s5433_s11 + $0x30] sm:$0xff] }
 0x3dd   :  { %v1677_v14 = vsel %vm424_vm11, %v4922_v12, 0.0 }
 0x3e3   :  { %1333 = vrot.lane.b32.xlu1 %v1157_v61, %s4569_s1 }
 0x3e4   :  { %1158 = vrot.lane.b32.xlu0 %v1157_v61, %s4566_s10 }
 0x403   :  { %1328 = vadd.xlane.f32.xlu0 %v1327_v10  ;;  %v1772_v10 = vld [vmem:[%s5433_s11 + $0x28] sm:$0xff] }
 0x407   :  { %1503 = vadd.xlane.f32.xlu1 %v1502_v13  ;;  %1678 = vadd.xlane.f32.xlu0 %v1677_v14  ;;  %v1769_v13 = vld [vmem:[%s5433_s11 + $0x10] sm:$0xff]  ;;  %v1768_v14 = vld [vmem:[%s5433_s11 + $0x8] sm:$0xff] }
 0x418   :  { %1683 = vrot.lane.b32.xlu1 %v1157_v61, %s4568_s23 }
 0x41d   :  { %1508 = vrot.lane.b32.xlu0 %v1157_v61, %s4567_s30  ;;  %v1856_v61 = vld [vmem:[%s5434_s12] sm:$0xff] }
 0x44b   :  { %v434_v19 = vpop.xlane.xlu1 %433 }
 0x44c   :  { %v435_v21 = vmax.f32 %v434_v19, 1e-30 }
 0x44e   :  { %4369 = vrcp.f32 %v435_v21 }
 0x44f   :  { %v613_v3 = vpop.xlane.xlu0 %612 }
 0x450   :  { %v614_v22 = vmax.f32 %v613_v3, 1e-30 }
 0x452   :  { %4371 = vrcp.f32 %v614_v22 }
 0x453   :  { %v789_v23 = vpop.xlane.xlu1 %788 }
 0x454   :  { %v790_v25 = vmax.f32 %v789_v23, 1e-30 }
 0x456   :  { %4373 = vrcp.f32 %v790_v25 }
 0x457   :  { %v965_v26 = vpop.xlane.xlu0 %964 }
 0x458   :  { %v966_v27 = vmax.f32 %v965_v26, 1e-30 }
 0x45a   :  { %4375 = vrcp.f32 %v966_v27 }
 0x45b   :  { %v4370_v28 = vpop.eup %4369  ;;  %v1150_v29 = vpop.xlane.xlu1 %1149 }
 0x45c   :  { %v1151_v30 = vmax.f32 %v1150_v29, 1e-30  ;;  %v437_v31 = vmul.f32 %v4370_v28, %v4874_v44  ;;  %v1159_v38 = vpop.permute.xlu0 %1158  ;;  %v3923_v29 = vld [vmem:[#allocation9] ss:$0 sm:$0xff] }
 0x45e   :  { %4377 = vrcp.f32 %v1151_v30  ;;  %4099 = vmatmul.mubr.msk.f32.vlgmr.msra.gmra.mxu0 %vm441_vm14, %v437_v31 }
 0x45f   :  { %v4372_v32 = vpop.eup %4371  ;;  %4107 = vmatpush3.msk.msra.mxu0 %vm445_vm7, %v618_v18  ;;  %4108 = vmatprep.mubr.msk.f32.mxu0 %vm4558_vm4, %v4557_v15  ;;  %v1334_v43 = vpop.permute.xlu1 %1333 }
 0x460   :  { %4116 = vmatprep.subr.mxu0 %v4557_v15  ;;  %v616_v33 = vmul.f32 %v4372_v32, %v4880_v48 }
 0x462   :  { %4109 = vmatmul.mubr.msk.f32.vlgmr.msra.gmra.mxu0 %vm441_vm14, %v616_v33 }
 0x463   :  { %v4374_v34 = vpop.eup %4373  ;;  %4117 = vmatpush3.msk.msra.mxu0 %vm445_vm7, %v794_v16  ;;  %4118 = vmatprep.mubr.msk.f32.mxu0 %vm4558_vm4, %v4557_v15 }
 0x464   :  { %4126 = vmatprep.subr.mxu0 %v4557_v15  ;;  %v792_v35 = vmul.f32 %v4374_v34, %v4886_v51 }
 0x466   :  { %4119 = vmatmul.mubr.msk.f32.vlgmr.msra.gmra.mxu0 %vm441_vm14, %v792_v35 }
 0x467   :  { %v4376_v36 = vpop.eup %4375  ;;  %4127 = vmatpush3.msk.msra.mxu0 %vm445_vm7, %v970_v17  ;;  %4128 = vmatprep.mubr.msk.f32.mxu0 %vm4558_vm4, %v4557_v15  ;;  %v1767_v17 = vld [vmem:[%s5433_s11] sm:$0xff] }
 0x468   :  { %4136 = vmatprep.subr.mxu0 %v4557_v15  ;;  %v968_v37 = vmul.f32 %v4376_v36, %v4892_v54 }
 0x46a   :  { %4129 = vmatmul.mubr.msk.f32.vlgmr.msra.gmra.mxu0 %vm441_vm14, %v968_v37  ;;  %v3921_v37 = vld [vmem:[#allocation8] ss:$0 sm:$0xff] }
 0x46b   :  { %v4378_v39 = vpop.eup %4377  ;;  %4137 = vmatpush3.msk.msra.mxu0 %vm445_vm7, %v1159_v38  ;;  %4138 = vmatprep.mubr.msk.f32.mxu0 %vm4558_vm4, %v4557_v15 }
 0x46c   :  { %4146 = vmatprep.subr.mxu0 %v4557_v15  ;;  %v1153_v40 = vmul.f32 %v4378_v39, %v4898_v57 }
 0x46e   :  { %4139 = vmatmul.mubr.msk.f32.vlgmr.msra.gmra.mxu0 %vm441_vm14, %v1153_v40 }
 0x46f   :  { %4147 = vmatpush3.msk.msra.mxu0 %vm445_vm7, %v1334_v43  ;;  %4148 = vmatprep.mubr.msk.f32.mxu0 %vm4558_vm4, %v4557_v15 }
 0x470   :  { %4156 = vmatprep.subr.mxu0 %v4557_v15 }
 0x48c   :  { %v1329_v44 = vpop.xlane.xlu0 %1328 }
 0x48d   :  { %v1330_v46 = vmax.f32 %v1329_v44, 1e-30 }
 0x48f   :  { %4379 = vrcp.f32 %v1330_v46 }
 0x490   :  { %v1504_v47 = vpop.xlane.xlu1 %1503  ;;  %v1679_v48 = vpop.xlane.xlu0 %1678 }
 0x491   :  { %v1505_v49 = vmax.f32 %v1504_v47, 1e-30  ;;  %v1680_v50 = vmax.f32 %v1679_v48, 1e-30 }
 0x493   :  { %4381 = vrcp.f32 %v1505_v49  ;;  %v4571_v49 = vmov 0  }
 0x494   :  { %4383 = vrcp.f32 %v1680_v50  ;;  %v1509_v53 = vpop.permute.xlu0 %1508  ;;  %v1684_v57 = vpop.permute.xlu1 %1683  ;;  %4351 = vset.pattern.permute.xlu0 %v4571_v49  ;;  %4352 = vset.pattern.permute.xlu1 %v4571_v49 }
 0x49c   :  { %v4380_v51 = vpop.eup %4379 }
 0x49d   :  { %v1332_v52 = vmul.f32 %v4380_v51, %v4912_v8  ;;  %v1774_v8 = vld [vmem:[%s5433_s11 + $0x38] sm:$0xff] }
 0x49e   :  { %4172 = vmatpush3.msra.mxu1 %v1774_v8  ;;  %v2057_v8 = vld [vmem:[%s5438_s16 + $0x8] sm:$0xff] }
 0x49f   :  { %4149 = vmatmul.mubr.msk.f32.vlgmr.msra.gmra.mxu0 %vm441_vm14, %v1332_v52  ;;  %4173 = vmatprep.subr.mxu1 %v4557_v15 }
 0x4a0   :  { %v4382_v54 = vpop.eup %4381  ;;  %4157 = vmatpush3.msk.msra.mxu0 %vm445_vm7, %v1509_v53  ;;  %4158 = vmatprep.mubr.msk.f32.mxu0 %vm4558_vm4, %v4557_v15 }
 0x4a1   :  { %4166 = vmatprep.subr.mxu0 %v4557_v15  ;;  %v1507_v55 = vmul.f32 %v4382_v54, %v4918_v11  ;;  %v4384_v56 = vpop.eup %4383  ;;  %4174 = vmatpush3.msra.mxu1 %v1773_v9  ;;  %v1771_v11 = vld [vmem:[%s5433_s11 + $0x20] sm:$0xff] }
 0x4a2   :  { %v1682_v58 = vmul.f32 %v4384_v56, %v4922_v12  ;;  %4175 = vmatprep.subr.mxu1 %v4557_v15  ;;  %v1770_v12 = vld [vmem:[%s5433_s11 + $0x18] sm:$0xff]  ;;  %v1976_v54 = vld [vmem:[%s5437_s15] sm:$0x7f] }
 0x4a3   :  { %4159 = vmatmul.mubr.msk.f32.vlgmr.msra.gmra.mxu0 %vm441_vm14, %v1507_v55  ;;  %4176 = vmatpush3.msra.mxu1 %v1772_v10  ;;  %v1975_v55 = vld [vmem:[%s5462_s26] sm:$0x3f] }
 0x4a4   :  { %4167 = vmatpush3.msk.msra.mxu0 %vm445_vm7, %v1684_v57  ;;  %4168 = vmatprep.mubr.msk.f32.mxu0 %vm4558_vm4, %v4557_v15  ;;  %vm1782_vm7 = vcmask 523264   ;;  %v2056_v9 = vld [vmem:[%s5438_s16] sm:$0xff] }
 0x4a5   :  { %4190 = vmatprep.subr.mxu0 %v4557_v15  ;;  %4177 = vmatprep.subr.mxu1 %v4557_v15 }
 0x4a6   :  { %4178 = vmatpush3.msra.mxu1 %v1771_v11 }
 0x4a7   :  { %4169 = vmatmul.mubr.msk.f32.vlgmr.msra.gmra.mxu0 %vm441_vm14, %v1682_v58  ;;  %4179 = vmatprep.subr.mxu1 %v4557_v15  ;;  %v333_v58 = vld [vmem:[%s5463_s4] sm:$0x3]  ;;  %vm2227_vm14 = vcmp.gt.s32.totalorder %v4809_v42, %v4807_v41 }
 0x4a8   :  { %4198 = vmatprep.mubr.msk.f32.mxu0 %vm4558_vm4, %v4557_v15  ;;  %4191 = vmatpush3.msra.mxu0 %v1859_v59  ;;  %vm2228_vm11 = vcmp.gt.f32.partialorder %v333_v58, 0.5  ;;  %v2944_v59 = vsub.s32 1, %v4807_v41 }
 0x4a9   :  { %4192 = vmatprep.subr.mxu0 %v4557_v15  ;;  %4180 = vmatpush3.msra.mxu1 %v1770_v12 }
 0x4aa   :  { %4193 = vmatpush3.msra.mxu0 %v1858_v60  ;;  %4181 = vmatprep.subr.mxu1 %v4557_v15 }
 0x4ab   :  { %4194 = vmatprep.subr.mxu0 %v4557_v15  ;;  %4182 = vmatpush3.msra.mxu1 %v1769_v13 }
 0x4ac   :  { %4195 = vmatpush3.msra.mxu0 %v1857_v45  ;;  %4183 = vmatprep.subr.mxu1 %v4557_v15  ;;  %v5079_v45 = vsel %vm2228_vm11, 1, %v4571_v49  ;;  %vm2332_vm11 = vcmask 23552  }
 0x4ad   :  { %4196 = vmatprep.subr.mxu0 %v4557_v15  ;;  %4184 = vmatpush3.msra.mxu1 %v1768_v14 }
 0x4ae   :  { %4197 = vmatpush3.msra.mxu0 %v1856_v61  ;;  %4185 = vmatprep.subr.mxu1 %v4557_v15  ;;  %v2945_v61 = vrot.slane %v5079_v45, %v2944_v59 }
 0x4af   :  { %4199 = vmatmul.mubr.msk.f32.vlgmr.msra.gmra.mxu0 %vm247_vm3, %v4993_v62  ;;  %4201 = vmatprep.subr.mxu0 %v4557_v15 }
 0x4b0   :  { %4203 = vmatprep.mubr.msk.f32.mxu0 %vm4558_vm4, %v4557_v15  ;;  %4186 = vmatpush3.msra.mxu1 %v1767_v17  ;;  %vm2946_vm13 = vcmp.eq.s32.totalorder %v2945_v61, 1 }
 0x4b1   :  { %4217 = vmatprep.subr.mxu1 %v4557_v15  ;;  %4202 = vmatpush3.msk.msra.mxu0 %vm1981_vm9, %v1976_v54  ;;  %vm2315_vm9 = vcmask 18432  }
 0x4b2   :  { %4206 = vmatprep.subr.mxu0 %v4557_v15 }
 0x4b3   :  { %4204 = vmatmul.mubr.msk.f32.vlgmr.msra.gmra.mxu0 %vm1977_vm10, %v1975_v55 }
 0x4b4   :  { %4214 = vmatprep.mubr.msk.f32.mxu0 %vm4558_vm4, %v4557_v15 }
 0x51e   :  { %v514_v63 = vpop.f32.mrf.mxu0 }
 0x51f   :  { %519 = vrot.lane.b32.xlu0 %v514_v63, %s4570_s19 }
 0x520   :  { %v4100_v0 = vpop.f32.mrf.mxu0 }
 0x522   :  { %v690_v1 = vpop.f32.mrf.mxu0 }
 0x523   :  { %695 = vrot.lane.b32.xlu0 %v690_v1, %s4568_s23  ;;  %v2145_v1 = vld [vmem:[%s5440_s18 + $0x18] sm:$0xff] }
 0x524   :  { %v4110_v2 = vpop.f32.mrf.mxu0 }
 0x525   :  { %v2144_v2 = vld [vmem:[%s5440_s18 + $0x10] sm:$0xff] }
 0x526   :  { %v866_v4 = vpop.f32.mrf.mxu0 }
 0x527   :  { %871 = vrot.lane.b32.xlu0 %v866_v4, %s4567_s30  ;;  %v2059_v4 = vld [vmem:[%s5438_s16 + $0x18] sm:$0xff] }
 0x528   :  { %v4120_v5 = vpop.f32.mrf.mxu0  ;;  %4207 = vmatpush3.msra.mxu0 %v2059_v4 }
 0x529   :  { %v2143_v5 = vld [vmem:[%s5440_s18 + $0x8] sm:$0xff]  ;;  %4208 = vmatprep.subr.mxu0 %v4557_v15 }
 0x52a   :  { %v1042_v20 = vpop.f32.mrf.mxu0 }
 0x52b   :  { %1047 = vrot.lane.b32.xlu0 %v1042_v20, %s4569_s1  ;;  %v2058_v20 = vld [vmem:[%s5438_s16 + $0x10] sm:$0xff] }
 0x52c   :  { %v4130_v24 = vpop.f32.mrf.mxu0  ;;  %4209 = vmatpush3.msra.mxu0 %v2058_v20 }
 0x52d   :  { %4210 = vmatprep.subr.mxu0 %v4557_v15 }
 0x52e   :  { %v1231_v6 = vpop.f32.mrf.mxu0  ;;  %4211 = vmatpush3.msra.mxu0 %v2057_v8 }
 0x52f   :  { %1236 = vrot.lane.b32.xlu1 %v1231_v6, %s4570_s19  ;;  %4212 = vmatprep.subr.mxu0 %v4557_v15  ;;  %v3645_v6 = vld [vmem:[%s5442_s20] sm:$0xff]  ;;  %s4572_s20 = smov 8  }
 0x530   :  { %v4140_v7 = vpop.f32.mrf.mxu0  ;;  %4213 = vmatpush3.msra.mxu0 %v2056_v9 }
 0x531   :  { %v2142_v7 = vld [vmem:[%s5440_s18] sm:$0xff]  ;;  %4228 = vmatprep.subr.mxu0 %v4557_v15 }
 0x55f   :  { %v1406_v16 = vpop.f32.mrf.mxu0 }
 0x560   :  { %1411 = vrot.lane.b32.xlu1 %v1406_v16, %s4568_s23  ;;  %s5461_s23 = sld [smem:[#allocation23_spill]] }
 0x561   :  { %v4150_v18 = vpop.f32.mrf.mxu0 }
 0x563   :  { %v1581_v19 = vpop.f32.mrf.mxu0 }
 0x564   :  { %1586 = vrot.lane.b32.xlu1 %v1581_v19, %s4567_s30 }
 0x565   :  { %v4160_v21 = vpop.f32.mrf.mxu0 }
 0x566   :  { %v5051_v48 = vld [vmem:[%s5461_s23] sm:$0x3f] }
 0x567   :  { %v1756_v3 = vpop.f32.mrf.mxu0  ;;  %vm332_vm8 = vcmp.gt.f32.partialorder %v5051_v48, 0.5 }
 0x568   :  { %1761 = vrot.lane.b32.xlu1 %v1756_v3, %s4569_s1  ;;  %v1969_v50 = vsel %vm332_vm8, 1, %v4571_v49  ;;  %v3930_v3 = vld [vmem:[#allocation12] ss:$0 sm:$0xff] }
 0x569   :  { %v4170_v22 = vpop.f32.mrf.mxu0 }
 0x56f   :  { %v1936_v30 = vpop.f32.mrf.mxu0 }
 0x570   :  { %v1937_v31 = vadd.f32 %v3923_v29, %v1936_v30 }
 0x571   :  { %v4200_v32 = vpop.f32.mrf.mxu0 }
 0x572   :  { %1948 = vrot.lane.b32.xlu0 %v1937_v31, %s4566_s10 }
 0x573   :  { %v2051_v10 = vpop.f32.mrf.mxu0 }
 0x574   :  { %v2055_v11 = vmax.f32 %v2051_v10, 0.0 }
 0x575   :  { %v4205_v12 = vpop.f32.mrf.mxu0 }
 0x576   :  { %1971 = vperm.xlu0 %4351, %v1969_v50  }
 0x591   :  { %v520_v23 = vpop.permute.xlu0 %519 }
 0x592   :  { %523 = vst.msk [vmem:[#allocation2] sm:$0x7] %vm522_vm15, %v520_v23 }
 0x595   :  { %v696_v25 = vpop.permute.xlu0 %695 }
 0x596   :  { %699 = vst.msk [vmem:[#allocation2] sm:$0x7] %vm698_vm0, %v696_v25 }
 0x599   :  { %v872_v26 = vpop.permute.xlu0 %871 }
 0x59a   :  { %875 = vst.msk [vmem:[#allocation2] sm:$0x7] %vm874_vm1, %v872_v26 }
 0x59d   :  { %v1048_v27 = vpop.permute.xlu0 %1047 }
 0x59e   :  { %1051 = vst.msk [vmem:[#allocation2] sm:$0x7] %vm1050_vm2, %v1048_v27  ;;  %v3928_v27 = vld [vmem:[#allocation11] ss:$0 sm:$0xff] }
 0x5a1   :  { %v1237_v28 = vpop.permute.xlu1 %1236 }
 0x5a2   :  { %1239 = vst.msk [vmem:[#allocation2 + $0x3] sm:$0x7] %vm522_vm15, %v1237_v28 }
 0x5d2   :  { %v1412_v33 = vpop.permute.xlu1 %1411 }
 0x5d3   :  { %1414 = vst.msk [vmem:[#allocation2 + $0x3] sm:$0x7] %vm698_vm0, %v1412_v33 }
 0x5d6   :  { %v1587_v34 = vpop.permute.xlu1 %1586 }
 0x5d7   :  { %1589 = vst.msk [vmem:[#allocation2 + $0x3] sm:$0x7] %vm874_vm1, %v1587_v34 }
 0x5da   :  { %v1762_v35 = vpop.permute.xlu1 %1761 }
 0x5db   :  { %1764 = vst.msk [vmem:[#allocation2 + $0x3] sm:$0x7] %vm1050_vm2, %v1762_v35 }
 0x5e2   :  { %v1765_v36 = vld [vmem:[#allocation2] sm:$0x3f] }
 0x5e3   :  { %4188 = vmatmul.mubr.msk.f32.vlgmr.msra.gmra.mxu1 %vm1782_vm7, %v1765_v36 }
 0x5e4   :  { %4225 = vmatprep.mubr.msk.f32.mxu1 %vm4558_vm4, %v4557_v15  ;;  %v1949_v51 = vpop.permute.xlu0 %1948  ;;  %4218 = vmatpush3.msra.mxu1 %v2145_v1 }
 0x5e5   :  { %4219 = vmatprep.subr.mxu1 %v4557_v15 }
 0x5e6   :  { %4220 = vmatpush3.msra.mxu1 %v2144_v2 }
 0x5e7   :  { %4221 = vmatprep.subr.mxu1 %v4557_v15 }
 0x5e8   :  { %4222 = vmatpush3.msra.mxu1 %v2143_v5 }
 0x5e9   :  { %4223 = vmatprep.subr.mxu1 %v4557_v15 }
 0x5ea   :  { %4224 = vmatpush3.msra.mxu1 %v2142_v7 }
 0x5eb   :  { %4233 = vmatprep.subr.mxu1 %v4557_v15  ;;  %4226 = vmatmul.mubr.msk.f32.vlgmr.msra.gmra.mxu1 %vm247_vm3, %v2055_v11 }
 0x5ec   :  { %4235 = vmatprep.mubr.msk.f32.mxu1 %vm4558_vm4, %v4557_v15 }
 0x5f1   :  { %v5076_v60 = vpop.permute.xlu0 %1971 }
 0x5f2   :  { %vm1973_vm12 = vcmp.eq.s32.totalorder %v5076_v60, 1 }
 0x5f3   :  { %v2938_v63 = vsel %vm1973_vm12, 1, %v4571_v49  ;;  %vm2229_vm7 = vmor %vm2227_vm14, %vm1973_vm12 }
 0x5f4   :  { %v2939_v0 = vrot.slane %v2938_v63, 3 }
 0x5f6   :  { %vm2940_vm15 = vcmp.ne.s32.totalorder %v2939_v0, 0 }
 0x5f7   :  { %vm2941_vm0 = vmor %vm2227_vm14, %vm2940_vm15  ;;  %vm2584_vm15 = vcmask 124992  }
 0x5f8   :  { %vm5109_vm1 = vmor %vm2941_vm0, %vm2946_vm13  ;;  %vm2760_vm0 = vcmask 190592  }
 0x6a3   :  { %v1852_v38 = vpop.f32.mrf.mxu1 }
 0x6a4   :  { %v1853_v39 = vadd.f32 %v3921_v37, %v1852_v38 }
 0x6a5   :  { %v4189_v40 = vpop.f32.mrf.mxu1 }
 0x6a6   :  { %v1940_v43 = vadd.f32 %v1937_v31, %v1853_v39 }
 0x6a8   :  { %v3925_v44 = vmul.f32 -1.442695, %v1940_v43 }
 0x6aa   :  { %4385 = vpow2.f32 %v3925_v44 }
 0x6ab   :  { %v2222_v22 = vpop.f32.mrf.mxu1 }
 0x6ac   :  { %v5144_v23 = vadd.f32 %v3930_v3, %v2222_v22 }
 0x6ad   :  { %v4227_v25 = vpop.f32.mrf.mxu1 }
 0x6ae   :  { %v2949_v26 = vrot.slane %v5144_v23, 3 }
 0x6b7   :  { %v4386_v46 = vpop.eup %4385 }
 0x6b8   :  { %v1944_v47 = vadd.f32 1.0, %v4386_v46 }
 0x6ba   :  { %4387 = vrcp.f32 %v1944_v47  ;;  %v2233_v47 = vsub.s32 0, %v4807_v41 }
 0x6bc   :  { %v2234_v50 = vrot.slane %v5079_v45, %v2233_v47 }
 0x6be   :  { %vm2235_vm2 = vcmp.eq.s32.totalorder %v2234_v50, 1 }
 0x6bf   :  { %vm5219_vm10 = vmor %vm2229_vm7, %vm2235_vm2  ;;  %vm3837_vm2 = vcmask 193680   ;;  %vm3842_vm7 = vcmask 455872  }
 0x6c7   :  { %v5059_v52 = vpop.eup %4387 }
 0x6c8   :  { %v1951_v53 = vmul.f32 %v5059_v52, %v1949_v51  ;;  %v1958_v14 = vsub.f32 1.0, %v5059_v52 }
 0x6ca   :  { %1953 = vrot.lane.b32.xlu1 %v1951_v53, %s4566_s10 }
 0x73c   :  { %v1954_v56 = vpop.permute.xlu1 %1953 }
 0x73d   :  { %v1956_v57 = vadd.f32 %v1954_v56, %v1853_v39 }
 0x73f   :  { %4389 = vtanh.f32 %v1956_v57 }
 0x74c   :  { %v4390_v24 = vpop.eup %4389 }
 0x74d   :  { %1960 = vrot.lane.b32.xlu1 %v4390_v24, %s4560_s2 }
 0x751   :  { %1964 = vrot.lane.b32.xlu1 %v4993_v62, %s4570_s19 }
 0x755   :  { %2412 = vrot.lane.b32.xlu1 %v5144_v23, %s4559_s9 }
 0x759   :  { %2588 = vrot.lane.b32.xlu1 %v5144_v23, %s4564_s29 }
 0x75d   :  { %2764 = vrot.lane.b32.xlu1 %v5144_v23, %s4565_s17 }
 0x761   :  { %3120 = vrot.lane.b32.xlu1 %v2949_v26, %s4559_s9 }
 0x765   :  { %3295 = vrot.lane.b32.xlu1 %v2949_v26, %s4564_s29 }
 0x769   :  { %3470 = vrot.lane.b32.xlu1 %v2949_v26, %s4565_s17 }
 0x7bf   :  { %v1961_v13 = vpop.permute.xlu1 %1960 }
 0x7c0   :  { %v1963_v62 = vmul.f32 %v1961_v13, %v1958_v14 }
 0x7c3   :  { %v1965_v16 = vpop.permute.xlu1 %1964 }
 0x7c4   :  { %v1967_v17 = vmul.f32 %v5059_v52, %v1965_v16 }
 0x7c6   :  { %v1968_v18 = vadd.f32 %v1967_v17, %v1963_v62 }
 0x7c7   :  { %v2413_v31 = vpop.permute.xlu1 %2412 }
 0x7c8   :  { %v5137_v19 = vsel %vm1973_vm12, 0.0, %v1968_v18 }
 0x7c9   :  { %2068 = vrot.lane.b32.xlu0 %v5137_v19, %s4560_s2 }
 0x7cb   :  { %v2589_v33 = vpop.permute.xlu1 %2588 }
 0x7cf   :  { %v2765_v35 = vpop.permute.xlu1 %2764 }
 0x7d3   :  { %v3121_v38 = vpop.permute.xlu1 %3120 }
 0x7d7   :  { %v3296_v40 = vpop.permute.xlu1 %3295 }
 0x7db   :  { %v3471_v44 = vpop.permute.xlu1 %3470 }
 0x83b   :  { %v2069_v21 = vpop.permute.xlu0 %2068 }
 0x83c   :  { %4215 = vmatmul.mubr.msk.f32.vlgmr.msra.gmra.mxu0 %vm247_vm3, %v2069_v21 }
 0x83d   :  { %4230 = vmatprep.mubr.msk.f32.mxu0 %vm4558_vm4, %v4557_v15  ;;  %4229 = vmatpush3.xpose.msk.msra.mxu0 %vm347_vm6, %v5144_v23 }
 0x83e   :  { %4238 = vmatprep.subr.mxu0 %v4557_v15 }
 0x8fc   :  { %v2138_v28 = vpop.f32.mrf.mxu0 }
 0x8fd   :  { %v5159_v29 = vadd.f32 %v3928_v27, %v2138_v28  ;;  %v2226_v28 = vmax.f32 %v5144_v23, 0.0 }
 0x8fe   :  { %v4216_v30 = vpop.f32.mrf.mxu0 }
 0x8ff   :  { %2410 = vrot.lane.b32.xlu0 %v5159_v29, %s4559_s9  ;;  %4231 = vmatmul.mubr.msk.f32.vlgmr.msra.gmra.mxu0 %vm347_vm6, %v5159_v29  ;;  %v2948_v32 = vrot.slane %v5159_v29, 3 }
 0x900   :  { %4239 = vmatpush3.xpose.msk.msra.mxu0 %vm347_vm6, %v2413_v31  ;;  %4240 = vmatprep.mubr.msk.f32.mxu0 %vm4558_vm4, %v4557_v15 }
 0x901   :  { %4248 = vmatprep.subr.mxu0 %v4557_v15 }
 0x903   :  { %2586 = vrot.lane.b32.xlu0 %v5159_v29, %s4564_s29 }
 0x907   :  { %2762 = vrot.lane.b32.xlu0 %v5159_v29, %s4565_s17 }
 0x90b   :  { %3118 = vrot.lane.b32.xlu0 %v2948_v32, %s4559_s9 }
 0x90f   :  { %3293 = vrot.lane.b32.xlu0 %v2948_v32, %s4564_s29 }
 0x913   :  { %3468 = vrot.lane.b32.xlu0 %v2948_v32, %s4565_s17 }
 0x971   :  { %v2411_v34 = vpop.permute.xlu0 %2410 }
 0x972   :  { %4241 = vmatmul.mubr.msk.f32.vlgmr.msra.gmra.mxu0 %vm347_vm6, %v2411_v34 }
 0x973   :  { %4249 = vmatpush3.xpose.msk.msra.mxu0 %vm347_vm6, %v2589_v33  ;;  %4250 = vmatprep.mubr.msk.f32.mxu0 %vm4558_vm4, %v4557_v15 }
 0x974   :  { %4258 = vmatprep.subr.mxu0 %v4557_v15 }
 0x975   :  { %v2587_v36 = vpop.permute.xlu0 %2586 }
 0x976   :  { %4251 = vmatmul.mubr.msk.f32.vlgmr.msra.gmra.mxu0 %vm347_vm6, %v2587_v36 }
 0x977   :  { %4259 = vmatpush3.xpose.msk.msra.mxu0 %vm347_vm6, %v2765_v35  ;;  %4260 = vmatprep.mubr.msk.f32.mxu0 %vm4558_vm4, %v4557_v15 }
 0x978   :  { %4268 = vmatprep.subr.mxu0 %v4557_v15 }
 0x979   :  { %v2763_v37 = vpop.permute.xlu0 %2762 }
 0x97a   :  { %4261 = vmatmul.mubr.msk.f32.vlgmr.msra.gmra.mxu0 %vm347_vm6, %v2763_v37 }
 0x97b   :  { %4269 = vmatpush3.xpose.msk.msra.mxu0 %vm347_vm6, %v2949_v26  ;;  %4270 = vmatprep.mubr.msk.f32.mxu0 %vm4558_vm4, %v4557_v15 }
 0x97c   :  { %4278 = vmatprep.subr.mxu0 %v4557_v15 }
 0x97d   :  { %v3119_v39 = vpop.permute.xlu0 %3118 }
 0x97e   :  { %4271 = vmatmul.mubr.msk.f32.vlgmr.msra.gmra.mxu0 %vm347_vm6, %v2948_v32 }
 0x97f   :  { %4279 = vmatpush3.xpose.msk.msra.mxu0 %vm347_vm6, %v3121_v38  ;;  %4280 = vmatprep.mubr.msk.f32.mxu0 %vm4558_vm4, %v4557_v15 }
 0x980   :  { %4288 = vmatprep.subr.mxu0 %v4557_v15 }
 0x981   :  { %v3294_v43 = vpop.permute.xlu0 %3293 }
 0x982   :  { %4281 = vmatmul.mubr.msk.f32.vlgmr.msra.gmra.mxu0 %vm347_vm6, %v3119_v39 }
 0x983   :  { %4289 = vmatpush3.xpose.msk.msra.mxu0 %vm347_vm6, %v3296_v40  ;;  %4290 = vmatprep.mubr.msk.f32.mxu0 %vm4558_vm4, %v4557_v15 }
 0x984   :  { %4298 = vmatprep.subr.mxu0 %v4557_v15 }
 0x985   :  { %v3469_v46 = vpop.permute.xlu0 %3468 }
 0x986   :  { %4291 = vmatmul.mubr.msk.f32.vlgmr.msra.gmra.mxu0 %vm347_vm6, %v3294_v43 }
 0x987   :  { %4299 = vmatpush3.xpose.msk.msra.mxu0 %vm347_vm6, %v3471_v44  ;;  %4300 = vmatprep.mubr.msk.f32.mxu0 %vm4558_vm4, %v4557_v15 }
 0x988   :  { %4308 = vmatprep.subr.mxu0 %v4557_v15 }
 0x98a   :  { %4301 = vmatmul.mubr.msk.f32.vlgmr.msra.gmra.mxu0 %vm347_vm6, %v3469_v46 }
 0x98b   :  { %4310 = vmatprep.mubr.msk.f32.mxu0 %vm4558_vm4, %v4557_v15  ;;  %4309 = vmatpush3.msra.mxu0 %v3645_v6 }
 0x9bf   :  { %v2309_v51 = vpop.f32.mrf.mxu0 }
 0x9c0   :  { %v2313_v52 = vmul.f32 0.35355338, %v2309_v51 }
 0x9c1   :  { %v4232_v54 = vpop.f32.mrf.mxu0 }
 0x9c2   :  { %v2314_v55 = vsel %vm5219_vm10, -1e+30, %v2313_v52 }
 0x9c3   :  { %v2316_v56 = vsel %vm2315_vm9, %v2314_v55, -inf }
 0x9c4   :  { %2317 = vmax.xlane.f32.xlu1 %v2316_v56 }
 0xa32   :  { %v2484_v57 = vpop.f32.mrf.mxu0 }
 0xa33   :  { %v2488_v58 = vmul.f32 0.35355338, %v2484_v57 }
 0xa34   :  { %v4242_v59 = vpop.f32.mrf.mxu0 }
 0xa35   :  { %v2489_v42 = vsel %vm5219_vm10, -1e+30, %v2488_v58 }
 0xa36   :  { %v2660_v45 = vpop.f32.mrf.mxu0  ;;  %v2490_v61 = vsel %vm2315_vm9, %v2489_v42, -inf }
 0xa37   :  { %v2664_v63 = vmul.f32 0.35355338, %v2660_v45  ;;  %2491 = vmax.xlane.f32.xlu0 %v2490_v61 }
 0xa38   :  { %v4252_v0 = vpop.f32.mrf.mxu0 }
 0xa39   :  { %v2665_v1 = vsel %vm5219_vm10, -1e+30, %v2664_v63 }
 0xa3a   :  { %v2836_v2 = vpop.f32.mrf.mxu0  ;;  %v2666_v4 = vsel %vm2315_vm9, %v2665_v1, -inf }
 0xa3b   :  { %v2840_v5 = vmul.f32 0.35355338, %v2836_v2  ;;  %2667 = vmax.xlane.f32.xlu0 %v2666_v4 }
 0xa3c   :  { %v4262_v20 = vpop.f32.mrf.mxu0 }
 0xa3d   :  { %v5234_v24 = vsel %vm5219_vm10, -1e+30, %v2840_v5 }
 0xa3e   :  { %v3020_v7 = vpop.f32.mrf.mxu0  ;;  %v2842_v8 = vsel %vm2315_vm9, %v5234_v24, -inf }
 0xa3f   :  { %v3024_v9 = vmul.f32 0.35355338, %v3020_v7  ;;  %2843 = vmax.xlane.f32.xlu1 %v2842_v8 }
 0xa40   :  { %v4272_v10 = vpop.f32.mrf.mxu0 }
 0xa41   :  { %v5240_v11 = vsel %vm5109_vm1, -1e+30, %v3024_v9 }
 0xa42   :  { %v3192_v12 = vpop.f32.mrf.mxu0  ;;  %v3026_v13 = vsel %vm2315_vm9, %v5240_v11, -inf }
 0xa43   :  { %v3196_v14 = vmul.f32 0.35355338, %v3192_v12  ;;  %3027 = vmax.xlane.f32.xlu0 %v3026_v13 }
 0xa44   :  { %v4282_v16 = vpop.f32.mrf.mxu0 }
 0xa45   :  { %v3197_v62 = vsel %vm5109_vm1, -1e+30, %v3196_v14 }
 0xa46   :  { %v3367_v17 = vpop.f32.mrf.mxu0  ;;  %v3198_v18 = vsel %vm2315_vm9, %v3197_v62, -inf }
 0xa47   :  { %v3371_v21 = vmul.f32 0.35355338, %v3367_v17  ;;  %3199 = vmax.xlane.f32.xlu1 %v3198_v18 }
 0xa48   :  { %v4292_v3 = vpop.f32.mrf.mxu0 }
 0xa49   :  { %v3372_v22 = vsel %vm5109_vm1, -1e+30, %v3371_v21 }
 0xa4a   :  { %v3542_v25 = vpop.f32.mrf.mxu0  ;;  %v3373_v26 = vsel %vm2315_vm9, %v3372_v22, -inf }
 0xa4b   :  { %3374 = vmax.xlane.f32.xlu0 %v3373_v26  ;;  %v3546_v33 = vmul.f32 0.35355338, %v3542_v25 }
 0xa4c   :  { %v4302_v27 = vpop.f32.mrf.mxu0 }
 0xa4d   :  { %v2318_v30 = vpop.xlane.xlu1 %2317  ;;  %v3547_v34 = vsel %vm5109_vm1, -1e+30, %v3546_v33  ;;  %v3644_v33 = vld [vmem:[%s5468_s28] sm:$0x3f] }
 0xa4e   :  { %v2319_v31 = vsub.f32 %v2314_v55, %v2318_v30  ;;  %v3548_v36 = vsel %vm2315_vm9, %v3547_v34, -inf  ;;  %4311 = vmatmul.mubr.msk.f32.vlgmr.msra.gmra.mxu0 %vm347_vm6, %v3644_v33  ;;  %vm2408_vm6 = vcmask 59392  }
 0xa50   :  { %v2320_v32 = vmul.f32 1.442695, %v2319_v31 }
 0xa52   :  { %4391 = vpow2.f32 %v2320_v32 }
 0xa58   :  { %2503 = vrot.lane.b32.xlu1 %v2226_v28, %s4562_s13 }
 0xa5f   :  { %v4392_v35 = vpop.eup %4391 }
 0xa60   :  { %v5258_v37 = vsel %vm5219_vm10, 0.0, %v4392_v35 }
 0xa61   :  { %2330 = vrot.lane.b32.xlu0 %v2226_v28, %s4560_s2  ;;  %v2323_v23 = vsel %vm2315_vm9, %v5258_v37, 0.0 }
 0xa7c   :  { %3549 = vmax.xlane.f32.xlu1 %v3548_v36 }
 0xa80   :  { %2324 = vadd.xlane.f32.xlu0 %v2323_v23 }
 0xa8d   :  { %2679 = vrot.lane.b32.xlu1 %v2226_v28, %s4561_s27 }
 0xac0   :  { %v2492_v38 = vpop.xlane.xlu0 %2491 }
 0xac1   :  { %v2493_v39 = vsub.f32 %v2489_v42, %v2492_v38  ;;  %v3039_v42 = vrot.slane %v2226_v28, 3 }
 0xac3   :  { %v2494_v40 = vmul.f32 1.442695, %v2493_v39 }
 0xac4   :  { %v2668_v43 = vpop.xlane.xlu0 %2667 }
 0xac5   :  { %4393 = vpow2.f32 %v2494_v40  ;;  %v2669_v44 = vsub.f32 %v2665_v1, %v2668_v43 }
 0xac7   :  { %v2670_v46 = vmul.f32 1.442695, %v2669_v44 }
 0xac8   :  { %v2844_v45 = vpop.xlane.xlu1 %2843 }
 0xac9   :  { %4395 = vpow2.f32 %v2670_v46  ;;  %v2845_v61 = vsub.f32 %v5234_v24, %v2844_v45 }
 0xacb   :  { %v2846_v1 = vmul.f32 1.442695, %v2845_v61 }
 0xacc   :  { %v3028_v50 = vpop.xlane.xlu0 %3027 }
 0xacd   :  { %v3029_v0 = vsub.f32 %v5240_v11, %v3028_v50  ;;  %4397 = vpow2.f32 %v2846_v1 }
 0xacf   :  { %v3030_v4 = vmul.f32 1.442695, %v3029_v0 }
 0xad0   :  { %v3200_v63 = vpop.xlane.xlu1 %3199 }
 0xad1   :  { %v3201_v2 = vsub.f32 %v3197_v62, %v3200_v63  ;;  %4399 = vpow2.f32 %v3030_v4 }
 0xad2   :  { %v4394_v51 = vpop.eup %4393 }
 0xad3   :  { %v5265_v52 = vsel %vm5219_vm10, 0.0, %v4394_v51  ;;  %v3202_v5 = vmul.f32 1.442695, %v3201_v2 }
 0xad4   :  { %v3375_v54 = vpop.xlane.xlu0 %3374  ;;  %v2497_v55 = vsel %vm2315_vm9, %v5265_v52, 0.0  ;;  %v2504_v8 = vpop.permute.xlu1 %2503 }
 0xad5   :  { %2498 = vadd.xlane.f32.xlu1 %v2497_v55  ;;  %v3376_v20 = vsub.f32 %v3372_v22, %v3375_v54  ;;  %4401 = vpow2.f32 %v3202_v5 }
 0xad6   :  { %v4396_v56 = vpop.eup %4395 }
 0xad7   :  { %v5271_v57 = vsel %vm5219_vm10, 0.0, %v4396_v56  ;;  %v3377_v7 = vmul.f32 1.442695, %v3376_v20 }
 0xad8   :  { %v2331_v58 = vpop.permute.xlu0 %2330  ;;  %v2673_v59 = vsel %vm2315_vm9, %v5271_v57, 0.0 }
 0xad9   :  { %2674 = vadd.xlane.f32.xlu0 %v2673_v59  ;;  %4234 = vmatpush3.msk.msra.mxu1 %vm1060_vm5, %v2331_v58  ;;  %4403 = vpow2.f32 %v3377_v7 }
 0xada   :  { %4243 = vmatprep.subr.mxu1 %v4557_v15  ;;  %v4398_v9 = vpop.eup %4397 }
 0xadb   :  { %v5283_v13 = vsel %vm5219_vm10, 0.0, %v4398_v9  ;;  %vm3872_vm10 = vcmask 95283  }
 0xadc   :  { %v2849_v62 = vsel %vm2315_vm9, %v5283_v13, 0.0 }
 0xade   :  { %v4400_v12 = vpop.eup %4399 }
 0xadf   :  { %v5289_v18 = vsel %vm5109_vm1, 0.0, %v4400_v12 }
 0xae0   :  { %v3033_v3 = vsel %vm2315_vm9, %v5289_v18, 0.0 }
 0xae2   :  { %v4402_v11 = vpop.eup %4401 }
 0xae3   :  { %v5293_v21 = vsel %vm5109_vm1, 0.0, %v4402_v11 }
 0xae4   :  { %v3205_v22 = vsel %vm2315_vm9, %v5293_v21, 0.0 }
 0xae6   :  { %3040 = vrot.lane.b32.xlu1 %v3039_v42, %s4560_s2  ;;  %v4404_v53 = vpop.eup %4403 }
 0xae7   :  { %v5301_v25 = vsel %vm5109_vm1, 0.0, %v4404_v53 }
 0xae8   :  { %v3380_v26 = vsel %vm2315_vm9, %v5301_v25, 0.0 }
 0xaef   :  { %2855 = vrot.lane.b32.xlu0 %v2226_v28, %s4563_s3 }
 0xb05   :  { %v3550_v10 = vpop.xlane.xlu1 %3549 }
 0xb06   :  { %v3551_v24 = vsub.f32 %v3547_v34, %v3550_v10 }
 0xb08   :  { %v3552_v14 = vmul.f32 1.442695, %v3551_v24 }
 0xb09   :  { %v2325_v16 = vpop.xlane.xlu0 %2324  ;;  %v2680_v34 = vpop.permute.xlu1 %2679 }
 0xb0a   :  { %4405 = vpow2.f32 %v3552_v14  ;;  %v2326_v17 = vmax.f32 %v2325_v16, 1e-30  ;;  %2850 = vadd.xlane.f32.xlu1 %v2849_v62 }
 0xb0c   :  { %4407 = vrcp.f32 %v2326_v17 }
 0xb0e   :  { %3034 = vadd.xlane.f32.xlu0 %v3033_v3  ;;  %3206 = vadd.xlane.f32.xlu1 %v3205_v22  ;;  %v3728_v3 = vld [vmem:[%s5443_s21 + $0x18] sm:$0xff]  ;;  %v3727_v22 = vld [vmem:[%s5443_s21 + $0x10] sm:$0xff] }
 0xb12   :  { %3381 = vadd.xlane.f32.xlu0 %v3380_v26  ;;  %v3726_v26 = vld [vmem:[%s5443_s21 + $0x8] sm:$0xff] }
 0xb17   :  { %v4406_v27 = vpop.eup %4405 }
 0xb18   :  { %v5307_v28 = vsel %vm5109_vm1, 0.0, %v4406_v27  ;;  %vm2936_vm1 = vcmask 256192  }
 0xb19   :  { %v4408_v30 = vpop.eup %4407  ;;  %v3555_v31 = vsel %vm2315_vm9, %v5307_v28, 0.0  ;;  %vm3857_vm9 = vcmask 92208  }
 0xb1a   :  { %3556 = vadd.xlane.f32.xlu1 %v3555_v31  ;;  %v2328_v32 = vmul.f32 %v4408_v30, %v5258_v37 }
 0xb1c   :  { %4236 = vmatmul.mubr.msk.f32.vlgmr.msra.gmra.mxu1 %vm2332_vm11, %v2328_v32 }
 0xb1d   :  { %4244 = vmatpush3.msk.msra.mxu1 %vm1060_vm5, %v2504_v8  ;;  %4245 = vmatprep.mubr.msk.f32.mxu1 %vm4558_vm4, %v4557_v15 }
 0xb1e   :  { %4253 = vmatprep.subr.mxu1 %v4557_v15 }
 0xb28   :  { %3211 = vrot.lane.b32.xlu0 %v3039_v42, %s4562_s13  ;;  %s4574_s13 = smov 24  }
 0xb2b   :  { %3386 = vrot.lane.b32.xlu1 %v3039_v42, %s4561_s27  ;;  %s4573_s27 = smov 16  }
 0xb2c   :  { %3561 = vrot.lane.b32.xlu0 %v3039_v42, %s4563_s3 }
 0xb5e   :  { %v2499_v35 = vpop.xlane.xlu1 %2498 }
 0xb5f   :  { %v2500_v36 = vmax.f32 %v2499_v35, 1e-30 }
 0xb61   :  { %4409 = vrcp.f32 %v2500_v36 }
 0xb62   :  { %v2675_v37 = vpop.xlane.xlu0 %2674  ;;  %v3041_v46 = vpop.permute.xlu1 %3040 }
 0xb63   :  { %v2676_v23 = vmax.f32 %v2675_v37, 1e-30 }
 0xb65   :  { %4411 = vrcp.f32 %v2676_v23 }
 0xb66   :  { %v2856_v44 = vpop.permute.xlu0 %2855 }
 0xb6e   :  { %v4410_v38 = vpop.eup %4409 }
 0xb6f   :  { %v2502_v39 = vmul.f32 %v4410_v38, %v5265_v52 }
 0xb71   :  { %4246 = vmatmul.mubr.msk.f32.vlgmr.msra.gmra.mxu1 %vm2332_vm11, %v2502_v39 }
 0xb72   :  { %v4412_v40 = vpop.eup %4411  ;;  %4254 = vmatpush3.msk.msra.mxu1 %vm1060_vm5, %v2680_v34  ;;  %4255 = vmatprep.mubr.msk.f32.mxu1 %vm4558_vm4, %v4557_v15 }
 0xb73   :  { %4263 = vmatprep.subr.mxu1 %v4557_v15  ;;  %v2678_v43 = vmul.f32 %v4412_v40, %v5271_v57 }
 0xb75   :  { %4256 = vmatmul.mubr.msk.f32.vlgmr.msra.gmra.mxu1 %vm2332_vm11, %v2678_v43 }
 0xb76   :  { %4264 = vmatpush3.msk.msra.mxu1 %vm1060_vm5, %v2856_v44  ;;  %4265 = vmatprep.mubr.msk.f32.mxu1 %vm4558_vm4, %v4557_v15 }
 0xb77   :  { %4273 = vmatprep.subr.mxu1 %v4557_v15 }
 0xb93   :  { %v2851_v50 = vpop.xlane.xlu1 %2850 }
 0xb94   :  { %v2852_v51 = vmax.f32 %v2851_v50, 1e-30 }
 0xb96   :  { %4413 = vrcp.f32 %v2852_v51 }
 0xb97   :  { %v3035_v52 = vpop.xlane.xlu0 %3034  ;;  %v3207_v54 = vpop.xlane.xlu1 %3206 }
 0xb98   :  { %v3036_v55 = vmax.f32 %v3035_v52, 1e-30  ;;  %v3208_v56 = vmax.f32 %v3207_v54, 1e-30 }
 0xb9a   :  { %4415 = vrcp.f32 %v3036_v55 }
 0xb9b   :  { %v3382_v57 = vpop.xlane.xlu0 %3381  ;;  %4417 = vrcp.f32 %v3208_v56  ;;  %v3861_v56 = vsub.s32 3, %v4807_v41 }
 0xb9c   :  { %v3383_v58 = vmax.f32 %v3382_v57, 1e-30 }
 0xb9e   :  { %4419 = vrcp.f32 %v3383_v58 }
 0xb9f   :  { %v3212_v2 = vpop.permute.xlu0 %3211 }
 0xba3   :  { %v4414_v59 = vpop.eup %4413  ;;  %v3557_v42 = vpop.xlane.xlu1 %3556 }
 0xba4   :  { %v3558_v45 = vmax.f32 %v3557_v42, 1e-30  ;;  %v2854_v61 = vmul.f32 %v4414_v59, %v5283_v13  ;;  %v3562_v8 = vpop.permute.xlu0 %3561  ;;  %v3715_v13 = vpop.f32.mrf.mxu0 }
 0xba6   :  { %4421 = vrcp.f32 %v3558_v45  ;;  %4266 = vmatmul.mubr.msk.f32.vlgmr.msra.gmra.mxu1 %vm2332_vm11, %v2854_v61  ;;  %v4312_v11 = vpop.f32.mrf.mxu0 }
 0xba7   :  { %v4416_v63 = vpop.eup %4415  ;;  %4274 = vmatpush3.msk.msra.mxu1 %vm1060_vm5, %v3041_v46  ;;  %4275 = vmatprep.mubr.msk.f32.mxu1 %vm4558_vm4, %v4557_v15  ;;  %v3387_v20 = vpop.permute.xlu1 %3386 }
 0xba8   :  { %4283 = vmatprep.subr.mxu1 %v4557_v15  ;;  %v3038_v0 = vmul.f32 %v4416_v63, %v5289_v18  ;;  %v4418_v1 = vpop.eup %4417 }
 0xba9   :  { %v3210_v4 = vmul.f32 %v4418_v1, %v5293_v21 }
 0xbaa   :  { %4276 = vmatmul.mubr.msk.f32.vlgmr.msra.gmra.mxu1 %vm2332_vm11, %v3038_v0 }
 0xbab   :  { %4284 = vmatpush3.msk.msra.mxu1 %vm1060_vm5, %v3212_v2  ;;  %4285 = vmatprep.mubr.msk.f32.mxu1 %vm4558_vm4, %v4557_v15  ;;  %v4420_v5 = vpop.eup %4419 }
 0xbac   :  { %4293 = vmatprep.subr.mxu1 %v4557_v15  ;;  %v3385_v7 = vmul.f32 %v4420_v5, %v5301_v25 }
 0xbae   :  { %4286 = vmatmul.mubr.msk.f32.vlgmr.msra.gmra.mxu1 %vm2332_vm11, %v3210_v4 }
 0xbaf   :  { %4294 = vmatpush3.msk.msra.mxu1 %vm1060_vm5, %v3387_v20  ;;  %4295 = vmatprep.mubr.msk.f32.mxu1 %vm4558_vm4, %v4557_v15 }
 0xbb0   :  { %4303 = vmatprep.subr.mxu1 %v4557_v15 }
 0xbb2   :  { %4296 = vmatmul.mubr.msk.f32.vlgmr.msra.gmra.mxu1 %vm2332_vm11, %v3385_v7 }
 0xbb3   :  { %v4422_v9 = vpop.eup %4421  ;;  %4304 = vmatpush3.msk.msra.mxu1 %vm1060_vm5, %v3562_v8  ;;  %4305 = vmatprep.mubr.msk.f32.mxu1 %vm4558_vm4, %v4557_v15  ;;  %vm3803_vm5 = vcmp.eq.s32.totalorder %v4807_v41, 3 }
 0xbb4   :  { %v3560_v10 = vmul.f32 %v4422_v9, %v5307_v28  ;;  %4313 = vmatprep.subr.mxu1 %v4557_v15  ;;  %v3725_v28 = vld [vmem:[%s5443_s21] sm:$0xff]  ;;  %s4575_s21 = smov 38  }
 0xbb6   :  { %4306 = vmatmul.mubr.msk.f32.vlgmr.msra.gmra.mxu1 %vm2332_vm11, %v3560_v10 }
 0xbb7   :  { %4321 = vmatprep.mubr.msk.f32.mxu1 %vm4558_vm4, %v4557_v15  ;;  %4314 = vmatpush3.msra.mxu1 %v3728_v3  ;;  %vm3802_vm4 = vcmp.eq.s32.totalorder %v4807_v41, 0 }
 0xbb8   :  { %4315 = vmatprep.subr.mxu1 %v4557_v15  ;;  %vm3804_vm13 = vmor %vm3802_vm4, %vm3803_vm5 }
 0xbb9   :  { %4316 = vmatpush3.msra.mxu1 %v3727_v22  ;;  %vm3810_vm14 = vmor %vm3804_vm13, %vm332_vm8 }
 0xbba   :  { %4317 = vmatprep.subr.mxu1 %v4557_v15  ;;  %v3811_v6 = vsel %vm3810_vm14, 1, %v4571_v49 }
 0xbbb   :  { %4318 = vmatpush3.msra.mxu1 %v3726_v26 }
 0xbbc   :  { %4319 = vmatprep.subr.mxu1 %v4557_v15 }
 0xbbd   :  { %4320 = vmatpush3.msra.mxu1 %v3725_v28 }
 0xbdc   :  { %v2404_v12 = vpop.f32.mrf.mxu1 }
 0xbdd   :  { %2409 = vst.msk [vmem:[#allocation3] sm:$0x7] %vm2408_vm6, %v2404_v12 }
 0xbde   :  { %v4237_v24 = vpop.f32.mrf.mxu1 }
 0xc31   :  { %v2576_v14 = vpop.f32.mrf.mxu1 }
 0xc32   :  { %2581 = vrot.lane.b32.xlu1 %v2576_v14, %s4572_s20 }
 0xc33   :  { %v4247_v16 = vpop.f32.mrf.mxu1 }
 0xc35   :  { %v2752_v62 = vpop.f32.mrf.mxu1 }
 0xc36   :  { %2757 = vrot.lane.b32.xlu1 %v2752_v62, %s4573_s27 }
 0xc37   :  { %v4257_v17 = vpop.f32.mrf.mxu1 }
 0xc66   :  { %v2928_v18 = vpop.f32.mrf.mxu1 }
 0xc67   :  { %2933 = vrot.lane.b32.xlu1 %v2928_v18, %s4574_s13 }
 0xc68   :  { %v4267_v21 = vpop.f32.mrf.mxu1 }
 0xc6a   :  { %v3113_v53 = vpop.f32.mrf.mxu1 }
 0xc6b   :  { %3117 = vst.msk [vmem:[#allocation3 + $0x3] sm:$0x7] %vm2408_vm6, %v3113_v53  ;;  %3720 = vrot.lane.b32.xlu1 %v3715_v13, %s4570_s19  ;;  %s4576_s19 = smov 108  }
 0xc6c   :  { %v4277_v25 = vpop.f32.mrf.mxu1 }
 0xc6e   :  { %v3284_v27 = vpop.f32.mrf.mxu1 }
 0xc6f   :  { %3289 = vrot.lane.b32.xlu0 %v3284_v27, %s4572_s20  ;;  %3813 = vperm.xlu1 %4352, %v3811_v6  }
 0xc70   :  { %v4287_v30 = vpop.f32.mrf.mxu1 }
 0xc72   :  { %v3459_v31 = vpop.f32.mrf.mxu1 }
 0xc73   :  { %3464 = vrot.lane.b32.xlu0 %v3459_v31, %s4573_s27 }
 0xc74   :  { %v4297_v32 = vpop.f32.mrf.mxu1 }
 0xc76   :  { %v3634_v33 = vpop.f32.mrf.mxu1 }
 0xc77   :  { %3639 = vrot.lane.b32.xlu0 %v3634_v33, %s4574_s13 }
 0xc78   :  { %v4307_v34 = vpop.f32.mrf.mxu1 }
 0xca4   :  { %v2582_v15 = vpop.permute.xlu1 %2581 }
 0xca5   :  { %2585 = vst.msk [vmem:[#allocation3] sm:$0x7] %vm2584_vm15, %v2582_v15 }
 0xca8   :  { %v2758_v35 = vpop.permute.xlu1 %2757 }
 0xca9   :  { %2761 = vst.msk [vmem:[#allocation3] sm:$0x7] %vm2760_vm0, %v2758_v35 }
 0xcd9   :  { %v2934_v36 = vpop.permute.xlu1 %2933 }
 0xcda   :  { %2937 = vst.msk [vmem:[#allocation3] sm:$0x7] %vm2936_vm1, %v2934_v36 }
 0xcdd   :  { %v3721_v43 = vpop.permute.xlu1 %3720 }
 0xcde   :  { %v3723_v44 = vadd.f32 %v3721_v43, %v5159_v29 }
 0xce0   :  { %v3724_v54 = vsel %vm1973_vm12, 0.0, %v3723_v44  ;;  %vm3832_vm12 = vcmask 144480  }
 0xce1   :  { %v3290_v37 = vpop.permute.xlu0 %3289 }
 0xce2   :  { %3292 = vst.msk [vmem:[#allocation3 + $0x3] sm:$0x7] %vm2584_vm15, %v3290_v37 }
 0xce5   :  { %v3465_v48 = vpop.permute.xlu0 %3464 }
 0xce6   :  { %3467 = vst.msk [vmem:[#allocation3 + $0x3] sm:$0x7] %vm2760_vm0, %v3465_v48 }
 0xce9   :  { %v3640_v23 = vpop.permute.xlu0 %3639 }
 0xcea   :  { %3642 = vst.msk [vmem:[#allocation3 + $0x3] sm:$0x7] %vm2936_vm1, %v3640_v23  ;;  %v3814_v46 = vpop.permute.xlu1 %3813 }
 0xceb   :  { %vm3815_vm8 = vcmp.eq.s32.totalorder %v3814_v46, 1 }
 0xcf1   :  { %v3643_v49 = vld [vmem:[#allocation3] sm:$0x3f] }
 0xcf2   :  { %4322 = vmatmul.mubr.msk.f32.vlgmr.msra.gmra.mxu1 %vm247_vm3, %v3643_v49  ;;  %vm3826_vm3 = vcmask 46080  }
 0xdb2   :  { %v3798_v38 = vpop.f32.mrf.mxu1 }
 0xdb3   :  { %v3847_v39 = vrot.slane %v3798_v38, %v2233_v47  ;;  %3806 = vrot.lane.b32.xlu0 %v3798_v38, %s4575_s21  ;;  %v3862_v58 = vrot.slane %v3798_v38, %v3861_v56 }
 0xdb4   :  { %v4323_v40 = vpop.f32.mrf.mxu1 }
 0xdb5   :  { %3849 = vrot.lane.b32.xlu1 %v3847_v39, %s4575_s21 }
 0xe25   :  { %v3807_v50 = vpop.permute.xlu0 %3806 }
 0xe26   :  { %v3809_v51 = vadd.f32 %v3807_v50, %v3723_v44 }
 0xe27   :  { %v3850_v47 = vpop.permute.xlu1 %3849 }
 0xe28   :  { %v3816_v52 = vsel %vm3815_vm8, 0.0, %v3809_v51  ;;  %v3852_v55 = vadd.f32 %v3850_v47, %v3723_v44 }
 0xe29   :  { %3834 = vrot.lane.b32.xlu1 %v3816_v52, %s4576_s19  ;;  %3818 = vrot.lane.b32.xlu0 %v3816_v52, %s4577_s24 }
 0xe2d   :  { %3829 = vrot.lane.b32.xlu0 %v3724_v54, %s4576_s19 }
 0xe31   :  { %3839 = vrot.lane.b32.xlu0 %v5137_v19, %s4559_s9 }
 0xe35   :  { %3854 = vrot.lane.b32.xlu0 %v3852_v55, %s4560_s2 }
 0xe9b   :  { %v3819_v29 = vpop.permute.xlu0 %3818  ;;  %v3835_v42 = vpop.permute.xlu1 %3834 }
 0xe9c   :  { %v3821_v57 = vadd.f32 %v3819_v29, %v3724_v54 }
 0xe9e   :  { %3823 = vrot.lane.b32.xlu1 %v3821_v57, %s4560_s2 }
 0xe9f   :  { %v3830_v59 = vpop.permute.xlu0 %3829 }
 0xea2   :  { %3864 = vrot.lane.b32.xlu1 %v3862_v58, %s4575_s21 }
 0xea3   :  { %v3840_v60 = vpop.permute.xlu0 %3839 }
 0xea7   :  { %v3855_v41 = vpop.permute.xlu0 %3854 }
 0xf10   :  { %v3824_v45 = vpop.permute.xlu1 %3823 }
 0xf11   :  { %3827 = vst.msk [vmem:[%s5444_s22] sm:$0x3f] %vm3826_vm3, %v3824_v45 }
 0xf12   :  { %3833 = vst.msk [vmem:[%s5444_s22] sm:$0x3f] %vm3832_vm12, %v3830_v59 }
 0xf13   :  { %3838 = vst.msk [vmem:[%s5444_s22] sm:$0x3f] %vm3837_vm2, %v3835_v42 }
 0xf14   :  { %v3865_v19 = vpop.permute.xlu1 %3864  ;;  %3843 = vst.msk [vmem:[%s5444_s22] sm:$0x3f] %vm3842_vm7, %v3840_v60 }
 0xf15   :  { %v3867_v61 = vadd.f32 %v3865_v19, %v3723_v44  ;;  %3858 = vst.msk [vmem:[%s5444_s22] sm:$0x7] %vm3857_vm9, %v3855_v41 }
 0xf17   :  { %3869 = vrot.lane.b32.xlu0 %v3867_v61, %s4560_s2 }
 0xf89   :  { %v3870_v63 = vpop.permute.xlu0 %3869 }
 0xf8a   :  { %3873 = vst.msk [vmem:[%s5444_s22] sm:$0x38] %vm3872_vm10, %v3870_v63 }
 0xf8b   :  { %3878 = vsyncpa [#allocation5], 1 }
 0xf8c   :  { %3879 = vsyncpa [#allocation7], 1 }
 0xf8d   :  { %3880 = vsyncpa [#allocation10], 1 }
 0xf8e   :  { %3881 = vsyncpa [#allocation13], 1 }

</bundles_post_ra>
